<compile_context>
chip_gen: v7x
topology: tpu7x:2x2x1
jax: 0.10.0
libtpu: 0.0.40
codegen_flags: <defaults>
</compile_context>

<pallas_src>
import functools

import numpy as np
import jax
import jax.numpy as jnp
from jax import lax
from jax.experimental import pallas as pl
from jax.experimental.pallas import tpu as pltpu


# ----------------------------------------------------------------------------
# Kernel: per-row-tile attention.  Grid iterates over N-tiles ("parallel").
# ----------------------------------------------------------------------------
def _oab_tile_kernel(x_ref, wq_ref, qb_ref, proxy_ref, wkv_ref, kvb_ref,
                     wb_ref, bb_ref, out_ref, *, kp, k_valid, k_pad):
    x = x_ref[...]                                                   # [T, Cp] bf16

    # query projection (BN scale and Ckey^-0.5 pre-folded into wq/qb) + ReLU
    q = jnp.dot(x, wq_ref[...], preferred_element_type=jnp.float32)  # [T, Kp] f32
    q = jnp.maximum(q + qb_ref[...], 0.0)

    # fused key|value projection of the tiny proxy, recomputed per tile
    kv = jnp.dot(proxy_ref[...], wkv_ref[...],
                 preferred_element_type=jnp.float32)                 # [Kpad, 2Kp]
    kv = jnp.maximum(kv + kvb_ref[...], 0.0).astype(jnp.bfloat16)
    key = kv[:, :kp]
    val = kv[:, kp:]

    # sim = q @ key.T without materializing a transpose (contract channel axes)
    sim = lax.dot_general(q.astype(jnp.bfloat16), key,
                          (((1,), (1,)), ((), ())),
                          preferred_element_type=jnp.float32)        # [T, Kpad]
    if k_pad > k_valid:  # mask padded proxy columns out of the softmax (static branch)
        col = lax.broadcasted_iota(jnp.int32, sim.shape, 1)
        sim = jnp.where(col < k_valid, sim, -1e30)

    sim = sim - jnp.max(sim, axis=-1, keepdims=True)
    p = jnp.exp(sim)
    p = p * pl.reciprocal(jnp.sum(p, axis=-1, keepdims=True), approx=True)

    ctx = jnp.dot(p.astype(jnp.bfloat16), val,
                  preferred_element_type=jnp.float32)                # [T, Kp]

    # bottleneck projection (BN scale folded into wb) + ReLU, bf16 writeback
    y = jnp.dot(ctx.astype(jnp.bfloat16), wb_ref[...],
                preferred_element_type=jnp.float32)                  # [T, Cp]
    out_ref[...] = jnp.maximum(y + bb_ref[...], 0.0).astype(out_ref.dtype)


# ----------------------------------------------------------------------------
# Wrapper: fold BN scales into weights, pad to lane/sublane multiples, launch.
# ----------------------------------------------------------------------------
def _round_up(v, m):
    return (v + m - 1) // m * m


def _pad2(a, rows, cols):
    return jnp.pad(a, ((0, rows - a.shape[0]), (0, cols - a.shape[1])))


def object_attention_block(x, proxy, P, key_channels, *, tile_n=512):
    n, c_in = x.shape
    k, _ = proxy.shape
    cp = _round_up(c_in, 128)            # lane-dense in/out channel dim
    kp = _round_up(key_channels, 128)    # lane-dense key channel dim
    k_pad = _round_up(k, 128)            # lane-dense proxy count (sim/p lanes)
    n_pad = _round_up(n, tile_n)

    bf = jnp.bfloat16
    s = key_channels ** -0.5

    # Fold eval-mode BN scales into the weights (ReLU(z)*c == ReLU(c*z), c>0)
    # and fold the Ckey^-0.5 softmax scale into the query branch.  Only the
    # additive BN shifts remain in-kernel.
    wq_f = P["wq"] * P["qs"] * s
    qb_f = P["qb"] * s
    wk_f = P["wk"] * P["ks"]
    wv_f = P["wv"] * P["vs"]
    wb_f = P["wb"] * P["bs"]

    xp = _pad2(x, n_pad, cp).astype(bf)
    proxy_p = _pad2(proxy, k_pad, cp).astype(bf)
    wq = _pad2(wq_f, cp, kp).astype(bf)
    wkv = jnp.concatenate([_pad2(wk_f, cp, kp),
                           _pad2(wv_f, cp, kp)], axis=1).astype(bf)
    wb = _pad2(wb_f, kp, cp).astype(bf)
    qb = _pad2(qb_f, 1, kp)
    kvb = jnp.concatenate([_pad2(P["kb"], 1, kp), _pad2(P["vb"], 1, kp)], axis=1)
    bb = _pad2(P["bb"], 1, cp)

    # Padded proxy rows carry ReLU(BN shift) != 0 in key/value; the -1e30
    # column mask applied BEFORE the max-subtract drives their softmax
    # weights to exact 0 (do not reorder/remove that mask).
    kernel = functools.partial(_oab_tile_kernel, kp=kp, k_valid=k, k_pad=k_pad)
    out = pl.pallas_call(
        kernel,
        out_shape=jax.ShapeDtypeStruct((n_pad, cp), bf),   # bf16 writeback
        grid=(n_pad // tile_n,),
        in_specs=[
            pl.BlockSpec((tile_n, cp), lambda i: (i, 0)),   # x row tile
            pl.BlockSpec((cp, kp), lambda i: (0, 0)),       # Wq (scale folded)
            pl.BlockSpec((1, kp), lambda i: (0, 0)),        # q shift
            pl.BlockSpec((k_pad, cp), lambda i: (0, 0)),    # proxy
            pl.BlockSpec((cp, 2 * kp), lambda i: (0, 0)),   # [Wk | Wv] (folded)
            pl.BlockSpec((1, 2 * kp), lambda i: (0, 0)),    # k|v shift
            pl.BlockSpec((kp, cp), lambda i: (0, 0)),       # Wb (scale folded)
            pl.BlockSpec((1, cp), lambda i: (0, 0)),        # bottleneck shift
        ],
        out_specs=pl.BlockSpec((tile_n, cp), lambda i: (i, 0)),
        compiler_params=pltpu.CompilerParams(dimension_semantics=("parallel",)),
    )(xp, wq, qb, proxy_p, wkv, kvb, wb, bb)

    return out[:n, :c_in]


# ----------------------------------------------------------------------------
# Parameter construction (BN folded to eval-mode scale/shift) and reference.
# ----------------------------------------------------------------------------
def _fold_bn(key, c):
    kg, kb, km, kv = jax.random.split(key, 4)
    gamma = jax.random.uniform(kg, (c,), jnp.float32, 0.8, 1.2)
    beta = 0.05 * jax.random.normal(kb, (c,), jnp.float32)
    mean = 0.05 * jax.random.normal(km, (c,), jnp.float32)
    var = jax.random.uniform(kv, (c,), jnp.float32, 0.8, 1.2)
    scale = gamma / jnp.sqrt(var + 1e-5)
    shift = beta - mean * scale
    return scale[None, :], shift[None, :]


def _linear(key, fan_in, fan_out):
    a = 1.0 / np.sqrt(fan_in)
    return jax.random.uniform(key, (fan_in, fan_out), jnp.float32, -a, a)


def init_params(key, c_in, c_key):
    ks = jax.random.split(key, 8)
    P = {}
    P["wq"] = _linear(ks[0], c_in, c_key)
    P["qs"], P["qb"] = _fold_bn(ks[1], c_key)
    P["wk"] = _linear(ks[2], c_in, c_key)
    P["ks"], P["kb"] = _fold_bn(ks[3], c_key)
    P["wv"] = _linear(ks[4], c_in, c_key)
    P["vs"], P["vb"] = _fold_bn(ks[5], c_key)
    P["wb"] = _linear(ks[6], c_key, c_in)
    P["bs"], P["bb"] = _fold_bn(ks[7], c_in)
    return P


def reference_forward(x, proxy, P, key_channels):
    # Pure-JAX replica of the PyTorch forward (bf16 MXU operands, f32 math
    # elsewhere, exact softmax division) so the comparison checks plumbing.
    bf = jnp.bfloat16

    def lin(a, b):
        return jnp.dot(a.astype(bf), b.astype(bf), preferred_element_type=jnp.float32)

    def proj(a, w, s, b):
        return jnp.maximum(lin(a, w) * s + b, 0.0)

    query = proj(x, P["wq"], P["qs"], P["qb"])
    key = proj(proxy, P["wk"], P["ks"], P["kb"])
    value = proj(proxy, P["wv"], P["vs"], P["vb"])
    sim = lin(query, key.T) * (key_channels ** -0.5)
    sim = sim - jnp.max(sim, axis=-1, keepdims=True)
    p = jnp.exp(sim)
    p = p / jnp.sum(p, axis=-1, keepdims=True)
    ctx = lin(p, value)
    return jnp.maximum(lin(ctx, P["wb"]) * P["bs"] + P["bb"], 0.0)


if __name__ == "__main__":
    N = 1000          # points (exercises row-tile padding: 1000 -> 1024, grid=2)
    C_IN = 64         # in_channels  (padded to 128 lanes inside the kernel)
    C_KEY = 32        # key_channels (padded to 128 lanes inside the kernel)
    K = 19            # proxy / object-region count (padded to 128 + masked)

    root = jax.random.PRNGKey(0)
    kx, kpx, kpar = jax.random.split(root, 3)
    x = 0.5 * jax.random.normal(kx, (N, C_IN), jnp.float32)
    proxy = 0.5 * jax.random.normal(kpx, (K, C_IN), jnp.float32)
    params = init_params(kpar, C_IN, C_KEY)

    out = object_attention_block(x, proxy, params, C_KEY, tile_n=512)
    out = jax.block_until_ready(out)

    ref = reference_forward(x, proxy, params, C_KEY)
    np.testing.assert_allclose(np.asarray(out, dtype=np.float32),
                               np.asarray(ref), rtol=2e-2, atol=2e-2)

    print("KERNEL_OK")
</pallas_src>

<mosaic_0001>
module attributes {stable_mosaic.version = 11 : i64} {
  func.func @_oab_tile_kernel(%arg0: i32, %arg1: memref<512x128xbf16, #tpu.memory_space<vmem>>, %arg2: memref<128x128xbf16, #tpu.memory_space<vmem>>, %arg3: memref<1x128xf32, #tpu.memory_space<vmem>>, %arg4: memref<128x128xbf16, #tpu.memory_space<vmem>>, %arg5: memref<128x256xbf16, #tpu.memory_space<vmem>>, %arg6: memref<1x256xf32, #tpu.memory_space<vmem>>, %arg7: memref<128x128xbf16, #tpu.memory_space<vmem>>, %arg8: memref<1x128xf32, #tpu.memory_space<vmem>>, %arg9: memref<512x128xbf16, #tpu.memory_space<vmem>>) attributes {dimension_semantics = [#tpu.dimension_semantics<parallel>], iteration_bounds = array<i64: 2>, scalar_prefetch = 0 : i64, scratch_operands = 0 : i64, tpu.core_type = #tpu.core_type<tc>, window_params = [{transform_indices = @transform_0, window_bounds = array<i64: 512, 128>}, {pipeline_mode = #tpu.pipeline_mode<synchronous>, transform_indices = @transform_1, window_bounds = array<i64: 128, 128>}, {pipeline_mode = #tpu.pipeline_mode<synchronous>, transform_indices = @transform_2, window_bounds = array<i64: 1, 128>}, {pipeline_mode = #tpu.pipeline_mode<synchronous>, transform_indices = @transform_3, window_bounds = array<i64: 128, 128>}, {pipeline_mode = #tpu.pipeline_mode<synchronous>, transform_indices = @transform_4, window_bounds = array<i64: 128, 256>}, {pipeline_mode = #tpu.pipeline_mode<synchronous>, transform_indices = @transform_5, window_bounds = array<i64: 1, 256>}, {pipeline_mode = #tpu.pipeline_mode<synchronous>, transform_indices = @transform_6, window_bounds = array<i64: 128, 128>}, {pipeline_mode = #tpu.pipeline_mode<synchronous>, transform_indices = @transform_7, window_bounds = array<i64: 1, 128>}, {transform_indices = @transform_8, window_bounds = array<i64: 512, 128>}]} {
    %c0 = arith.constant 0 : index
    %c0_0 = arith.constant 0 : index
    %0 = vector.load %arg1[%c0, %c0_0] : memref<512x128xbf16, #tpu.memory_space<vmem>>, vector<512x128xbf16>
    %c0_1 = arith.constant 0 : index
    %c0_2 = arith.constant 0 : index
    %1 = vector.load %arg2[%c0_1, %c0_2] : memref<128x128xbf16, #tpu.memory_space<vmem>>, vector<128x128xbf16>
    %cst = arith.constant dense<0.000000e+00> : vector<512x128xf32>
    %2 = tpu.matmul %0, %1, %cst {dimension_numbers = #tpu.dot_dimension_numbers<[1], [0], [0], [1], [0, 0, 1, 1], [], []>} : vector<512x128xbf16>, vector<128x128xbf16>, vector<512x128xf32> -> vector<512x128xf32>
    %c0_3 = arith.constant 0 : index
    %c0_4 = arith.constant 0 : index
    %3 = vector.load %arg3[%c0_3, %c0_4] : memref<1x128xf32, #tpu.memory_space<vmem>>, vector<1x128xf32>
    %4 = vector.broadcast %3 : vector<1x128xf32> to vector<512x128xf32>
    %5 = arith.addf %2, %4 : vector<512x128xf32>
    %cst_5 = arith.constant 0.000000e+00 : f32
    %6 = vector.broadcast %cst_5 : f32 to vector<512x128xf32>
    %7 = arith.maximumf %5, %6 : vector<512x128xf32>
    %c0_6 = arith.constant 0 : index
    %c0_7 = arith.constant 0 : index
    %8 = vector.load %arg4[%c0_6, %c0_7] : memref<128x128xbf16, #tpu.memory_space<vmem>>, vector<128x128xbf16>
    %c0_8 = arith.constant 0 : index
    %c0_9 = arith.constant 0 : index
    %9 = vector.load %arg5[%c0_8, %c0_9] : memref<128x256xbf16, #tpu.memory_space<vmem>>, vector<128x256xbf16>
    %cst_10 = arith.constant dense<0.000000e+00> : vector<128x256xf32>
    %10 = tpu.matmul %8, %9, %cst_10 {dimension_numbers = #tpu.dot_dimension_numbers<[1], [0], [0], [1], [0, 0, 1, 1], [], []>} : vector<128x128xbf16>, vector<128x256xbf16>, vector<128x256xf32> -> vector<128x256xf32>
    %c0_11 = arith.constant 0 : index
    %c0_12 = arith.constant 0 : index
    %11 = vector.load %arg6[%c0_11, %c0_12] : memref<1x256xf32, #tpu.memory_space<vmem>>, vector<1x256xf32>
    %12 = vector.broadcast %11 : vector<1x256xf32> to vector<128x256xf32>
    %13 = arith.addf %10, %12 : vector<128x256xf32>
    %cst_13 = arith.constant 0.000000e+00 : f32
    %14 = vector.broadcast %cst_13 : f32 to vector<128x256xf32>
    %15 = arith.maximumf %13, %14 : vector<128x256xf32>
    %16 = arith.truncf %15 : vector<128x256xf32> to vector<128x256xbf16>
    %17 = vector.extract_strided_slice %16 {offsets = [0, 0], sizes = [128, 128], strides = [1, 1]} : vector<128x256xbf16> to vector<128x128xbf16>
    %18 = vector.extract_strided_slice %16 {offsets = [0, 128], sizes = [128, 128], strides = [1, 1]} : vector<128x256xbf16> to vector<128x128xbf16>
    %19 = arith.truncf %7 : vector<512x128xf32> to vector<512x128xbf16>
    %cst_14 = arith.constant dense<0.000000e+00> : vector<512x128xf32>
    %20 = tpu.matmul %19, %17, %cst_14 {dimension_numbers = #tpu.dot_dimension_numbers<[1], [1], [0], [0], [0, 0, 1, 0], [], []>} : vector<512x128xbf16>, vector<128x128xbf16>, vector<512x128xf32> -> vector<512x128xf32>
    %21 = tpu.iota {dimensions = array<i32: 1>} : vector<512x128xi32>
    %c19_i32 = arith.constant 19 : i32
    %22 = vector.broadcast %c19_i32 : i32 to vector<512x128xi32>
    %23 = arith.cmpi slt, %21, %22 : vector<512x128xi32>
    %cst_15 = arith.constant -1.000000e+30 : f32
    %24 = vector.broadcast %cst_15 : f32 to vector<512x128xf32>
    %25 = arith.select %23, %20, %24 : vector<512x128xi1>, vector<512x128xf32>
    %cst_16 = arith.constant dense<0xFF800000> : vector<512xf32>
    %26 = vector.multi_reduction <maximumf>, %25, %cst_16 [1] : vector<512x128xf32> to vector<512xf32>
    %27 = vector.shape_cast %26 : vector<512xf32> to vector<512x1xf32>
    %28 = vector.broadcast %27 : vector<512x1xf32> to vector<512x128xf32>
    %29 = arith.subf %25, %28 : vector<512x128xf32>
    %30 = math.exp %29 : vector<512x128xf32>
    %cst_17 = arith.constant dense<0.000000e+00> : vector<512xf32>
    %31 = vector.multi_reduction <add>, %30, %cst_17 [1] : vector<512x128xf32> to vector<512xf32>
    %32 = vector.shape_cast %31 : vector<512xf32> to vector<512x1xf32>
    %33 = tpu.reciprocal %32 {approx = true} : vector<512x1xf32> -> vector<512x1xf32>
    %34 = vector.broadcast %33 : vector<512x1xf32> to vector<512x128xf32>
    %35 = arith.mulf %30, %34 : vector<512x128xf32>
    %36 = arith.truncf %35 : vector<512x128xf32> to vector<512x128xbf16>
    %cst_18 = arith.constant dense<0.000000e+00> : vector<512x128xf32>
    %37 = tpu.matmul %36, %18, %cst_18 {dimension_numbers = #tpu.dot_dimension_numbers<[1], [0], [0], [1], [0, 0, 1, 1], [], []>} : vector<512x128xbf16>, vector<128x128xbf16>, vector<512x128xf32> -> vector<512x128xf32>
    %38 = arith.truncf %37 : vector<512x128xf32> to vector<512x128xbf16>
    %c0_19 = arith.constant 0 : index
    %c0_20 = arith.constant 0 : index
    %39 = vector.load %arg7[%c0_19, %c0_20] : memref<128x128xbf16, #tpu.memory_space<vmem>>, vector<128x128xbf16>
    %cst_21 = arith.constant dense<0.000000e+00> : vector<512x128xf32>
    %40 = tpu.matmul %38, %39, %cst_21 {dimension_numbers = #tpu.dot_dimension_numbers<[1], [0], [0], [1], [0, 0, 1, 1], [], []>} : vector<512x128xbf16>, vector<128x128xbf16>, vector<512x128xf32> -> vector<512x128xf32>
    %c0_22 = arith.constant 0 : index
    %c0_23 = arith.constant 0 : index
    %41 = vector.load %arg8[%c0_22, %c0_23] : memref<1x128xf32, #tpu.memory_space<vmem>>, vector<1x128xf32>
    %42 = vector.broadcast %41 : vector<1x128xf32> to vector<512x128xf32>
    %43 = arith.addf %40, %42 : vector<512x128xf32>
    %cst_24 = arith.constant 0.000000e+00 : f32
    %44 = vector.broadcast %cst_24 : f32 to vector<512x128xf32>
    %45 = arith.maximumf %43, %44 : vector<512x128xf32>
    %46 = arith.truncf %45 : vector<512x128xf32> to vector<512x128xbf16>
    %c0_25 = arith.constant 0 : index
    %c0_26 = arith.constant 0 : index
    %47 = vector.load %arg9[%c0_25, %c0_26] : memref<512x128xbf16, #tpu.memory_space<vmem>>, vector<512x128xbf16>
    tpu.vector_store %arg9[%c0_25, %c0_26], %46 {strides = array<i32>} : memref<512x128xbf16, #tpu.memory_space<vmem>>, vector<512x128xbf16>,
    return
  }
  func.func @transform_0(%arg0: i32) -> (i32, i32) {
    %c0_i32 = arith.constant 0 : i32
    %c0_i32_0 = arith.constant 0 : i32
    return %arg0, %c0_i32 : i32, i32
  }
  func.func @transform_1(%arg0: i32) -> (i32, i32) {
    %c0_i32 = arith.constant 0 : i32
    %c0_i32_0 = arith.constant 0 : i32
    %c0_i32_1 = arith.constant 0 : i32
    return %c0_i32, %c0_i32_0 : i32, i32
  }
  func.func @transform_2(%arg0: i32) -> (i32, i32) {
    %c0_i32 = arith.constant 0 : i32
    %c0_i32_0 = arith.constant 0 : i32
    %c0_i32_1 = arith.constant 0 : i32
    return %c0_i32, %c0_i32_0 : i32, i32
  }
  func.func @transform_3(%arg0: i32) -> (i32, i32) {
    %c0_i32 = arith.constant 0 : i32
    %c0_i32_0 = arith.constant 0 : i32
    %c0_i32_1 = arith.constant 0 : i32
    return %c0_i32, %c0_i32_0 : i32, i32
  }
  func.func @transform_4(%arg0: i32) -> (i32, i32) {
    %c0_i32 = arith.constant 0 : i32
    %c0_i32_0 = arith.constant 0 : i32
    %c0_i32_1 = arith.constant 0 : i32
    return %c0_i32, %c0_i32_0 : i32, i32
  }
  func.func @transform_5(%arg0: i32) -> (i32, i32) {
    %c0_i32 = arith.constant 0 : i32
    %c0_i32_0 = arith.constant 0 : i32
    %c0_i32_1 = arith.constant 0 : i32
    return %c0_i32, %c0_i32_0 : i32, i32
  }
  func.func @transform_6(%arg0: i32) -> (i32, i32) {
    %c0_i32 = arith.constant 0 : i32
    %c0_i32_0 = arith.constant 0 : i32
    %c0_i32_1 = arith.constant 0 : i32
    return %c0_i32, %c0_i32_0 : i32, i32
  }
  func.func @transform_7(%arg0: i32) -> (i32, i32) {
    %c0_i32 = arith.constant 0 : i32
    %c0_i32_0 = arith.constant 0 : i32
    %c0_i32_1 = arith.constant 0 : i32
    return %c0_i32, %c0_i32_0 : i32, i32
  }
  func.func @transform_8(%arg0: i32) -> (i32, i32) {
    %c0_i32 = arith.constant 0 : i32
    %c0_i32_0 = arith.constant 0 : i32
    return %arg0, %c0_i32 : i32, i32
  }
}

</mosaic_0001>

<bundles_post_ra>
// kernel: tpu_custom_call.1
= control target key start
LH: loop header
LB: loop body
LE: loop exit
PB: predicated region body
PF: predicated region fallthrough
CT: control target
= control target key end

     0   :  { %s6560_s0 = inlined_call_operand.hbm [shape: bf16[1024,128], index: 0, kind: input, shape index: {}]   ;;  %s6561_s1 = inlined_call_operand.hbm [shape: bf16[128,128], index: 1, kind: input, shape index: {}]   ;;  %s6562_s2 = inlined_call_operand.vmem [shape: f32[1,128], index: 2, kind: input, shape index: {}]   ;;  %s6563_s3 = inlined_call_operand.hbm [shape: bf16[128,128], index: 3, kind: input, shape index: {}]   ;;  %s6564_s4 = inlined_call_operand.hbm [shape: bf16[128,256], index: 4, kind: input, shape index: {}]   ;;  %s6565_s5 = inlined_call_operand.vmem [shape: f32[1,256], index: 5, kind: input, shape index: {}]   ;;  %s6566_s6 = inlined_call_operand.hbm [shape: bf16[128,128], index: 6, kind: input, shape index: {}]   ;;  %s6567_s7 = inlined_call_operand.vmem [shape: f32[1,128], index: 7, kind: input, shape index: {}]   ;;  %s6568_s8 = inlined_call_operand.hbm [shape: bf16[1024,128], index: 8, kind: output, shape index: {}]  }
   0x1   :  { %6612 = sst [smem:[#allocation39_spill]] %s6561_s1 }
   0x2   :  { %13 = vsyncpa [#allocation3], 0 }
   0x3   :  { %15 = vsyncpa [#allocation3 + $0x1], 0 }
   0x4   :  { %16 = vsyncpa [#allocation6], 0 }
   0x5   :  { %17 = vsyncpa [#allocation9], 0 }
   0x6   :  { %18 = vsyncpa [#allocation4], 0 }
   0x7   :  { %20 = vsyncpa [#allocation4 + $0x1], 0  ;;  %s5203_s27 = smov 0   ;;  %s5205_s28 = smov 0  }
   0x8   :  { %s5207_s29 = smov 0   ;;  %s5209_s30 = smov 0  }
   0x9 LB: > { %s5224_s9 = sadd.s32 4294967295, %s5143_s30   ;;  %s3584_s10 = sadd.s32 4294967294, %s5143_s30   ;;  %s5143_s30 = sphi %s5209_s30, %s6707_s30   ;;  %s5139_s29 = sphi %s5207_s29, %s6706_s29   ;;  %s5135_s28 = sphi %s5205_s28, %s6705_s28   ;;  %s5131_s27 = sphi %s5203_s27, %s6704_s27  }
   0xa   : > { %p46_p0 = scmp.ne.s32.totalorder %s5135_s28, %s5131_s27  ;;  %p6569_p1 = scmp.eq.s32.totalorder %s5224_s9, 0 }
   0xb   : > { %p223_p3 = scmp.eq.s32.totalorder %s3584_s10, 1  ;;  %p3585_p5 = scmp.ge.s32.totalorder %s5143_s30, 1 }
   0xc   : > { %p5233_p4 = por %p6569_p1, %p46_p0  ;;  %p230_p7 = scmp.lt.s32.totalorder %s5143_s30, 3 }
   0xd   : > { %p5238_p6 = por %p223_p3, %p46_p0  ;;  %s5145_s14 = smov [#allocation5]  }
   0xe   : > { %s6613_s11 = scalar_select %p5233_p4, 1, 0 }
   0xf   : > { %s6614_s12 = scalar_select %p5238_p6, 1, 0 }
  0x10   : > { %p5243_p8 = pnand %p3585_p5, %p230_p7  ;;  %s242_s15 = sshll.u32 %s5145_s14, 4  ;;  %s5247_s15 = int_to_ptr.vmem [resolvable:$true] %s242_s15 }
  0x11   : > { %6615 = sst [smem:[#allocation16_spill]] %s6614_s12  ;;  %s5146_s17 = smov [#allocation8]  }
  0x12   : > { %s6616_s13 = scalar_select %p5243_p8, 1, 0 }
  0x13   : > { %p4517_p9 = pneg %p5243_p8  ;;  %s271_s18 = sshll.u32 %s5146_s17, 4  ;;  %s5258_s18 = int_to_ptr.vmem [resolvable:$true] %s271_s18 }
  0x14   : > { %s6618_s1 = sld [smem:[#allocation39_spill]] }
  0x15   : > { %p5254_p11 = pnand %p4517_p9, %p6569_p1 }
  0x17   : > { %p5268_p13 = pneg %p5254_p11 }
  0x1a   : > { %s4927_s21 = scalar_lea.hbm %s6618_s1, 1024 }
  0x1b   : > { %p4928_p12 = scmp.ne.s32.totalorder %s6618_s1, %s4927_s21  ;;  %p4934_p5 = scmp.lt.u32.totalorder %s4927_s21, %s6618_s1 }
  0x1d   : > { %p4930_p0 = pnand %p5268_p13, %p4928_p12 }
  0x1f   : > { %p4931_p3 = pneg %p4930_p0 }
  0x21   : > { %p4936_p7 = pnand %p4934_p5, %p4931_p3 }
  0x23   : > { %4939 = shalt.err (!%p4936_p7)
}
  0x24   : > { %s4940_s10 = scalar_lea.vmem %s5247_s15, 1024  ;;  %p4948_p2 = scmp.lt.s32.totalorder %s5247_s15, %s5247_s15 }
  0x25   : > { %p4941_p9 = scmp.ne.s32.totalorder %s5247_s15, %s4940_s10  ;;  %p4949_p6 = scmp.lt.s32.totalorder %s4940_s10, %s4940_s10 }
  0x27   : > { %p4943_p10 = pnand %p4941_p9, %p5268_p13  ;;  %p4950_p12 = por %p4949_p6, %p4948_p2 }
  0x29   : > { %p4944_p1 = pneg %p4943_p10 }
  0x2b   : > { %p4951_p0 = pnand %p4950_p12, %p4944_p1 }
  0x2d   : > { %4954 = shalt.err (!%p4951_p0)
}
  0x2e   : > { %s6571_s14 = smov 64   ;;  %s6573_s17 = smov 4  }
  0x2f   : > { %4520 = dma.hbm_to_vmem [thread:$0]  (!%p5254_p11), %s6618_s1, 1024, %s5247_s15, [#allocation6], %s6571_s14, %s6571_s14, %s6573_s17  }
  0x30   : > { %s4955_s23 = scalar_lea.hbm %s6564_s4, 2048 }
  0x31   : > { %p4956_p1 = scmp.ne.s32.totalorder %s6564_s4, %s4955_s23  ;;  %p4962_p10 = scmp.lt.u32.totalorder %s4955_s23, %s6564_s4 }
  0x33   : > { %p4958_p2 = pnand %p4956_p1, %p5268_p13 }
  0x35   : > { %p4959_p6 = pneg %p4958_p2 }
  0x37   : > { %p4964_p3 = pnand %p4962_p10, %p4959_p6 }
  0x39   : > { %4967 = shalt.err (!%p4964_p3)
}
  0x3a   : > { %s4968_s15 = scalar_lea.vmem %s5258_s18, 2048  ;;  %p4976_p12 = scmp.lt.s32.totalorder %s5258_s18, %s5258_s18 }
  0x3b   : > { %p4969_p5 = scmp.ne.s32.totalorder %s5258_s18, %s4968_s15  ;;  %p4977_p0 = scmp.lt.s32.totalorder %s4968_s15, %s4968_s15 }
  0x3d   : > { %p4971_p7 = pnand %p4969_p5, %p5268_p13  ;;  %p4978_p1 = por %p4977_p0, %p4976_p12 }
  0x3f   : > { %p4972_p9 = pneg %p4971_p7 }
  0x41   : > { %p4979_p2 = pnand %p4978_p1, %p4972_p9 }
  0x43   : > { %4982 = shalt.err (!%p4979_p2)
}
  0x44   : > { %s5149_s19 = smov 128   ;;  %s5150_s12 = smov 8  }
  0x45   : > { %4526 = dma.hbm_to_vmem [thread:$0]  (!%p5254_p11), %s6564_s4, 2048, %s5258_s18, [#allocation9], %s5149_s19, %s5149_s19, %s5150_s12  }
  0x46   : > { %s5151_s22 = smov [#allocation7]   ;;  %s5152_s25 = smov [#allocation10]  }
  0x47   : > { %s258_s23 = sshll.u32 %s5151_s22, 4  ;;  %s287_s26 = sshll.u32 %s5152_s25, 4  ;;  %s259_s23 = int_to_ptr.vmem [resolvable:$true] %s258_s23  ;;  %s5315_s26 = int_to_ptr.vmem [resolvable:$true] %s287_s26 }
  0x48   : > { %s4983_s14 = scalar_lea.hbm %s6563_s3, 1024 }
  0x49   : > { %p4984_p6 = scmp.ne.s32.totalorder %s6563_s3, %s4983_s14  ;;  %p4990_p5 = scmp.lt.u32.totalorder %s4983_s14, %s6563_s3 }
  0x4b   : > { %p4986_p10 = pnand %p4984_p6, %p5268_p13 }
  0x4d   : > { %p4987_p3 = pneg %p4986_p10 }
  0x4f   : > { %p4992_p7 = pnand %p4990_p5, %p4987_p3 }
  0x51   : > { %4995 = shalt.err (!%p4992_p7)
}
  0x52   : > { %s4996_s19 = scalar_lea.vmem %s259_s23, 1024  ;;  %p5004_p1 = scmp.lt.s32.totalorder %s259_s23, %s259_s23 }
  0x53   : > { %p4997_p9 = scmp.ne.s32.totalorder %s259_s23, %s4996_s19  ;;  %p5005_p2 = scmp.lt.s32.totalorder %s4996_s19, %s4996_s19 }
  0x55   : > { %p4999_p12 = pnand %p4997_p9, %p5268_p13  ;;  %p5006_p4 = por %p5005_p2, %p5004_p1 }
  0x57   : > { %p5000_p0 = pneg %p4999_p12 }
  0x59   : > { %p5007_p8 = pnand %p5006_p4, %p5000_p0 }
  0x5b   : > { %5010 = shalt.err (!%p5007_p8)
}
  0x5c   : > { %s6620_s1 = smov 4   ;;  %s6621_s17 = smov 64  }
  0x5d   : > { %4523 = dma.hbm_to_vmem [thread:$0]  (!%p5254_p11), %s6563_s3, 1024, %s259_s23, [#allocation6], %s6621_s17, %s6621_s17, %s6620_s1  }
  0x5e   : > { %s5011_s25 = scalar_lea.hbm %s6566_s6, 1024 }
  0x5f   : > { %p5012_p6 = scmp.ne.s32.totalorder %s6566_s6, %s5011_s25  ;;  %p5018_p10 = scmp.lt.u32.totalorder %s5011_s25, %s6566_s6 }
  0x61   : > { %p5014_p4 = pnand %p5012_p6, %p5268_p13 }
  0x63   : > { %p5015_p8 = pneg %p5014_p4 }
  0x65   : > { %p5020_p3 = pnand %p5018_p10, %p5015_p8 }
  0x67   : > { %5023 = shalt.err (!%p5020_p3)
}
  0x68   : > { %s5024_s23 = scalar_lea.vmem %s5315_s26, 1024  ;;  %p5032_p12 = scmp.lt.s32.totalorder %s5315_s26, %s5315_s26 }
  0x69   : > { %p5025_p5 = scmp.ne.s32.totalorder %s5315_s26, %s5024_s23  ;;  %p5033_p0 = scmp.lt.s32.totalorder %s5024_s23, %s5024_s23 }
  0x6b   : > { %p5027_p7 = pnand %p5025_p5, %p5268_p13  ;;  %p5034_p1 = por %p5033_p0, %p5032_p12 }
  0x6d   : > { %p5028_p9 = pneg %p5027_p7 }
  0x6f   : > { %p5035_p2 = pnand %p5034_p1, %p5028_p9 }
  0x71   : > { %5038 = shalt.err (!%p5035_p2)
}
  0x72   : > { %4529 = dma.hbm_to_vmem [thread:$0]  (!%p5254_p11), %s6566_s6, 1024, %s5315_s26, [#allocation9], %s6621_s17, %s6621_s17, %s6620_s1  }
  0x73   : > { %s5365_s16 = sadd.s32 1, %s5143_s30   ;;  %s33_s14 = sadd.s32 1, %s5139_s29 }
  0x74   : > { %s30_s24 = ssub.s32 %s5143_s30, %s5365_s16  ;;  %p40_p6 = scmp.ne.s32.totalorder %s5139_s29, %s5135_s28 }
  0x75   : > { %p31_p13 = scmp.eq.s32.totalorder %s30_s24, 0  ;;  %p41_p4 = scmp.eq.s32.totalorder %s5143_s30, 0 }
  0x76   : > { %p6622_p10 = scmp.eq.s32.totalorder %s5224_s9, 1  ;;  %p4542_p5 = scmp.lt.s32.totalorder %s5143_s30, 2 }
  0x77   : > { %s5374_s21 = scalar_select %p31_p13, %s5139_s29, %s33_s14  }
  0x78   : > { %p42_p8 = por %p41_p4, %p40_p6  ;;  %p5378_p3 = por %p6622_p10, %p40_p6 }
  0x79   : > { %s304_s25 = sand.u32 1, %s5139_s29   ;;  %s3744_s26 = sshll.u32 %s5143_s30, 12 }
  0x7a   : > { %s3591_s10 = sshll.u32 %s304_s25, 8  ;;  %s5388_s18 = scalar_lea.hbm %s6560_s0, %s3744_s26 }
  0x7b   : > { %s308_s23 = scalar_lea.vmem [#allocation2], %s3591_s10  ;;  %p5392_p11 = pnand %p4542_p5, %p42_p8 }
  0x7c   : > { %s315_s19 = sshll.u32 %s308_s23, 4  ;;  %s5396_s24 = scalar_lea.sflag [#allocation3], %s304_s25  ;;  %s5390_s19 = int_to_ptr.vmem [resolvable:$true] %s315_s19 }
  0x7d   : > { %s5039_s14 = scalar_lea.hbm %s5388_s18, 4096  ;;  %p5041_p9 = pneg %p5392_p11 }
  0x7e   : > { %p5040_p7 = scmp.ne.s32.totalorder %s5388_s18, %s5039_s14  ;;  %s5044_s15 = scalar_lea.hbm %s6560_s0, 8192 }
  0x7f   : > { %p5045_p1 = scmp.lt.u32.totalorder %s5388_s18, %s6560_s0  ;;  %p5046_p2 = scmp.lt.u32.totalorder %s5044_s15, %s5039_s14 }
  0x80   : > { %p5042_p12 = pnand %p5041_p9, %p5040_p7  ;;  %p5048_p6 = scmp.lt.u32.totalorder %s5039_s14, %s5388_s18 }
  0x81   : > { %p5047_p13 = por %p5046_p2, %p5045_p1 }
  0x82   : > { %p5043_p0 = pneg %p5042_p12 }
  0x83   : > { %p5049_p4 = por %p5048_p6, %p5047_p13 }
  0x85   : > { %p5050_p8 = pnand %p5049_p4, %p5043_p0 }
  0x87   : > { %5053 = shalt.err (!%p5050_p8)
}
  0x88   : > { %s5054_s25 = scalar_lea.vmem %s5390_s19, 4096  ;;  %s5153_s10 = smov [#allocation2]  }
  0x89   : > { %p5055_p10 = scmp.ne.s32.totalorder %s5390_s19, %s5054_s25  ;;  %s5059_s26 = sshll.u32 %s5153_s10, 4  ;;  %s5060_s26 = int_to_ptr.vmem [resolvable:$false] %s5059_s26 }
  0x8a   : > { %s5061_s20 = scalar_lea.vmem %s5060_s26, 8192  ;;  %p5062_p12 = scmp.lt.s32.totalorder %s5390_s19, %s5060_s26 }
  0x8b   : > { %p5057_p5 = pnand %p5055_p10, %p5041_p9  ;;  %p5063_p1 = scmp.lt.s32.totalorder %s5061_s20, %s5054_s25 }
  0x8d   : > { %p5058_p7 = pneg %p5057_p5  ;;  %p5064_p2 = por %p5063_p1, %p5062_p12 }
  0x8f   : > { %p5065_p13 = pnand %p5064_p2, %p5058_p7 }
  0x91   : > { %5068 = shalt.err (!%p5065_p13)
}
  0x92   : > { %4533 = dma.hbm_to_vmem [thread:$0]  (!%p5392_p11), %s5388_s18, 4096, %s5390_s19, %s5396_s24, %s6621_s17, %s6621_s17, %s6620_s1  }
  0x93   : > { %p6625_p9 = scmp.ne.s32.totalorder %s6616_s13, 0 }
  0x95   : > { %327 = sbr.rel (%p6625_p9) target bundleno = 1691 (0x69b), region = 52 }
  0x9c   : > { %s5430_s14 = sand.u32 1, %s5135_s28   ;;  %p6626_p0 = scmp.ne.s32.totalorder %s6613_s11, 0 }
  0x9d   : > { %s3595_s15 = sshll.u32 %s5430_s14, 8  ;;  %s330_s23 = scalar_lea.sflag [#allocation3], %s5430_s14 }
  0x9e   : > { %s5436_s12 = scalar_lea.vmem [#allocation2], %s3595_s15 }
  0x9f   : > { %5114 = dma.done.wait (%p6626_p0), %s330_s23, 4096  }
  0xa0   : > { %5116 = vsyncadd (%p6626_p0), %s330_s23, 4294963200  ;;  %p6627_p11 = scmp.eq.s32.totalorder %s5224_s9, 0 }
  0xa2   : > { %5118 = dma.done.wait (%p6627_p11), [#allocation6], 2048   ;;  %p6628_p6 = pmov %p6627_p11 }
  0xa4   : > { %5120 = vsyncadd (%p6628_p6), [#allocation6], 4294965248  ;;  %p6629_p4 = pmov %p6628_p6 }
  0xa6   : > { %5122 = dma.done.wait (%p6629_p4), [#allocation9], 3072   ;;  %p6630_p8 = pmov %p6629_p4 }
  0xa7   : > { %v5154_v0 = vmov 0   ;;  %v4591_v1 = vld [vmem:[#allocation8 + $0x4] ss:$8 sps:$4 sm:$0xff]   ;;  %v4593_v2 = vld [vmem:[#allocation8] ss:$8 sps:$4 sm:$0xff]   ;;  %v4618_v13 = vld [vmem:[#allocation5 + $0x10] sm:$0xff]  }
  0xa8   : > { %5124 = vsyncadd (%p6630_p8), [#allocation9], 4294964224  ;;  %1269 = vmatprep.mubr.bf16.mxu1 %v5154_v0  ;;  %1237 = vmatprep.subr.bf16.mxu1 %v4591_v1  ;;  %v4594_v3 = vld [vmem:[#allocation8 + $0x14] ss:$8 sps:$4 sm:$0xff]   ;;  %v4596_v4 = vld [vmem:[#allocation8 + $0x10] ss:$8 sps:$4 sm:$0xff]   ;;  %v1099_v1 = vlaneseq }
  0xa9   : > { %1238 = vmatpush1.bf16.msra.mxu1 %v4593_v2  ;;  %v4597_v5 = vld [vmem:[#allocation8 + $0x24] ss:$8 sps:$4 sm:$0xff]   ;;  %v4599_v6 = vld [vmem:[#allocation8 + $0x20] ss:$8 sps:$4 sm:$0xff]   ;;  %v4600_v7 = vld [vmem:[#allocation8 + $0x34] ss:$8 sps:$4 sm:$0xff]  }
  0xaa   : > { %1239 = vmatprep.subr.bf16.mxu1 %v4594_v3  ;;  %v4602_v8 = vld [vmem:[#allocation8 + $0x30] ss:$8 sps:$4 sm:$0xff]   ;;  %v4615_v9 = vld [vmem:[#allocation5] sm:$0xff]   ;;  %v4617_v11 = vld [vmem:[#allocation5 + $0x8] sm:$0xff]   ;;  %v1100_v2 = vshrl.u32 %v1099_v1, 7  ;;  %s6415_s24 = scalar_lea.vmem [#allocation11], %s3595_s15 }
  0xab   : > { %v4603_v10 = vld [vmem:[#allocation8 + $0x44] ss:$8 sps:$4 sm:$0xff]   ;;  %4161 = vmatprep.subr.bf16.mxu0 %v4615_v9  ;;  %v4605_v12 = vld [vmem:[#allocation8 + $0x40] ss:$8 sps:$4 sm:$0xff]   ;;  %v4606_v14 = vld [vmem:[#allocation8 + $0x54] ss:$8 sps:$4 sm:$0xff]  }
  0xac   : > { %4162 = vmatpush3.bf16.msra.mxu0 %v4615_v9  ;;  %v4608_v15 = vld [vmem:[#allocation8 + $0x50] ss:$8 sps:$4 sm:$0xff]   ;;  %v4609_v17 = vld [vmem:[#allocation8 + $0x64] ss:$8 sps:$4 sm:$0xff]   ;;  %v4611_v18 = vld [vmem:[#allocation8 + $0x60] ss:$8 sps:$4 sm:$0xff]  }
  0xad   : > { %1240 = vmatpush1.bf16.msra.mxu1 %v4596_v4  ;;  %4163 = vmatprep.subr.bf16.mxu0 %v4617_v11  ;;  %v4620_v16 = vld [vmem:[#allocation5 + $0x18] sm:$0xff]   ;;  %v4621_v19 = vld [vmem:[#allocation5 + $0x20] sm:$0xff]   ;;  %v4623_v23 = vld [vmem:[#allocation5 + $0x28] sm:$0xff]   ;;  %v1101_v3 = vsub.s32 0, %v1100_v2  ;;  %s3809_s25 = sshll.u32 %s5224_s9, 12  ;;  %s3473_s10 = sshll.u32 %s6415_s24, 4  ;;  %s6514_s10 = int_to_ptr.vmem [resolvable:$true] %s3473_s10 }
  0xae   : > { %1241 = vmatprep.subr.bf16.mxu1 %v4597_v5  ;;  %v4627_v20 = vld [vmem:[%s5436_s12] sm:$0xff]   ;;  %v4612_v21 = vld [vmem:[#allocation8 + $0x74] ss:$8 sps:$4 sm:$0xff]   ;;  %v4614_v22 = vld [vmem:[#allocation8 + $0x70] ss:$8 sps:$4 sm:$0xff]   ;;  %v1105_v5 = vsub.s32 1, %v1100_v2  ;;  %s6512_s15 = scalar_lea.hbm %s6568_s8, %s3809_s25 }
  0xaf   : > { %4177 = vmatprep.mubr.bf16.mxu0 %v4627_v20  ;;  %v4616_v24 = vld [vmem:[#allocation7] sm:$0xff]   ;;  %v4624_v25 = vld [vmem:[#allocation5 + $0x30] sm:$0xff]   ;;  %v4626_v26 = vld [vmem:[#allocation5 + $0x38] sm:$0xff]   ;;  %s3460_s9 = scalar_lea.sflag [#allocation4], %s5430_s14  ;;  %s5069_s23 = scalar_lea.vmem %s6514_s10, 4096 }
  0xb0   : > { %4164 = vmatpush3.bf16.msra.mxu0 %v4617_v11  ;;  %v4619_v27 = vld [vmem:[#allocation7 + $0x8] sm:$0xff]   ;;  %v4630_v29 = vld [vmem:[%s5436_s12 + $0x10] sm:$0xff]   ;;  %v4631_v31 = vld [vmem:[%s5436_s12 + $0x18] sm:$0xff]   ;;  %p5070_p10 = scmp.ne.s32.totalorder %s6514_s10, %s5069_s23 }
  0xb1   : > { %1242 = vmatpush1.bf16.msra.mxu1 %v4599_v6  ;;  %4165 = vmatprep.subr.bf16.mxu0 %v4618_v13  ;;  %v4628_v28 = vld [vmem:[%s5436_s12 + $0x8] sm:$0xff]   ;;  %v4622_v30 = vld [vmem:[#allocation7 + $0x10] sm:$0xff]   ;;  %v4633_v32 = vld [vmem:[%s5436_s12 + $0x20] sm:$0xff]  }
  0xb2   : > { %1243 = vmatprep.subr.bf16.mxu1 %v4600_v7  ;;  %v4625_v33 = vld [vmem:[#allocation7 + $0x18] sm:$0xff]   ;;  %v4634_v34 = vld [vmem:[%s5436_s12 + $0x28] sm:$0xff]   ;;  %v4636_v35 = vld [vmem:[%s5436_s12 + $0x30] sm:$0xff]   ;;  %p5071_p5 = pnand %p5070_p10, %p5378_p3 }
  0xb3   : > { %v4629_v36 = vld [vmem:[#allocation7 + $0x20] sm:$0xff]   ;;  %v4637_v37 = vld [vmem:[%s5436_s12 + $0x38] sm:$0xff]   ;;  %v4632_v39 = vld [vmem:[#allocation7 + $0x28] sm:$0xff]  }
  0xb4   : > { %4166 = vmatpush3.bf16.msra.mxu0 %v4618_v13  ;;  %v4639_v38 = vld [vmem:[%s5436_s12 + $0x40] sm:$0xff]   ;;  %v4640_v40 = vld [vmem:[%s5436_s12 + $0x48] sm:$0xff]   ;;  %v4641_v41 = vld [vmem:[%s5436_s12 + $0x50] sm:$0xff]   ;;  %p5072_p7 = pneg %p5071_p5 }
  0xb5   : > { %1244 = vmatpush1.bf16.msra.mxu1 %v4602_v8  ;;  %4167 = vmatprep.subr.bf16.mxu0 %v4620_v16  ;;  %v4635_v42 = vld [vmem:[#allocation7 + $0x30] sm:$0xff]   ;;  %v4642_v43 = vld [vmem:[%s5436_s12 + $0x58] sm:$0xff]   ;;  %v4643_v44 = vld [vmem:[%s5436_s12 + $0x60] sm:$0xff]  }
  0xb6   : > { %1245 = vmatprep.subr.bf16.mxu1 %v4603_v10  ;;  %v4638_v45 = vld [vmem:[#allocation7 + $0x38] sm:$0xff]   ;;  %v4644_v46 = vld [vmem:[%s5436_s12 + $0x68] sm:$0xff]   ;;  %v4645_v47 = vld [vmem:[%s5436_s12 + $0x70] sm:$0xff]  }
  0xb7   : > { %v4646_v48 = vld [vmem:[%s5436_s12 + $0x78] sm:$0xff]   ;;  %v4647_v49 = vld [vmem:[%s5436_s12 + $0x80] sm:$0xff]   ;;  %v4648_v50 = vld [vmem:[%s5436_s12 + $0x88] sm:$0xff]  }
  0xb8   : > { %4168 = vmatpush3.bf16.msra.mxu0 %v4620_v16  ;;  %v4649_v51 = vld [vmem:[%s5436_s12 + $0x90] sm:$0xff]   ;;  %v4650_v52 = vld [vmem:[%s5436_s12 + $0x98] sm:$0xff]   ;;  %v4651_v53 = vld [vmem:[%s5436_s12 + $0xa0] sm:$0xff]  }
  0xb9   : > { %1246 = vmatpush1.bf16.msra.mxu1 %v4605_v12  ;;  %4169 = vmatprep.subr.bf16.mxu0 %v4621_v19  ;;  %v4652_v54 = vld [vmem:[%s5436_s12 + $0xa8] sm:$0xff]   ;;  %v4653_v55 = vld [vmem:[%s5436_s12 + $0xb0] sm:$0xff]   ;;  %v4654_v56 = vld [vmem:[%s5436_s12 + $0xb8] sm:$0xff]  }
  0xba   : > { %1247 = vmatprep.subr.bf16.mxu1 %v4606_v14  ;;  %v4655_v57 = vld [vmem:[%s5436_s12 + $0xc0] sm:$0xff]   ;;  %v4656_v58 = vld [vmem:[%s5436_s12 + $0xc8] sm:$0xff]   ;;  %v4657_v59 = vld [vmem:[%s5436_s12 + $0xd0] sm:$0xff]  }
  0xbb   : > { %v4658_v60 = vld [vmem:[%s5436_s12 + $0xd8] sm:$0xff]   ;;  %v4659_v61 = vld [vmem:[%s5436_s12 + $0xe0] sm:$0xff]   ;;  %v4660_v62 = vld [vmem:[%s5436_s12 + $0xe8] sm:$0xff]  }
  0xbc   : > { %4170 = vmatpush3.bf16.msra.mxu0 %v4621_v19  ;;  %v4661_v63 = vld [vmem:[%s5436_s12 + $0xf0] sm:$0xff]   ;;  %v1097_v4 = vld [vmem:[%s6565_s5] sm:$0x3] }
  0xbd   : > { %1248 = vmatpush1.bf16.msra.mxu1 %v4608_v15  ;;  %4171 = vmatprep.subr.bf16.mxu0 %v4623_v23  ;;  %v5494_v6 = vrot.slane %v1097_v4, %v1101_v3  ;;  %v5496_v7 = vrot.slane %v1097_v4, %v1105_v5 }
  0xbe   : > { %1249 = vmatprep.subr.bf16.mxu1 %v4609_v17 }
  0xc0   : > { %4172 = vmatpush3.bf16.msra.mxu0 %v4623_v23 }
  0xc1   : > { %1250 = vmatpush1.bf16.msra.mxu1 %v4611_v18  ;;  %4173 = vmatprep.subr.bf16.mxu0 %v4624_v25 }
  0xc2   : > { %1251 = vmatprep.subr.bf16.mxu1 %v4612_v21 }
  0xc4   : > { %4174 = vmatpush3.bf16.msra.mxu0 %v4624_v25  ;;  %v5508_v25 = vld [vmem:[%s6562_s2] ss:$0 sm:$0xff] }
  0xc5   : > { %1252 = vmatpush1.bf16.msra.mxu1 %v4614_v22  ;;  %4175 = vmatprep.subr.bf16.mxu0 %v4626_v26 }
  0xc8   : > { %1270 = vmatmul.mubr.bf16.vlgmr.msra.gmra.mrb[0].mxu1 %v4616_v24  ;;  %4176 = vmatpush3.bf16.msra.mxu0 %v4626_v26 }
  0xc9   : > { %1279 = vmatprep.mubr.bf16.mxu1 %v5154_v0 }
  0xcb   : > { %4178 = vmatmul.mubr.bf16.vlgmr.msra.gmra.mrb[0].mxu0 %v4628_v28 }
  0xcc   : > { %4181 = vmatprep.mubr.bf16.mxu0 %v4630_v29 }
  0xd0   : > { %1280 = vmatmul.mubr.bf16.gmra.mrb[4].mxu1 %v4619_v27 }
  0xd1   : > { %1289 = vmatprep.mubr.bf16.mxu1 %v5154_v0 }
  0xd3   : > { %4182 = vmatmul.mubr.bf16.gmra.mrb[4].mxu0 %v4631_v31 }
  0xd4   : > { %4185 = vmatprep.mubr.bf16.mxu0 %v4633_v32 }
  0xd8   : > { %1290 = vmatmul.mubr.bf16.gmra.mrb[8].mxu1 %v4622_v30 }
  0xd9   : > { %1299 = vmatprep.mubr.bf16.mxu1 %v5154_v0 }
  0xdb   : > { %4186 = vmatmul.mubr.bf16.gmra.mrb[8].mxu0 %v4634_v34 }
  0xdc   : > { %4189 = vmatprep.mubr.bf16.mxu0 %v4636_v35 }
  0xe0   : > { %1300 = vmatmul.mubr.bf16.gmra.mrb[12].mxu1 %v4625_v33 }
  0xe1   : > { %1309 = vmatprep.mubr.bf16.mxu1 %v5154_v0 }
  0xe3   : > { %4190 = vmatmul.mubr.bf16.gmra.mrb[12].mxu0 %v4637_v37 }
  0xe4   : > { %4193 = vmatprep.mubr.bf16.mxu0 %v4639_v38 }
  0xe8   : > { %1310 = vmatmul.mubr.bf16.gmra.mrb[16].mxu1 %v4629_v36 }
  0xe9   : > { %1319 = vmatprep.mubr.bf16.mxu1 %v5154_v0 }
  0xeb   : > { %4194 = vmatmul.mubr.bf16.gmra.mrb[16].mxu0 %v4640_v40 }
  0xec   : > { %4197 = vmatprep.mubr.bf16.mxu0 %v4641_v41 }
  0xf0   : > { %1320 = vmatmul.mubr.bf16.gmra.mrb[20].mxu1 %v4632_v39 }
  0xf1   : > { %1329 = vmatprep.mubr.bf16.mxu1 %v5154_v0 }
  0xf3   : > { %4198 = vmatmul.mubr.bf16.gmra.mrb[20].mxu0 %v4642_v43 }
  0xf4   : > { %4201 = vmatprep.mubr.bf16.mxu0 %v4643_v44 }
  0xf8   : > { %1330 = vmatmul.mubr.bf16.gmra.mrb[24].mxu1 %v4635_v42 }
  0xf9   : > { %1339 = vmatprep.mubr.bf16.mxu1 %v5154_v0  ;;  %v4662_v0 = vld [vmem:[%s5436_s12 + $0xf8] sm:$0xff]   ;;  %s5155_s12 = smov [#allocation11]  }
  0xfa   : > { %s5073_s11 = sshll.u32 %s5155_s12, 4  ;;  %s5074_s11 = int_to_ptr.vmem [resolvable:$false] %s5073_s11 }
  0xfb   : > { %4202 = vmatmul.mubr.bf16.gmra.mrb[24].mxu0 %v4644_v46  ;;  %s5075_s13 = scalar_lea.vmem %s5074_s11, 8192  ;;  %p5076_p12 = scmp.lt.s32.totalorder %s6514_s10, %s5074_s11 }
  0xfc   : > { %4205 = vmatprep.mubr.bf16.mxu0 %v4645_v47  ;;  %p5077_p1 = scmp.lt.s32.totalorder %s5075_s13, %s5069_s23 }
  0xfe   : > { %p5078_p2 = por %p5077_p1, %p5076_p12 }
 0x100   : > { %1340 = vmatmul.mubr.bf16.gmra.mrb[28].mxu1 %v4638_v45  ;;  %p5079_p13 = pnand %p5078_p2, %p5072_p7 }
 0x103   : > { %4206 = vmatmul.mubr.bf16.gmra.mrb[28].mxu0 %v4646_v48 }
 0x104   : > { %4209 = vmatprep.mubr.bf16.mxu0 %v4647_v49 }
 0x10b   : > { %4210 = vmatmul.mubr.bf16.gmra.mrb[32].mxu0 %v4648_v50 }
 0x10c   : > { %4213 = vmatprep.mubr.bf16.mxu0 %v4649_v51 }
 0x113   : > { %4214 = vmatmul.mubr.bf16.gmra.mrb[36].mxu0 %v4650_v52 }
 0x114   : > { %4217 = vmatprep.mubr.bf16.mxu0 %v4651_v53 }
 0x11b   : > { %4218 = vmatmul.mubr.bf16.gmra.mrb[40].mxu0 %v4652_v54 }
 0x11c   : > { %4221 = vmatprep.mubr.bf16.mxu0 %v4653_v55 }
 0x123   : > { %4222 = vmatmul.mubr.bf16.gmra.mrb[44].mxu0 %v4654_v56 }
 0x124   : > { %4225 = vmatprep.mubr.bf16.mxu0 %v4655_v57 }
 0x12b   : > { %4226 = vmatmul.mubr.bf16.gmra.mrb[48].mxu0 %v4656_v58 }
 0x12c   : > { %4229 = vmatprep.mubr.bf16.mxu0 %v4657_v59 }
 0x133   : > { %4230 = vmatmul.mubr.bf16.gmra.mrb[52].mxu0 %v4658_v60 }
 0x134   : > { %4233 = vmatprep.mubr.bf16.mxu0 %v4659_v61 }
 0x13b   : > { %4234 = vmatmul.mubr.bf16.gmra.mrb[56].mxu0 %v4660_v62 }
 0x13c   : > { %4237 = vmatprep.mubr.bf16.mxu0 %v4661_v63 }
 0x143   : > { %4238 = vmatmul.mubr.bf16.gmra.mrb[60].mxu0 %v4662_v0 }
 0x19b   : > { %v1271_v8 = vpop.f32.mrb[0].mxu1 }
 0x19c   : > { %v1272_v9 = vadd.f32 %v1271_v8, %v5494_v6  ;;  %v1273_v10 = vpop.f32.mrb[1].mxu1 }
 0x19d   : > { %v1274_v11 = vadd.f32 %v1273_v10, %v5496_v7  ;;  %v1275_v12 = vpop.f32.mrb[2].mxu1 }
 0x19e   : > { %v1276_v13 = vadd.f32 %v1275_v12, %v5494_v6  ;;  %v1277_v14 = vpop.f32.mrb[3].mxu1  ;;  %v1350_v16 = vmax.f32 %v1272_v9, 0.0  ;;  %v4179_v30 = vpop.f32.mrb[0].mxu0 }
 0x19f   : > { %v1278_v15 = vadd.f32 %v1277_v14, %v5496_v7  ;;  %v1351_v18 = vmax.f32 %v1274_v11, 0.0  ;;  %v755_v32 = vadd.f32 %v4179_v30, %v5508_v25  ;;  %v746_v33 = vpop.f32.mrb[1].mxu0 }
 0x1a0   : > { %v1352_v17 = vmax.f32 %v1276_v13, 0.0  ;;  %v747_v36 = vadd.f32 %v5508_v25, %v746_v33  ;;  %v4180_v37 = vpop.f32.mrb[2].mxu0 }
 0x1a1   : > { %v1353_v19 = vmax.f32 %v1278_v15, 0.0  ;;  %v1003_v40 = vmax.f32 %v755_v32, 0.0  ;;  %v758_v41 = vadd.f32 %v4180_v37, %v5508_v25  ;;  %v749_v42 = vpop.f32.mrb[3].mxu0 }
 0x1a2   : > { %v1382_v20 = vpack.c.bf16 %v1352_v17, %v1350_v16  ;;  %v1001_v44 = vmax.f32 %v747_v36, 0.0  ;;  %v750_v45 = vadd.f32 %v5508_v25, %v749_v42 }
 0x1a3   : > { %v5502_v21 = vpack.c.bf16 %v1353_v19, %v1351_v18  ;;  %v1281_v22 = vpop.f32.mrb[4].mxu1  ;;  %v1004_v48 = vmax.f32 %v758_v41, 0.0 }
 0x1a4   : > { %v1282_v23 = vadd.f32 %v1281_v22, %v5494_v6  ;;  %v1283_v24 = vpop.f32.mrb[5].mxu1  ;;  %4241 = vmatprep.subr.bf16.mxu0 %v1382_v20  ;;  %4481 = vmatprep.subr.bf16.mxu1 %v1382_v20  ;;  %v1002_v51 = vmax.f32 %v750_v45, 0.0 }
 0x1a5   : > { %v1284_v26 = vadd.f32 %v1283_v24, %v5496_v7  ;;  %v1285_v27 = vpop.f32.mrb[6].mxu1  ;;  %4242 = vmatpush3.bf16.xpose.msra.mxu0 %v1382_v20  ;;  %4489 = vmatpush3.bf16.xpose.msra.mxu1 %v1382_v20  ;;  %v5521_v54 = vpack.c.bf16 %v1004_v48, %v1003_v40 }
 0x1a6   : > { %v1286_v28 = vadd.f32 %v1285_v27, %v5494_v6  ;;  %v1287_v29 = vpop.f32.mrb[7].mxu1  ;;  %v1354_v34 = vmax.f32 %v1282_v23, 0.0  ;;  %v1398_v57 = vpack.c.bf16 %v1002_v51, %v1001_v44  ;;  %v4183_v58 = vpop.f32.mrb[4].mxu0 }
 0x1a7   : > { %v1288_v31 = vadd.f32 %v1287_v29, %v5496_v7  ;;  %v1355_v38 = vmax.f32 %v1284_v26, 0.0  ;;  %v771_v60 = vadd.f32 %v4183_v58, %v5508_v25  ;;  %v762_v61 = vpop.f32.mrb[5].mxu0 }
 0x1a8   : > { %v1356_v35 = vmax.f32 %v1286_v28, 0.0  ;;  %v763_v0 = vadd.f32 %v5508_v25, %v762_v61  ;;  %v4184_v2 = vpop.f32.mrb[6].mxu0  ;;  %4257 = vmatprep.mubr.bf16.mxu0 %v1398_v57 }
 0x1a9   : > { %v1357_v39 = vmax.f32 %v1288_v31, 0.0  ;;  %v1007_v5 = vmax.f32 %v771_v60, 0.0  ;;  %v774_v8 = vadd.f32 %v4184_v2, %v5508_v25  ;;  %v765_v9 = vpop.f32.mrb[7].mxu0 }
 0x1aa   : > { %v1384_v43 = vpack.c.bf16 %v1356_v35, %v1354_v34  ;;  %v1005_v11 = vmax.f32 %v763_v0, 0.0  ;;  %v766_v12 = vadd.f32 %v5508_v25, %v765_v9 }
 0x1ab   : > { %v5517_v46 = vpack.c.bf16 %v1357_v39, %v1355_v38  ;;  %v1291_v47 = vpop.f32.mrb[8].mxu1  ;;  %v1008_v15 = vmax.f32 %v774_v8, 0.0 }
 0x1ac   : > { %v1292_v49 = vadd.f32 %v1291_v47, %v5494_v6  ;;  %v1293_v50 = vpop.f32.mrb[9].mxu1  ;;  %4243 = vmatprep.subr.bf16.mxu0 %v1384_v43  ;;  %4482 = vmatprep.subr.bf16.mxu1 %v1384_v43  ;;  %v1006_v18 = vmax.f32 %v766_v12, 0.0 }
 0x1ad   : > { %v1294_v52 = vadd.f32 %v1293_v50, %v5496_v7  ;;  %v1295_v53 = vpop.f32.mrb[10].mxu1  ;;  %4244 = vmatpush3.bf16.xpose.msra.mxu0 %v1384_v43  ;;  %4490 = vmatpush3.bf16.xpose.msra.mxu1 %v1384_v43  ;;  %v5533_v22 = vpack.c.bf16 %v1008_v15, %v1007_v5 }
 0x1ae   : > { %v1296_v55 = vadd.f32 %v1295_v53, %v5494_v6  ;;  %v1297_v56 = vpop.f32.mrb[11].mxu1  ;;  %v1358_v62 = vmax.f32 %v1292_v49, 0.0  ;;  %v5536_v26 = vpack.c.bf16 %v1006_v18, %v1005_v11  ;;  %v4187_v27 = vpop.f32.mrb[8].mxu0 }
 0x1af   : > { %v1298_v59 = vadd.f32 %v1297_v56, %v5496_v7  ;;  %v1359_v3 = vmax.f32 %v1294_v52, 0.0  ;;  %v787_v29 = vadd.f32 %v4187_v27, %v5508_v25  ;;  %v778_v30 = vpop.f32.mrb[9].mxu0 }
 0x1b0   : > { %v1360_v63 = vmax.f32 %v1296_v55, 0.0  ;;  %v779_v33 = vadd.f32 %v5508_v25, %v778_v30  ;;  %v4188_v34 = vpop.f32.mrb[10].mxu0 }
 0x1b1   : > { %v1361_v4 = vmax.f32 %v1298_v59, 0.0  ;;  %v1011_v37 = vmax.f32 %v787_v29, 0.0  ;;  %v790_v38 = vadd.f32 %v4188_v34, %v5508_v25  ;;  %v781_v39 = vpop.f32.mrb[11].mxu0 }
 0x1b2   : > { %v1386_v10 = vpack.c.bf16 %v1360_v63, %v1358_v62  ;;  %v1009_v41 = vmax.f32 %v779_v33, 0.0  ;;  %v782_v42 = vadd.f32 %v5508_v25, %v781_v39 }
 0x1b3   : > { %v5529_v13 = vpack.c.bf16 %v1361_v4, %v1359_v3  ;;  %v1301_v14 = vpop.f32.mrb[12].mxu1  ;;  %v1012_v45 = vmax.f32 %v790_v38, 0.0 }
 0x1b4   : > { %v1302_v16 = vadd.f32 %v1301_v14, %v5494_v6  ;;  %v1303_v17 = vpop.f32.mrb[13].mxu1  ;;  %4245 = vmatprep.subr.bf16.mxu0 %v1386_v10  ;;  %4483 = vmatprep.subr.bf16.mxu1 %v1386_v10  ;;  %v1010_v49 = vmax.f32 %v782_v42, 0.0 }
 0x1b5   : > { %v1304_v19 = vadd.f32 %v1303_v17, %v5496_v7  ;;  %v1305_v20 = vpop.f32.mrb[14].mxu1  ;;  %4246 = vmatpush3.bf16.xpose.msra.mxu0 %v1386_v10  ;;  %4491 = vmatpush3.bf16.xpose.msra.mxu1 %v1386_v10  ;;  %v5547_v52 = vpack.c.bf16 %v1012_v45, %v1011_v37 }
 0x1b6   : > { %v1306_v23 = vadd.f32 %v1305_v20, %v5494_v6  ;;  %v1307_v24 = vpop.f32.mrb[15].mxu1  ;;  %v1362_v31 = vmax.f32 %v1302_v16, 0.0  ;;  %v5550_v56 = vpack.c.bf16 %v1010_v49, %v1009_v41  ;;  %v4191_v57 = vpop.f32.mrb[12].mxu0 }
 0x1b7   : > { %v1308_v28 = vadd.f32 %v1307_v24, %v5496_v7  ;;  %v1363_v35 = vmax.f32 %v1304_v19, 0.0  ;;  %v803_v59 = vadd.f32 %v4191_v57, %v5508_v25  ;;  %v794_v60 = vpop.f32.mrb[13].mxu0 }
 0x1b8   : > { %v1364_v32 = vmax.f32 %v1306_v23, 0.0  ;;  %v795_v63 = vadd.f32 %v5508_v25, %v794_v60  ;;  %v4192_v0 = vpop.f32.mrb[14].mxu0 }
 0x1b9   : > { %v1365_v36 = vmax.f32 %v1308_v28, 0.0  ;;  %v1015_v4 = vmax.f32 %v803_v59, 0.0  ;;  %v806_v5 = vadd.f32 %v4192_v0, %v5508_v25  ;;  %v797_v8 = vpop.f32.mrb[15].mxu0 }
 0x1ba   : > { %v1388_v40 = vpack.c.bf16 %v1364_v32, %v1362_v31  ;;  %v1013_v10 = vmax.f32 %v795_v63, 0.0  ;;  %v798_v11 = vadd.f32 %v5508_v25, %v797_v8 }
 0x1bb   : > { %v5543_v43 = vpack.c.bf16 %v1365_v36, %v1363_v35  ;;  %v1311_v44 = vpop.f32.mrb[16].mxu1  ;;  %v1016_v15 = vmax.f32 %v806_v5, 0.0 }
 0x1bc   : > { %v1312_v47 = vadd.f32 %v1311_v44, %v5494_v6  ;;  %v1313_v48 = vpop.f32.mrb[17].mxu1  ;;  %4247 = vmatprep.subr.bf16.mxu0 %v1388_v40  ;;  %4484 = vmatprep.subr.bf16.mxu1 %v1388_v40  ;;  %v1014_v18 = vmax.f32 %v798_v11, 0.0 }
 0x1bd   : > { %v1314_v50 = vadd.f32 %v1313_v48, %v5496_v7  ;;  %v1315_v51 = vpop.f32.mrb[18].mxu1  ;;  %4248 = vmatpush3.bf16.xpose.msra.mxu0 %v1388_v40  ;;  %4492 = vmatpush3.bf16.xpose.msra.mxu1 %v1388_v40  ;;  %v5561_v23 = vpack.c.bf16 %v1016_v15, %v1015_v4 }
 0x1be   : > { %v1316_v53 = vadd.f32 %v1315_v51, %v5494_v6  ;;  %v1317_v55 = vpop.f32.mrb[19].mxu1  ;;  %v1366_v61 = vmax.f32 %v1312_v47, 0.0  ;;  %v5564_v28 = vpack.c.bf16 %v1014_v18, %v1013_v10  ;;  %v4195_v29 = vpop.f32.mrb[16].mxu0 }
 0x1bf   : > { %v1318_v58 = vadd.f32 %v1317_v55, %v5496_v7  ;;  %v1367_v2 = vmax.f32 %v1314_v50, 0.0  ;;  %v819_v31 = vadd.f32 %v4195_v29, %v5508_v25  ;;  %v810_v32 = vpop.f32.mrb[17].mxu0 }
 0x1c0   : > { %v1368_v62 = vmax.f32 %v1316_v53, 0.0  ;;  %v811_v35 = vadd.f32 %v5508_v25, %v810_v32  ;;  %v4196_v36 = vpop.f32.mrb[18].mxu0 }
 0x1c1   : > { %v1369_v3 = vmax.f32 %v1318_v58, 0.0  ;;  %v1019_v39 = vmax.f32 %v819_v31, 0.0  ;;  %v822_v40 = vadd.f32 %v4196_v36, %v5508_v25  ;;  %v813_v41 = vpop.f32.mrb[19].mxu0 }
 0x1c2   : > { %v1390_v9 = vpack.c.bf16 %v1368_v62, %v1366_v61  ;;  %v1017_v44 = vmax.f32 %v811_v35, 0.0  ;;  %v814_v45 = vadd.f32 %v5508_v25, %v813_v41 }
 0x1c3   : > { %v5557_v12 = vpack.c.bf16 %v1369_v3, %v1367_v2  ;;  %v1321_v14 = vpop.f32.mrb[20].mxu1  ;;  %v1020_v49 = vmax.f32 %v822_v40, 0.0 }
 0x1c4   : > { %v1322_v16 = vadd.f32 %v1321_v14, %v5494_v6  ;;  %v1323_v17 = vpop.f32.mrb[21].mxu1  ;;  %4249 = vmatprep.subr.bf16.mxu0 %v1390_v9  ;;  %4485 = vmatprep.subr.bf16.mxu1 %v1390_v9  ;;  %v1018_v53 = vmax.f32 %v814_v45, 0.0 }
 0x1c5   : > { %v1324_v19 = vadd.f32 %v1323_v17, %v5496_v7  ;;  %v1325_v20 = vpop.f32.mrb[22].mxu1  ;;  %4250 = vmatpush3.bf16.xpose.msra.mxu0 %v1390_v9  ;;  %4493 = vmatpush3.bf16.xpose.msra.mxu1 %v1390_v9  ;;  %v5575_v58 = vpack.c.bf16 %v1020_v49, %v1019_v39 }
 0x1c6   : > { %v1326_v24 = vadd.f32 %v1325_v20, %v5494_v6  ;;  %v1327_v27 = vpop.f32.mrb[23].mxu1  ;;  %v1370_v33 = vmax.f32 %v1322_v16, 0.0  ;;  %v1406_v61 = vpack.c.bf16 %v1018_v53, %v1017_v44  ;;  %v4199_v62 = vpop.f32.mrb[20].mxu0 }
 0x1c7   : > { %v1328_v30 = vadd.f32 %v1327_v27, %v5496_v7  ;;  %v1371_v37 = vmax.f32 %v1324_v19, 0.0  ;;  %v835_v0 = vadd.f32 %v4199_v62, %v5508_v25  ;;  %v826_v2 = vpop.f32.mrb[21].mxu0 }
 0x1c8   : > { %v1372_v34 = vmax.f32 %v1326_v24, 0.0  ;;  %4273 = vmatprep.mubr.bf16.mxu1 %v1406_v61  ;;  %v827_v5 = vadd.f32 %v5508_v25, %v826_v2  ;;  %v4200_v8 = vpop.f32.mrb[22].mxu0 }
 0x1c9   : > { %v1373_v38 = vmax.f32 %v1328_v30, 0.0  ;;  %v1023_v11 = vmax.f32 %v835_v0, 0.0  ;;  %v838_v14 = vadd.f32 %v4200_v8, %v5508_v25  ;;  %v829_v15 = vpop.f32.mrb[23].mxu0 }
 0x1ca   : > { %v1392_v42 = vpack.c.bf16 %v1372_v34, %v1370_v33  ;;  %v1021_v17 = vmax.f32 %v827_v5, 0.0  ;;  %v830_v18 = vadd.f32 %v5508_v25, %v829_v15 }
 0x1cb   : > { %v5571_v47 = vpack.c.bf16 %v1373_v38, %v1371_v37  ;;  %v1331_v48 = vpop.f32.mrb[24].mxu1  ;;  %v1024_v24 = vmax.f32 %v838_v14, 0.0 }
 0x1cc   : > { %v1332_v50 = vadd.f32 %v1331_v48, %v5494_v6  ;;  %v1333_v51 = vpop.f32.mrb[25].mxu1  ;;  %4251 = vmatprep.subr.bf16.mxu0 %v1392_v42  ;;  %4486 = vmatprep.subr.bf16.mxu1 %v1392_v42  ;;  %v1022_v30 = vmax.f32 %v830_v18, 0.0 }
 0x1cd   : > { %v1334_v55 = vadd.f32 %v1333_v51, %v5496_v7  ;;  %v1335_v57 = vpop.f32.mrb[26].mxu1  ;;  %4252 = vmatpush3.bf16.xpose.msra.mxu0 %v1392_v42  ;;  %4494 = vmatpush3.bf16.xpose.msra.mxu1 %v1392_v42  ;;  %v5587_v33 = vpack.c.bf16 %v1024_v24, %v1023_v11 }
 0x1ce   : > { %v1336_v59 = vadd.f32 %v1335_v57, %v5494_v6  ;;  %v1337_v60 = vpop.f32.mrb[27].mxu1  ;;  %v1374_v3 = vmax.f32 %v1332_v50, 0.0  ;;  %v1408_v35 = vpack.c.bf16 %v1022_v30, %v1021_v17  ;;  %v4203_v36 = vpop.f32.mrb[24].mxu0 }
 0x1cf   : > { %v1338_v63 = vadd.f32 %v1337_v60, %v5496_v7  ;;  %v1375_v9 = vmax.f32 %v1334_v55, 0.0  ;;  %v851_v38 = vadd.f32 %v4203_v36, %v5508_v25  ;;  %v842_v39 = vpop.f32.mrb[25].mxu0 }
 0x1d0   : > { %v1376_v4 = vmax.f32 %v1336_v59, 0.0  ;;  %v843_v44 = vadd.f32 %v5508_v25, %v842_v39  ;;  %v4204_v45 = vpop.f32.mrb[26].mxu0 }
 0x1d1   : > { %v1377_v10 = vmax.f32 %v1338_v63, 0.0  ;;  %v1027_v49 = vmax.f32 %v851_v38, 0.0  ;;  %v854_v50 = vadd.f32 %v4204_v45, %v5508_v25  ;;  %v845_v51 = vpop.f32.mrb[27].mxu0 }
 0x1d2   : > { %v1394_v16 = vpack.c.bf16 %v1376_v4, %v1374_v3  ;;  %v1025_v55 = vmax.f32 %v843_v44, 0.0  ;;  %v846_v57 = vadd.f32 %v5508_v25, %v845_v51 }
 0x1d3   : > { %v5583_v19 = vpack.c.bf16 %v1377_v10, %v1375_v9  ;;  %v1341_v20 = vpop.f32.mrb[28].mxu1  ;;  %v1028_v59 = vmax.f32 %v854_v50, 0.0 }
 0x1d4   : > { %v1342_v27 = vadd.f32 %v1341_v20, %v5494_v6  ;;  %v1343_v29 = vpop.f32.mrb[29].mxu1  ;;  %4253 = vmatprep.subr.bf16.mxu0 %v1394_v16  ;;  %4487 = vmatprep.subr.bf16.mxu1 %v1394_v16 }
 0x1d5   : > { %v1344_v31 = vadd.f32 %v1343_v29, %v5496_v7  ;;  %v1345_v32 = vpop.f32.mrb[30].mxu1  ;;  %4254 = vmatpush3.bf16.xpose.msra.mxu0 %v1394_v16  ;;  %4495 = vmatpush3.bf16.xpose.msra.mxu1 %v1394_v16  ;;  %v1411_v61 = vpack.c.bf16 %v1028_v59, %v1027_v49 }
 0x1d6   : > { %v1346_v34 = vadd.f32 %v1345_v32, %v5494_v6  ;;  %v1347_v37 = vpop.f32.mrb[31].mxu1  ;;  %v1378_v41 = vmax.f32 %v1342_v27, 0.0  ;;  %v4207_v63 = vpop.f32.mrb[28].mxu0 }
 0x1d7   : > { %v1348_v40 = vadd.f32 %v1347_v37, %v5496_v7  ;;  %v1379_v48 = vmax.f32 %v1344_v31, 0.0  ;;  %v1026_v7 = vmax.f32 %v846_v57, 0.0  ;;  %v867_v0 = vadd.f32 %v4207_v63, %v5508_v25  ;;  %v858_v2 = vpop.f32.mrb[29].mxu0 }
 0x1d8   : > { %v1380_v42 = vmax.f32 %v1346_v34, 0.0  ;;  %v859_v3 = vadd.f32 %v5508_v25, %v858_v2  ;;  %v4208_v4 = vpop.f32.mrb[30].mxu0 }
 0x1d9   : > { %v1381_v53 = vmax.f32 %v1348_v40, 0.0  ;;  %v1410_v62 = vpack.c.bf16 %v1026_v7, %v1025_v55  ;;  %v1031_v5 = vmax.f32 %v867_v0, 0.0  ;;  %v870_v8 = vadd.f32 %v4208_v4, %v5508_v25  ;;  %v861_v9 = vpop.f32.mrb[31].mxu0 }
 0x1da   : > { %v1396_v6 = vpack.c.bf16 %v1380_v42, %v1378_v41  ;;  %v1029_v10 = vmax.f32 %v859_v3, 0.0  ;;  %v862_v11 = vadd.f32 %v5508_v25, %v861_v9 }
 0x1db   : > { %v5595_v60 = vpack.c.bf16 %v1381_v53, %v1379_v48  ;;  %v1032_v14 = vmax.f32 %v870_v8, 0.0 }
 0x1dc   : > { %4255 = vmatprep.subr.bf16.mxu0 %v1396_v6  ;;  %4488 = vmatprep.subr.bf16.mxu1 %v1396_v6  ;;  %v1030_v15 = vmax.f32 %v862_v11, 0.0 }
 0x1dd   : > { %4256 = vmatpush3.bf16.xpose.msra.mxu0 %v1396_v6  ;;  %4496 = vmatpush3.bf16.xpose.msra.mxu1 %v1396_v6  ;;  %v1413_v16 = vpack.c.bf16 %v1032_v14, %v1031_v5 }
 0x1de   : > { %4321 = vmatprep.subr.bf16.mxu0 %v5502_v21  ;;  %v1412_v17 = vpack.c.bf16 %v1030_v15, %v1029_v10  ;;  %v4211_v18 = vpop.f32.mrb[32].mxu0 }
 0x1df   : > { %v883_v20 = vadd.f32 %v4211_v18, %v5508_v25  ;;  %v874_v24 = vpop.f32.mrb[33].mxu0 }
 0x1e0   : > { %v875_v27 = vadd.f32 %v5508_v25, %v874_v24  ;;  %v4212_v29 = vpop.f32.mrb[34].mxu0 }
 0x1e4   : > { %4258 = vmatmul.mubr.bf16.vlgmr.msra.gmra.mrb[64].mxu0 %v5521_v54  ;;  %4274 = vmatmul.mubr.bf16.vlgmr.msra.gmra.mrb[32].mxu1 %v5575_v58  ;;  %v1035_v54 = vmax.f32 %v883_v20, 0.0  ;;  %v886_v58 = vadd.f32 %v4212_v29, %v5508_v25 }
 0x1e5   : > { %4322 = vmatpush3.bf16.msra.mxu0 %v5502_v21  ;;  %4261 = vmatprep.mubr.bf16.mxu0 %v5536_v26  ;;  %v877_v21 = vpop.f32.mrb[35].mxu0  ;;  %v1033_v26 = vmax.f32 %v875_v27, 0.0 }
 0x1e6   : > { %4323 = vmatprep.subr.bf16.mxu0 %v5517_v46  ;;  %4277 = vmatprep.mubr.bf16.mxu1 %v1408_v35  ;;  %v878_v30 = vadd.f32 %v5508_v25, %v877_v21  ;;  %v1036_v31 = vmax.f32 %v886_v58, 0.0  ;;  %v4215_v35 = vpop.f32.mrb[36].mxu0 }
 0x1e7   : > { %v899_v36 = vadd.f32 %v4215_v35, %v5508_v25  ;;  %v890_v37 = vpop.f32.mrb[37].mxu0 }
 0x1e8   : > { %v1034_v32 = vmax.f32 %v878_v30, 0.0  ;;  %v891_v38 = vadd.f32 %v5508_v25, %v890_v37  ;;  %v4216_v39 = vpop.f32.mrb[38].mxu0 }
 0x1e9   : > { %4324 = vmatpush3.bf16.msra.mxu0 %v5517_v46  ;;  %v1415_v46 = vpack.c.bf16 %v1036_v31, %v1035_v54 }
 0x1ea   : > { %4325 = vmatprep.subr.bf16.mxu0 %v5529_v13  ;;  %v1414_v34 = vpack.c.bf16 %v1034_v32, %v1033_v26 }
 0x1ec   : > { %4262 = vmatmul.mubr.bf16.gmra.mrb[68].mxu0 %v5533_v22  ;;  %4278 = vmatmul.mubr.bf16.gmra.mrb[36].mxu1 %v5587_v33  ;;  %v1039_v22 = vmax.f32 %v899_v36, 0.0  ;;  %v902_v33 = vadd.f32 %v4216_v39, %v5508_v25 }
 0x1ed   : > { %4326 = vmatpush3.bf16.msra.mxu0 %v5529_v13  ;;  %4265 = vmatprep.mubr.bf16.mxu0 %v5550_v56  ;;  %v893_v13 = vpop.f32.mrb[39].mxu0  ;;  %v1037_v56 = vmax.f32 %v891_v38, 0.0 }
 0x1ee   : > { %4327 = vmatprep.subr.bf16.mxu0 %v5543_v43  ;;  %4281 = vmatprep.mubr.bf16.mxu1 %v1410_v62  ;;  %v894_v40 = vadd.f32 %v5508_v25, %v893_v13  ;;  %v1040_v41 = vmax.f32 %v902_v33, 0.0  ;;  %v4219_v45 = vpop.f32.mrb[40].mxu0 }
 0x1ef   : > { %v915_v48 = vadd.f32 %v4219_v45, %v5508_v25  ;;  %v906_v49 = vpop.f32.mrb[41].mxu0 }
 0x1f0   : > { %v1038_v42 = vmax.f32 %v894_v40, 0.0  ;;  %v1417_v44 = vpack.c.bf16 %v1040_v41, %v1039_v22  ;;  %v907_v50 = vadd.f32 %v5508_v25, %v906_v49  ;;  %v4220_v51 = vpop.f32.mrb[42].mxu0 }
 0x1f1   : > { %4328 = vmatpush3.bf16.msra.mxu0 %v5543_v43  ;;  %v918_v53 = vadd.f32 %v4220_v51, %v5508_v25 }
 0x1f2   : > { %4329 = vmatprep.subr.bf16.mxu0 %v5557_v12  ;;  %v1416_v43 = vpack.c.bf16 %v1038_v42, %v1037_v56 }
 0x1f3   : > { %v1044_v55 = vmax.f32 %v918_v53, 0.0 }
 0x1f4   : > { %4266 = vmatmul.mubr.bf16.gmra.mrb[72].mxu0 %v5547_v52  ;;  %4282 = vmatmul.mubr.bf16.gmra.mrb[40].mxu1 %v1411_v61  ;;  %v1043_v52 = vmax.f32 %v915_v48, 0.0 }
 0x1f5   : > { %4330 = vmatpush3.bf16.msra.mxu0 %v5557_v12  ;;  %4269 = vmatprep.mubr.bf16.mxu0 %v5564_v28  ;;  %v909_v12 = vpop.f32.mrb[43].mxu0  ;;  %v1041_v28 = vmax.f32 %v907_v50, 0.0 }
 0x1f6   : > { %4331 = vmatprep.subr.bf16.mxu0 %v5571_v47  ;;  %4285 = vmatprep.mubr.bf16.mxu1 %v1412_v17  ;;  %v910_v6 = vadd.f32 %v5508_v25, %v909_v12  ;;  %v1419_v59 = vpack.c.bf16 %v1044_v55, %v1043_v52  ;;  %v4223_v7 = vpop.f32.mrb[44].mxu0 }
 0x1f7   : > { %v931_v61 = vadd.f32 %v4223_v7, %v5508_v25  ;;  %v922_v62 = vpop.f32.mrb[45].mxu0 }
 0x1f8   : > { %v1042_v57 = vmax.f32 %v910_v6, 0.0  ;;  %v923_v63 = vadd.f32 %v5508_v25, %v922_v62  ;;  %v4224_v0 = vpop.f32.mrb[46].mxu0 }
 0x1f9   : > { %4332 = vmatpush3.bf16.msra.mxu0 %v5571_v47  ;;  %v1047_v2 = vmax.f32 %v931_v61, 0.0  ;;  %v925_v3 = vpop.f32.mrb[47].mxu0 }
 0x1fa   : > { %4333 = vmatprep.subr.bf16.mxu0 %v5583_v19  ;;  %v1418_v47 = vpack.c.bf16 %v1042_v57, %v1041_v28  ;;  %v1045_v4 = vmax.f32 %v923_v63, 0.0 }
 0x1fc   : > { %4270 = vmatmul.mubr.bf16.gmra.mrb[76].mxu0 %v5561_v23  ;;  %4286 = vmatmul.mubr.bf16.gmra.mrb[44].mxu1 %v1413_v16  ;;  %v934_v23 = vadd.f32 %v4224_v0, %v5508_v25 }
 0x1fd   : > { %4334 = vmatpush3.bf16.msra.mxu0 %v5583_v19  ;;  %4289 = vmatprep.mubr.bf16.mxu1 %v1414_v34  ;;  %v926_v19 = vadd.f32 %v5508_v25, %v925_v3 }
 0x1fe   : > { %4335 = vmatprep.subr.bf16.mxu0 %v5595_v60  ;;  %v1048_v5 = vmax.f32 %v934_v23, 0.0  ;;  %v4227_v11 = vpop.f32.mrb[48].mxu0 }
 0x1ff   : > { %v1046_v8 = vmax.f32 %v926_v19, 0.0  ;;  %v947_v14 = vadd.f32 %v4227_v11, %v5508_v25  ;;  %v938_v15 = vpop.f32.mrb[49].mxu0 }
 0x200   : > { %v1421_v9 = vpack.c.bf16 %v1048_v5, %v1047_v2  ;;  %v939_v16 = vadd.f32 %v5508_v25, %v938_v15 }
 0x201   : > { %4336 = vmatpush3.bf16.msra.mxu0 %v5595_v60  ;;  %v1420_v10 = vpack.c.bf16 %v1046_v8, %v1045_v4  ;;  %v4228_v60 = vpop.f32.mrb[50].mxu0  ;;  %v1051_v17 = vmax.f32 %v947_v14, 0.0  ;;  %v5659_v4 = vand.u32 127, %v1099_v1 }
 0x202   : > { %v950_v18 = vadd.f32 %v4228_v60, %v5508_v25  ;;  %v941_v20 = vpop.f32.mrb[51].mxu0  ;;  %v1049_v24 = vmax.f32 %v939_v16, 0.0 }
 0x203   : > { %v942_v27 = vadd.f32 %v5508_v25, %v941_v20  ;;  %vm1721_vm0 = vcmp.lt.s32.totalorder %v5659_v4, 19 }
 0x204   : > { %4290 = vmatmul.mubr.bf16.gmra.mrb[48].mxu1 %v1415_v46  ;;  %v1052_v29 = vmax.f32 %v950_v18, 0.0 }
 0x205   : > { %4293 = vmatprep.mubr.bf16.mxu1 %v1416_v43  ;;  %v1050_v54 = vmax.f32 %v942_v27, 0.0 }
 0x206   : > { %v1423_v58 = vpack.c.bf16 %v1052_v29, %v1051_v17  ;;  %v4231_v26 = vpop.f32.mrb[52].mxu0 }
 0x207   : > { %v1422_v21 = vpack.c.bf16 %v1050_v54, %v1049_v24  ;;  %v963_v30 = vadd.f32 %v4231_v26, %v5508_v25  ;;  %v954_v31 = vpop.f32.mrb[53].mxu0 }
 0x208   : > { %v955_v32 = vadd.f32 %v5508_v25, %v954_v31  ;;  %v4232_v46 = vpop.f32.mrb[54].mxu0 }
 0x209   : > { %v1055_v34 = vmax.f32 %v963_v30, 0.0  ;;  %v966_v35 = vadd.f32 %v4232_v46, %v5508_v25  ;;  %v957_v36 = vpop.f32.mrb[55].mxu0 }
 0x20a   : > { %v1053_v37 = vmax.f32 %v955_v32, 0.0  ;;  %v958_v38 = vadd.f32 %v5508_v25, %v957_v36 }
 0x20b   : > { %v1056_v39 = vmax.f32 %v966_v35, 0.0 }
 0x20c   : > { %4294 = vmatmul.mubr.bf16.gmra.mrb[52].mxu1 %v1417_v44  ;;  %v1054_v22 = vmax.f32 %v958_v38, 0.0 }
 0x20d   : > { %4297 = vmatprep.mubr.bf16.mxu1 %v1418_v47  ;;  %v1425_v33 = vpack.c.bf16 %v1056_v39, %v1055_v34 }
 0x20e   : > { %v1424_v13 = vpack.c.bf16 %v1054_v22, %v1053_v37  ;;  %v4235_v56 = vpop.f32.mrb[56].mxu0 }
 0x20f   : > { %v979_v40 = vadd.f32 %v4235_v56, %v5508_v25  ;;  %v970_v41 = vpop.f32.mrb[57].mxu0 }
 0x210   : > { %v971_v42 = vadd.f32 %v5508_v25, %v970_v41  ;;  %v4236_v44 = vpop.f32.mrb[58].mxu0 }
 0x211   : > { %v1059_v43 = vmax.f32 %v979_v40, 0.0  ;;  %v982_v45 = vadd.f32 %v4236_v44, %v5508_v25  ;;  %v973_v48 = vpop.f32.mrb[59].mxu0 }
 0x212   : > { %v1057_v49 = vmax.f32 %v971_v42, 0.0  ;;  %v974_v50 = vadd.f32 %v5508_v25, %v973_v48 }
 0x213   : > { %v1060_v51 = vmax.f32 %v982_v45, 0.0 }
 0x214   : > { %4298 = vmatmul.mubr.bf16.gmra.mrb[56].mxu1 %v1419_v59  ;;  %v1058_v52 = vmax.f32 %v974_v50, 0.0 }
 0x215   : > { %4301 = vmatprep.mubr.bf16.mxu1 %v1420_v10  ;;  %v1427_v53 = vpack.c.bf16 %v1060_v51, %v1059_v43 }
 0x216   : > { %v1426_v12 = vpack.c.bf16 %v1058_v52, %v1057_v49  ;;  %v4239_v28 = vpop.f32.mrb[60].mxu0 }
 0x217   : > { %v995_v6 = vadd.f32 %v4239_v28, %v5508_v25  ;;  %v986_v55 = vpop.f32.mrb[61].mxu0 }
 0x218   : > { %v987_v57 = vadd.f32 %v5508_v25, %v986_v55  ;;  %v4240_v59 = vpop.f32.mrb[62].mxu0 }
 0x219   : > { %v1063_v47 = vmax.f32 %v995_v6, 0.0  ;;  %v998_v7 = vadd.f32 %v4240_v59, %v5508_v25  ;;  %v989_v61 = vpop.f32.mrb[63].mxu0 }
 0x21a   : > { %v1061_v62 = vmax.f32 %v987_v57, 0.0  ;;  %v990_v63 = vadd.f32 %v5508_v25, %v989_v61 }
 0x21b   : > { %v1064_v0 = vmax.f32 %v998_v7, 0.0 }
 0x21c   : > { %4302 = vmatmul.mubr.bf16.gmra.mrb[60].mxu1 %v1421_v9  ;;  %v1062_v2 = vmax.f32 %v990_v63, 0.0 }
 0x21d   : > { %4305 = vmatprep.mubr.bf16.mxu1 %v1422_v21  ;;  %v1429_v23 = vpack.c.bf16 %v1064_v0, %v1063_v47 }
 0x21e   : > { %v1428_v3 = vpack.c.bf16 %v1062_v2, %v1061_v62 }
 0x224   : > { %4306 = vmatmul.mubr.bf16.gmra.mrb[64].mxu1 %v1423_v58 }
 0x225   : > { %4309 = vmatprep.mubr.bf16.mxu1 %v1424_v13 }
 0x22c   : > { %4310 = vmatmul.mubr.bf16.gmra.mrb[68].mxu1 %v1425_v33 }
 0x22d   : > { %4313 = vmatprep.mubr.bf16.mxu1 %v1426_v12 }
 0x234   : > { %4314 = vmatmul.mubr.bf16.gmra.mrb[72].mxu1 %v1427_v53 }
 0x235   : > { %4317 = vmatprep.mubr.bf16.mxu1 %v1428_v3 }
 0x23c   : > { %4318 = vmatmul.mubr.bf16.gmra.mrb[76].mxu1 %v1429_v23 }
 0x2b7   : > { %v4259_v19 = vpop.f32.mrb[64].mxu0  ;;  %v4275_v5 = vpop.f32.mrb[32].mxu1 }
 0x2b8   : > { %v5664_v25 = vsel %vm1721_vm0, %v4275_v5, -1e+30  ;;  %v5668_v8 = vsel %vm1721_vm0, %v4259_v19, -1e+30  ;;  %v1464_v9 = vpop.f32.mrb[65].mxu0  ;;  %v1528_v10 = vpop.f32.mrb[33].mxu1 }
 0x2b9   : > { %1822 = vmax.xlane.f32.xlu0 %v5664_v25  ;;  %1790 = vmax.xlane.f32.xlu1 %v5668_v8  ;;  %v4260_v1 = vpop.f32.mrb[66].mxu0  ;;  %v4276_v11 = vpop.f32.mrb[34].mxu1  ;;  %v5674_v16 = vsel %vm1721_vm0, %v1464_v9, -1e+30  ;;  %v5684_v20 = vsel %vm1721_vm0, %v1528_v10, -1e+30 }
 0x2ba   : > { %v1467_v14 = vpop.f32.mrb[67].mxu0  ;;  %v1531_v15 = vpop.f32.mrb[35].mxu1  ;;  %v5678_v60 = vsel %vm1721_vm0, %v4260_v1, -1e+30  ;;  %v5688_v24 = vsel %vm1721_vm0, %v4276_v11, -1e+30 }
 0x2bb   : > { %v5694_v30 = vsel %vm1721_vm0, %v1531_v15, -1e+30  ;;  %v5698_v31 = vsel %vm1721_vm0, %v1467_v14, -1e+30 }
 0x2bd   : > { %1786 = vmax.xlane.f32.xlu0 %v5674_v16  ;;  %1792 = vmax.xlane.f32.xlu1 %v5678_v60 }
 0x2bf   : > { %v4263_v17 = vpop.f32.mrb[68].mxu0  ;;  %v4279_v18 = vpop.f32.mrb[36].mxu1 }
 0x2c0   : > { %v1480_v27 = vpop.f32.mrb[69].mxu0  ;;  %v1544_v29 = vpop.f32.mrb[37].mxu1  ;;  %v5704_v34 = vsel %vm1721_vm0, %v4263_v17, -1e+30  ;;  %v5714_v13 = vsel %vm1721_vm0, %v4279_v18, -1e+30 }
 0x2c1   : > { %1818 = vmax.xlane.f32.xlu0 %v5684_v20  ;;  %1824 = vmax.xlane.f32.xlu1 %v5688_v24  ;;  %v4264_v54 = vpop.f32.mrb[70].mxu0  ;;  %v4280_v58 = vpop.f32.mrb[38].mxu1  ;;  %v5724_v42 = vsel %vm1721_vm0, %v1480_v27, -1e+30  ;;  %v5734_v52 = vsel %vm1721_vm0, %v1544_v29, -1e+30 }
 0x2c2   : > { %v1483_v21 = vpop.f32.mrb[71].mxu0  ;;  %v1547_v26 = vpop.f32.mrb[39].mxu1  ;;  %v5708_v35 = vsel %vm1721_vm0, %v4264_v54, -1e+30  ;;  %v5718_v56 = vsel %vm1721_vm0, %v4280_v58, -1e+30 }
 0x2c3   : > { %v5728_v44 = vsel %vm1721_vm0, %v1483_v21, -1e+30  ;;  %v5738_v53 = vsel %vm1721_vm0, %v1547_v26, -1e+30 }
 0x2c5   : > { %1820 = vmax.xlane.f32.xlu1 %v5694_v30  ;;  %1788 = vmax.xlane.f32.xlu0 %v5698_v31 }
 0x2c7   : > { %v4267_v32 = vpop.f32.mrb[72].mxu0  ;;  %v4283_v46 = vpop.f32.mrb[40].mxu1 }
 0x2c8   : > { %v1496_v36 = vpop.f32.mrb[73].mxu0  ;;  %v1560_v37 = vpop.f32.mrb[41].mxu1  ;;  %v5744_v28 = vsel %vm1721_vm0, %v4267_v32, -1e+30  ;;  %v5754_v47 = vsel %vm1721_vm0, %v4283_v46, -1e+30 }
 0x2c9   : > { %1798 = vmax.xlane.f32.xlu0 %v5704_v34  ;;  %1800 = vmax.xlane.f32.xlu1 %v5708_v35  ;;  %v4268_v38 = vpop.f32.mrb[74].mxu0  ;;  %v4284_v39 = vpop.f32.mrb[42].mxu1  ;;  %v5764_v62 = vsel %vm1721_vm0, %v1496_v36, -1e+30  ;;  %v5774_v3 = vsel %vm1721_vm0, %v1560_v37, -1e+30 }
 0x2ca   : > { %v1499_v22 = vpop.f32.mrb[75].mxu0  ;;  %v1563_v33 = vpop.f32.mrb[43].mxu1  ;;  %v5748_v6 = vsel %vm1721_vm0, %v4268_v38, -1e+30  ;;  %v5758_v7 = vsel %vm1721_vm0, %v4284_v39, -1e+30 }
 0x2cb   : > { %v5768_v63 = vsel %vm1721_vm0, %v1499_v22, -1e+30  ;;  %v5778_v19 = vsel %vm1721_vm0, %v1563_v33, -1e+30 }
 0x2cd   : > { %1830 = vmax.xlane.f32.xlu0 %v5714_v13  ;;  %1832 = vmax.xlane.f32.xlu1 %v5718_v56 }
 0x2cf   : > { %v4271_v40 = vpop.f32.mrb[76].mxu0  ;;  %v4287_v41 = vpop.f32.mrb[44].mxu1 }
 0x2d0   : > { %v1512_v43 = vpop.f32.mrb[77].mxu0  ;;  %v1576_v45 = vpop.f32.mrb[45].mxu1  ;;  %v5784_v9 = vsel %vm1721_vm0, %v4271_v40, -1e+30  ;;  %v5794_v15 = vsel %vm1721_vm0, %v4287_v41, -1e+30 }
 0x2d1   : > { %1794 = vmax.xlane.f32.xlu0 %v5724_v42  ;;  %1796 = vmax.xlane.f32.xlu1 %v5728_v44  ;;  %v4272_v48 = vpop.f32.mrb[78].mxu0  ;;  %v4288_v49 = vpop.f32.mrb[46].mxu1  ;;  %v5804_v27 = vsel %vm1721_vm0, %v1512_v43, -1e+30  ;;  %v5814_v26 = vsel %vm1721_vm0, %v1576_v45, -1e+30 }
 0x2d2   : > { %v1515_v50 = vpop.f32.mrb[79].mxu0  ;;  %v1579_v51 = vpop.f32.mrb[47].mxu1  ;;  %v5788_v10 = vsel %vm1721_vm0, %v4272_v48, -1e+30  ;;  %v5798_v17 = vsel %vm1721_vm0, %v4288_v49, -1e+30 }
 0x2d3   : > { %v5808_v29 = vsel %vm1721_vm0, %v1515_v50, -1e+30  ;;  %v5818_v32 = vsel %vm1721_vm0, %v1579_v51, -1e+30 }
 0x2d5   : > { %1826 = vmax.xlane.f32.xlu0 %v5734_v52  ;;  %1828 = vmax.xlane.f32.xlu1 %v5738_v53 }
 0x2d7   : > { %v4291_v12 = vpop.f32.mrb[48].mxu1 }
 0x2d8   : > { %v1592_v55 = vpop.f32.mrb[49].mxu1  ;;  %v5824_v46 = vsel %vm1721_vm0, %v4291_v12, -1e+30 }
 0x2d9   : > { %1806 = vmax.xlane.f32.xlu0 %v5744_v28  ;;  %1808 = vmax.xlane.f32.xlu1 %v5748_v6  ;;  %v4292_v57 = vpop.f32.mrb[50].mxu1  ;;  %v5834_v22 = vsel %vm1721_vm0, %v1592_v55, -1e+30 }
 0x2da   : > { %v1595_v59 = vpop.f32.mrb[51].mxu1  ;;  %v5828_v36 = vsel %vm1721_vm0, %v4292_v57, -1e+30 }
 0x2db   : > { %v5838_v33 = vsel %vm1721_vm0, %v1595_v59, -1e+30 }
 0x2dd   : > { %1838 = vmax.xlane.f32.xlu0 %v5754_v47  ;;  %1840 = vmax.xlane.f32.xlu1 %v5758_v7 }
 0x2df   : > { %v4295_v61 = vpop.f32.mrb[52].mxu1 }
 0x2e0   : > { %v1608_v0 = vpop.f32.mrb[53].mxu1  ;;  %v5844_v41 = vsel %vm1721_vm0, %v4295_v61, -1e+30 }
 0x2e1   : > { %1802 = vmax.xlane.f32.xlu0 %v5764_v62  ;;  %1804 = vmax.xlane.f32.xlu1 %v5768_v63  ;;  %v4296_v2 = vpop.f32.mrb[54].mxu1  ;;  %v5854_v50 = vsel %vm1721_vm0, %v1608_v0, -1e+30 }
 0x2e2   : > { %v1611_v23 = vpop.f32.mrb[55].mxu1  ;;  %v5848_v43 = vsel %vm1721_vm0, %v4296_v2, -1e+30 }
 0x2e3   : > { %v5858_v51 = vsel %vm1721_vm0, %v1611_v23, -1e+30 }
 0x2e5   : > { %1834 = vmax.xlane.f32.xlu0 %v5774_v3  ;;  %1836 = vmax.xlane.f32.xlu1 %v5778_v19 }
 0x2e7   : > { %v4299_v5 = vpop.f32.mrb[56].mxu1 }
 0x2e8   : > { %v1624_v1 = vpop.f32.mrb[57].mxu1  ;;  %v5864_v55 = vsel %vm1721_vm0, %v4299_v5, -1e+30 }
 0x2e9   : > { %1814 = vmax.xlane.f32.xlu0 %v5784_v9  ;;  %1816 = vmax.xlane.f32.xlu1 %v5788_v10  ;;  %v4300_v11 = vpop.f32.mrb[58].mxu1  ;;  %6631 = vst [vmem:[#allocation17_spill] sm:$0xff] %v5864_v55  ;;  %v5874_v2 = vsel %vm1721_vm0, %v1624_v1, -1e+30 }
 0x2ea   : > { %v1627_v14 = vpop.f32.mrb[59].mxu1  ;;  %v5868_v57 = vsel %vm1721_vm0, %v4300_v11, -1e+30 }
 0x2eb   : > { %6632 = vst [vmem:[#allocation18_spill] sm:$0xff] %v5868_v57  ;;  %v5878_v23 = vsel %vm1721_vm0, %v1627_v14, -1e+30 }
 0x2ec   : > { %6633 = vst [vmem:[#allocation19_spill] sm:$0xff] %v5878_v23 }
 0x2ed   : > { %1846 = vmax.xlane.f32.xlu0 %v5794_v15  ;;  %1848 = vmax.xlane.f32.xlu1 %v5798_v17 }
 0x2ef   : > { %v4303_v18 = vpop.f32.mrb[60].mxu1 }
 0x2f0   : > { %v1640_v54 = vpop.f32.mrb[61].mxu1  ;;  %v5884_v11 = vsel %vm1721_vm0, %v4303_v18, -1e+30 }
 0x2f1   : > { %1810 = vmax.xlane.f32.xlu0 %v5804_v27  ;;  %1812 = vmax.xlane.f32.xlu1 %v5808_v29  ;;  %v4304_v58 = vpop.f32.mrb[62].mxu1  ;;  %6634 = vst [vmem:[#allocation20_spill] sm:$0xff] %v5884_v11 }
 0x2f2   : > { %v1643_v21 = vpop.f32.mrb[63].mxu1 }
 0x2f3   : > { %v5904_v18 = vsel %vm1721_vm0, %v1643_v21, -1e+30 }
 0x2f5   : > { %1842 = vmax.xlane.f32.xlu0 %v5814_v26  ;;  %1844 = vmax.xlane.f32.xlu1 %v5818_v32 }
 0x2f7   : > { %v4307_v37 = vpop.f32.mrb[64].mxu1 }
 0x2f8   : > { %v1656_v38 = vpop.f32.mrb[65].mxu1 }
 0x2f9   : > { %1854 = vmax.xlane.f32.xlu0 %v5824_v46  ;;  %1856 = vmax.xlane.f32.xlu1 %v5828_v36  ;;  %v4308_v39 = vpop.f32.mrb[66].mxu1 }
 0x2fa   : > { %v1659_v40 = vpop.f32.mrb[67].mxu1 }
 0x2fb   : > { %v5926_v21 = vsel %vm1721_vm0, %v1659_v40, -1e+30 }
 0x2fc   : > { %6638 = vst [vmem:[#allocation24_spill] sm:$0xff] %v5926_v21 }
 0x2fd   : > { %1850 = vmax.xlane.f32.xlu0 %v5834_v22  ;;  %1852 = vmax.xlane.f32.xlu1 %v5838_v33 }
 0x2ff   : > { %v4311_v45 = vpop.f32.mrb[68].mxu1 }
 0x300   : > { %v1672_v48 = vpop.f32.mrb[69].mxu1 }
 0x301   : > { %1862 = vmax.xlane.f32.xlu0 %v5844_v41  ;;  %1864 = vmax.xlane.f32.xlu1 %v5848_v43  ;;  %v4312_v49 = vpop.f32.mrb[70].mxu1 }
 0x302   : > { %v1675_v12 = vpop.f32.mrb[71].mxu1 }
 0x303   : > { %v5946_v40 = vsel %vm1721_vm0, %v1675_v12, -1e+30 }
 0x304   : > { %6642 = vst [vmem:[#allocation28_spill] sm:$0xff] %v5946_v40 }
 0x305   : > { %1858 = vmax.xlane.f32.xlu0 %v5854_v50  ;;  %1860 = vmax.xlane.f32.xlu1 %v5858_v51 }
 0x307   : > { %v4315_v59 = vpop.f32.mrb[72].mxu1 }
 0x308   : > { %v1688_v61 = vpop.f32.mrb[73].mxu1 }
 0x309   : > { %1870 = vmax.xlane.f32.xlu0 %v5864_v55  ;;  %1872 = vmax.xlane.f32.xlu1 %v5868_v57  ;;  %v4316_v0 = vpop.f32.mrb[74].mxu1  ;;  %v5888_v57 = vsel %vm1721_vm0, %v4304_v58, -1e+30 }
 0x30a   : > { %v1691_v5 = vpop.f32.mrb[75].mxu1  ;;  %6635 = vst [vmem:[#allocation21_spill] sm:$0xff] %v5888_v57 }
 0x30b   : > { %v5966_v12 = vsel %vm1721_vm0, %v1691_v5, -1e+30 }
 0x30c   : > { %6646 = vst [vmem:[#allocation32_spill] sm:$0xff] %v5966_v12 }
 0x30d   : > { %1866 = vmax.xlane.f32.xlu0 %v5874_v2  ;;  %1868 = vmax.xlane.f32.xlu1 %v5878_v23  ;;  %v5900_v23 = vsel %vm1721_vm0, %v1640_v54, -1e+30  ;;  %v5922_v54 = vsel %vm1721_vm0, %v1656_v38, -1e+30  ;;  %v5942_v38 = vsel %vm1721_vm0, %v1672_v48, -1e+30 }
 0x30e   : > { %6641 = vst [vmem:[#allocation27_spill] sm:$0xff] %v5942_v38  ;;  %v5962_v48 = vsel %vm1721_vm0, %v1688_v61, -1e+30 }
 0x30f   : > { %v5890_v55 = vpop.f32.mrb[76].mxu1  ;;  %6645 = vst [vmem:[#allocation31_spill] sm:$0xff] %v5962_v48 }
 0x310   : > { %v5892_v1 = vpop.f32.mrb[77].mxu1 }
 0x311   : > { %1878 = vmax.xlane.f32.xlu0 %v5884_v11  ;;  %1880 = vmax.xlane.f32.xlu1 %v5888_v57  ;;  %v5896_v14 = vpop.f32.mrb[78].mxu1  ;;  %v5912_v11 = vsel %vm1721_vm0, %v4307_v37, -1e+30  ;;  %v5916_v57 = vsel %vm1721_vm0, %v4308_v39, -1e+30 }
 0x312   : > { %v5906_v58 = vpop.f32.mrb[79].mxu1  ;;  %6636 = vst [vmem:[#allocation22_spill] sm:$0xff] %v5912_v11  ;;  %6637 = vst [vmem:[#allocation23_spill] sm:$0xff] %v5916_v57  ;;  %v5932_v37 = vsel %vm1721_vm0, %v4311_v45, -1e+30 }
 0x313   : > { %6639 = vst [vmem:[#allocation25_spill] sm:$0xff] %v5932_v37  ;;  %v5936_v39 = vsel %vm1721_vm0, %v4312_v49, -1e+30  ;;  %v5952_v45 = vsel %vm1721_vm0, %v4315_v59, -1e+30 }
 0x314   : > { %6640 = vst [vmem:[#allocation26_spill] sm:$0xff] %v5936_v39  ;;  %6643 = vst [vmem:[#allocation29_spill] sm:$0xff] %v5952_v45  ;;  %v5956_v49 = vsel %vm1721_vm0, %v4316_v0, -1e+30 }
 0x315   : > { %1874 = vmax.xlane.f32.xlu0 %v5900_v23  ;;  %1876 = vmax.xlane.f32.xlu1 %v5904_v18  ;;  %6644 = vst [vmem:[#allocation30_spill] sm:$0xff] %v5956_v49 }
 0x319   : > { %1886 = vmax.xlane.f32.xlu0 %v5912_v11  ;;  %1888 = vmax.xlane.f32.xlu1 %v5916_v57 }
 0x31d   : > { %1882 = vmax.xlane.f32.xlu0 %v5922_v54  ;;  %1884 = vmax.xlane.f32.xlu1 %v5926_v21 }
 0x321   : > { %1894 = vmax.xlane.f32.xlu0 %v5932_v37  ;;  %1896 = vmax.xlane.f32.xlu1 %v5936_v39 }
 0x325   : > { %1890 = vmax.xlane.f32.xlu0 %v5942_v38  ;;  %1892 = vmax.xlane.f32.xlu1 %v5946_v40 }
 0x329   : > { %1902 = vmax.xlane.f32.xlu0 %v5952_v45  ;;  %1904 = vmax.xlane.f32.xlu1 %v5956_v49 }
 0x32d   : > { %1898 = vmax.xlane.f32.xlu0 %v5962_v48  ;;  %1900 = vmax.xlane.f32.xlu1 %v5966_v12 }
 0x346   : > { %v5970_v59 = vpop.xlane.xlu0 %1822  ;;  %v1791_v0 = vpop.xlane.xlu1 %1790 }
 0x347   : > { %v1916_v39 = vsub.f32 %v5668_v8, %v1791_v0 }
 0x349   : > { %v1982_v45 = vmul.f32 1.442695, %v1916_v39 }
 0x34a   : > { %v1787_v37 = vpop.xlane.xlu0 %1786  ;;  %v1793_v49 = vpop.xlane.xlu1 %1792 }
 0x34b   : > { %v1914_v40 = vsub.f32 %v5674_v16, %v1787_v37  ;;  %v1917_v61 = vsub.f32 %v5678_v60, %v1793_v49  ;;  %4671 = vpow2.f32 %v1982_v45 }
 0x34d   : > { %v1978_v38 = vmul.f32 1.442695, %v1914_v40  ;;  %v1984_v5 = vmul.f32 1.442695, %v1917_v61 }
 0x34e   : > { %v1819_v57 = vpop.xlane.xlu0 %1818  ;;  %v5975_v11 = vpop.xlane.xlu1 %1824 }
 0x34f   : > { %4673 = vpow2.f32 %v1978_v38  ;;  %v1930_v12 = vsub.f32 %v5684_v20, %v1819_v57 }
 0x350   : > { %4675 = vpow2.f32 %v1984_v5 }
 0x351   : > { %v2010_v48 = vmul.f32 1.442695, %v1930_v12 }
 0x352   : > { %v1821_v21 = vpop.xlane.xlu1 %1820  ;;  %v1789_v8 = vpop.xlane.xlu0 %1788 }
 0x353   : > { %4677 = vpow2.f32 %v2010_v48  ;;  %v1915_v39 = vsub.f32 %v5698_v31, %v1789_v8  ;;  %v1931_v16 = vsub.f32 %v5694_v30, %v1821_v21 }
 0x355   : > { %v1980_v37 = vmul.f32 1.442695, %v1915_v39  ;;  %v5980_v60 = vpop.eup %4671  ;;  %v2012_v38 = vmul.f32 1.442695, %v1931_v16 }
 0x356   : > { %v1799_v40 = vpop.xlane.xlu0 %1798  ;;  %v1801_v45 = vpop.xlane.xlu1 %1800  ;;  %2110 = vadd.xlane.f32.xlu0 %v5980_v60 }
 0x357   : > { %v1920_v49 = vsub.f32 %v5704_v34, %v1799_v40  ;;  %4679 = vpow2.f32 %v1980_v37  ;;  %v1921_v20 = vsub.f32 %v5708_v35, %v1801_v45 }
 0x359   : > { %v5985_v57 = vpop.eup %4673  ;;  %v1990_v48 = vmul.f32 1.442695, %v1920_v49  ;;  %v1992_v34 = vmul.f32 1.442695, %v1921_v20 }
 0x35a   : > { %v5987_v12 = vpop.eup %4675  ;;  %v5989_v31 = vpop.xlane.xlu0 %1830  ;;  %2106 = vadd.xlane.f32.xlu0 %v5985_v57 }
 0x35b   : > { %v5991_v30 = vpop.xlane.xlu1 %1832  ;;  %4681 = vpow2.f32 %v1990_v48  ;;  %2112 = vadd.xlane.f32.xlu1 %v5987_v12 }
 0x35c   : > { %4683 = vpow2.f32 %v2012_v38 }
 0x35d   : > { %v5995_v21 = vpop.eup %4677  ;;  %4685 = vpow2.f32 %v1992_v34 }
 0x35e   : > { %6647 = vst [vmem:[#allocation33_spill] sm:$0xff] %v5995_v21  ;;  %v1795_v0 = vpop.xlane.xlu0 %1794  ;;  %2138 = vadd.xlane.f32.xlu0 %v5995_v21 }
 0x35f   : > { %v1797_v35 = vpop.xlane.xlu1 %1796  ;;  %v1918_v61 = vsub.f32 %v5724_v42, %v1795_v0 }
 0x360   : > { %v1919_v5 = vsub.f32 %v5728_v44, %v1797_v35 }
 0x361   : > { %v1986_v8 = vmul.f32 1.442695, %v1918_v61  ;;  %v6000_v16 = vpop.eup %4679 }
 0x362   : > { %v1988_v39 = vmul.f32 1.442695, %v1919_v5  ;;  %v6002_v37 = vpop.xlane.xlu0 %1826  ;;  %2108 = vadd.xlane.f32.xlu1 %v6000_v16 }
 0x363   : > { %v6004_v40 = vpop.xlane.xlu1 %1828  ;;  %4687 = vpow2.f32 %v1986_v8 }
 0x364   : > { %4689 = vpow2.f32 %v1988_v39 }
 0x365   : > { %v6007_v45 = vpop.eup %4681 }
 0x366   : > { %6648 = vst [vmem:[#allocation34_spill] sm:$0xff] %v6007_v45  ;;  %v6009_v42 = vpop.eup %4683  ;;  %v1807_v44 = vpop.xlane.xlu0 %1806  ;;  %2118 = vadd.xlane.f32.xlu0 %v6007_v45 }
 0x367   : > { %6649 = vst [vmem:[#allocation35_spill] sm:$0xff] %v6009_v42  ;;  %v1809_v49 = vpop.xlane.xlu1 %1808  ;;  %v1924_v38 = vsub.f32 %v5744_v28, %v1807_v44  ;;  %2140 = vadd.xlane.f32.xlu1 %v6009_v42  ;;  %v6015_v0 = vpop.eup %4685 }
 0x368   : > { %v1925_v20 = vsub.f32 %v5748_v6, %v1809_v49 }
 0x369   : > { %v1998_v48 = vmul.f32 1.442695, %v1924_v38 }
 0x36a   : > { %v2000_v34 = vmul.f32 1.442695, %v1925_v20  ;;  %v6017_v35 = vpop.xlane.xlu0 %1838 }
 0x36b   : > { %v6019_v61 = vpop.xlane.xlu1 %1840  ;;  %4691 = vpow2.f32 %v1998_v48  ;;  %2120 = vadd.xlane.f32.xlu1 %v6015_v0 }
 0x36c   : > { %4693 = vpow2.f32 %v2000_v34 }
 0x36d   : > { %v6022_v5 = vpop.eup %4687 }
 0x36e   : > { %v6024_v8 = vpop.eup %4689  ;;  %v1803_v28 = vpop.xlane.xlu0 %1802  ;;  %2114 = vadd.xlane.f32.xlu0 %v6022_v5 }
 0x36f   : > { %v1805_v6 = vpop.xlane.xlu1 %1804  ;;  %v1922_v39 = vsub.f32 %v5764_v62, %v1803_v28  ;;  %2116 = vadd.xlane.f32.xlu1 %v6024_v8 }
 0x370   : > { %v1923_v44 = vsub.f32 %v5768_v63, %v1805_v6 }
 0x371   : > { %v1994_v49 = vmul.f32 1.442695, %v1922_v39 }
 0x372   : > { %v1996_v38 = vmul.f32 1.442695, %v1923_v44  ;;  %v6030_v20 = vpop.xlane.xlu0 %1834 }
 0x373   : > { %v6032_v48 = vpop.xlane.xlu1 %1836  ;;  %4695 = vpow2.f32 %v1994_v49 }
 0x374   : > { %4697 = vpow2.f32 %v1996_v38 }
 0x375   : > { %v6034_v34 = vpop.eup %4691 }
 0x376   : > { %6650 = vst [vmem:[#allocation36_spill] sm:$0xff] %v6034_v34  ;;  %v6036_v21 = vpop.eup %4693  ;;  %v1815_v42 = vpop.xlane.xlu0 %1814  ;;  %2126 = vadd.xlane.f32.xlu0 %v6034_v34 }
 0x377   : > { %6651 = vst [vmem:[#allocation37_spill] sm:$0xff] %v6036_v21  ;;  %v1817_v62 = vpop.xlane.xlu1 %1816  ;;  %v1928_v63 = vsub.f32 %v5784_v9, %v1815_v42  ;;  %2128 = vadd.xlane.f32.xlu1 %v6036_v21  ;;  %v1933_v21 = vsub.f32 %v5688_v24, %v5975_v11  ;;  %v1934_v24 = vsub.f32 %v5734_v52, %v6002_v37  ;;  %v6097_v37 = vsel %vm1721_vm0, %v5892_v1, -1e+30 }
 0x378   : > { %v1929_v28 = vsub.f32 %v5788_v10, %v1817_v62  ;;  %v1935_v11 = vsub.f32 %v5738_v53, %v6004_v40  ;;  %v1937_v52 = vsub.f32 %v5718_v56, %v5991_v30  ;;  %v1938_v40 = vsub.f32 %v5774_v3, %v6030_v20 }
 0x379   : > { %v2006_v6 = vmul.f32 1.442695, %v1928_v63  ;;  %v1939_v1 = vsub.f32 %v5778_v19, %v6032_v48  ;;  %v1940_v3 = vsub.f32 %v5754_v47, %v6017_v35  ;;  %v1941_v19 = vsub.f32 %v5758_v7, %v6019_v61 }
 0x37a   : > { %v2008_v39 = vmul.f32 1.442695, %v1929_v28  ;;  %v6042_v44 = vpop.xlane.xlu0 %1846  ;;  %v2020_v53 = vmul.f32 1.442695, %v1935_v11  ;;  %v2024_v56 = vmul.f32 1.442695, %v1937_v52 }
 0x37b   : > { %v6044_v49 = vpop.xlane.xlu1 %1848  ;;  %4699 = vpow2.f32 %v2006_v6  ;;  %v2026_v20 = vmul.f32 1.442695, %v1938_v40  ;;  %v2028_v48 = vmul.f32 1.442695, %v1939_v1  ;;  %v6127_v11 = vsel %vm1721_vm0, %v5890_v55, -1e+30 }
 0x37c   : > { %4701 = vpow2.f32 %v2008_v39  ;;  %v1932_v39 = vsub.f32 %v5664_v25, %v5970_v59  ;;  %v6135_v47 = vsel %vm1721_vm0, %v5896_v14, -1e+30  ;;  %v2030_v35 = vmul.f32 1.442695, %v1940_v3 }
 0x37d   : > { %v6046_v38 = vpop.eup %4695  ;;  %v2032_v55 = vmul.f32 1.442695, %v1941_v19  ;;  %v1944_v4 = vsub.f32 %v5794_v15, %v6042_v44  ;;  %v1945_v14 = vsub.f32 %v5798_v17, %v6044_v49 }
 0x37e   : > { %6652 = vst [vmem:[#allocation38_spill] sm:$0xff] %v6046_v38  ;;  %v6048_v45 = vpop.eup %4697  ;;  %2122 = vadd.xlane.f32.xlu0 %v6046_v38  ;;  %v1811_v34 = vpop.xlane.xlu0 %1810 }
 0x37f   : > { %v1813_v9 = vpop.xlane.xlu1 %1812  ;;  %v1926_v10 = vsub.f32 %v5804_v27, %v1811_v34  ;;  %2124 = vadd.xlane.f32.xlu1 %v6048_v45  ;;  %v2040_v44 = vmul.f32 1.442695, %v1945_v14 }
 0x380   : > { %v1927_v42 = vsub.f32 %v5808_v29, %v1813_v9  ;;  %v2014_v9 = vmul.f32 1.442695, %v1932_v39  ;;  %v2018_v39 = vmul.f32 1.442695, %v1934_v24 }
 0x381   : > { %v2002_v62 = vmul.f32 1.442695, %v1926_v10  ;;  %v2016_v10 = vmul.f32 1.442695, %v1933_v21  ;;  %v1936_v21 = vsub.f32 %v5714_v13, %v5989_v31  ;;  %v6103_v13 = vsel %vm1721_vm0, %v5906_v58, -1e+30 }
 0x382   : > { %v2004_v63 = vmul.f32 1.442695, %v1927_v42  ;;  %v6054_v28 = vpop.xlane.xlu0 %1842 }
 0x383   : > { %v6056_v6 = vpop.xlane.xlu1 %1844  ;;  %4703 = vpow2.f32 %v2002_v62  ;;  %v2022_v31 = vmul.f32 1.442695, %v1936_v21  ;;  %v1942_v7 = vsub.f32 %v5814_v26, %v6054_v28 }
 0x384   : > { %4705 = vpow2.f32 %v2004_v63 }
 0x385   : > { %v6062_v38 = vpop.eup %4699  ;;  %4707 = vpow2.f32 %v2014_v9  ;;  %v2034_v26 = vmul.f32 1.442695, %v1942_v7 }
 0x386   : > { %v6064_v27 = vpop.eup %4701  ;;  %2134 = vadd.xlane.f32.xlu0 %v6062_v38  ;;  %v6067_v29 = vpop.xlane.xlu0 %1854  ;;  %4709 = vpow2.f32 %v2016_v10 }
 0x387   : > { %v6069_v34 = vpop.xlane.xlu1 %1856  ;;  %2136 = vadd.xlane.f32.xlu1 %v6064_v27  ;;  %4711 = vpow2.f32 %v2018_v39  ;;  %v1943_v39 = vsub.f32 %v5818_v32, %v6056_v6 }
 0x388   : > { %4713 = vpow2.f32 %v2020_v53 }
 0x389   : > { %4715 = vpow2.f32 %v2022_v31  ;;  %v2036_v28 = vmul.f32 1.442695, %v1943_v39 }
 0x38a   : > { %v6072_v25 = vpop.xlane.xlu0 %1850  ;;  %4717 = vpow2.f32 %v2024_v56  ;;  %v2038_v56 = vmul.f32 1.442695, %v1944_v4 }
 0x38b   : > { %v6074_v59 = vpop.xlane.xlu1 %1852  ;;  %4719 = vpow2.f32 %v2026_v20  ;;  %v1946_v15 = vsub.f32 %v5834_v22, %v6072_v25  ;;  %v1948_v20 = vsub.f32 %v5824_v46, %v6067_v29 }
 0x38c   : > { %4721 = vpow2.f32 %v2028_v48  ;;  %v1947_v17 = vsub.f32 %v5838_v33, %v6074_v59  ;;  %v1949_v33 = vsub.f32 %v5828_v36, %v6069_v34 }
 0x38d   : > { %v6080_v42 = vpop.eup %4703  ;;  %4723 = vpow2.f32 %v2030_v35  ;;  %v2042_v22 = vmul.f32 1.442695, %v1946_v15  ;;  %v2046_v35 = vmul.f32 1.442695, %v1948_v20 }
 0x38e   : > { %v6082_v62 = vpop.eup %4705  ;;  %2130 = vadd.xlane.f32.xlu0 %v6080_v42  ;;  %v6085_v63 = vpop.xlane.xlu0 %1862  ;;  %4725 = vpow2.f32 %v2032_v55  ;;  %v2044_v59 = vmul.f32 1.442695, %v1947_v17  ;;  %v2048_v29 = vmul.f32 1.442695, %v1949_v33  ;;  %v6654_v17 = vld [vmem:[#allocation17_spill] sm:$0xff] }
 0x38f   : > { %2132 = vadd.xlane.f32.xlu1 %v6082_v62  ;;  %v6090_v9 = vpop.xlane.xlu1 %1864  ;;  %v6112_v10 = vpop.eup %4707  ;;  %4727 = vpow2.f32 %v2034_v26  ;;  %v1952_v4 = vsub.f32 %v5844_v41, %v6085_v63 }
 0x390   : > { %v6116_v58 = vpop.eup %4709  ;;  %4729 = vpow2.f32 %v2036_v28 }
 0x391   : > { %v6144_v52 = vpop.eup %4711  ;;  %4731 = vpow2.f32 %v2038_v56  ;;  %v2054_v28 = vmul.f32 1.442695, %v1952_v4 }
 0x392   : > { %1906 = vmax.xlane.f32.xlu0 %v6097_v37  ;;  %v6110_v30 = vpop.xlane.xlu0 %1858  ;;  %v6146_v53 = vpop.eup %4713  ;;  %4733 = vpow2.f32 %v2040_v44 }
 0x393   : > { %1908 = vmax.xlane.f32.xlu1 %v6103_v13  ;;  %v6114_v24 = vpop.xlane.xlu1 %1860  ;;  %v6156_v32 = vpop.eup %4715  ;;  %4735 = vpow2.f32 %v2042_v22  ;;  %v1950_v46 = vsub.f32 %v5854_v50, %v6110_v30  ;;  %v1953_v30 = vsub.f32 %v5848_v43, %v6090_v9  ;;  %v6653_v43 = vld [vmem:[#allocation19_spill] sm:$0xff] }
 0x394   : > { %v6160_v40 = vpop.eup %4717  ;;  %4737 = vpow2.f32 %v2044_v59  ;;  %v1951_v7 = vsub.f32 %v5858_v51, %v6114_v24 }
 0x395   : > { %v6168_v49 = vpop.eup %4719  ;;  %4739 = vpow2.f32 %v2046_v35  ;;  %v2050_v50 = vmul.f32 1.442695, %v1950_v46  ;;  %v2056_v56 = vmul.f32 1.442695, %v1953_v30 }
 0x396   : > { %2142 = vadd.xlane.f32.xlu0 %v6112_v10  ;;  %v6129_v21 = vpop.xlane.xlu0 %1870  ;;  %v6170_v1 = vpop.eup %4721  ;;  %4741 = vpow2.f32 %v2048_v29  ;;  %v2052_v51 = vmul.f32 1.442695, %v1951_v7 }
 0x397   : > { %2144 = vadd.xlane.f32.xlu1 %v6116_v58  ;;  %v6139_v61 = vpop.xlane.xlu1 %1872  ;;  %v6182_v19 = vpop.eup %4723  ;;  %4743 = vpow2.f32 %v2050_v50  ;;  %v1956_v20 = vsub.f32 %v6654_v17, %v6129_v21 }
 0x398   : > { %v6184_v48 = vpop.eup %4725  ;;  %4745 = vpow2.f32 %v2052_v51  ;;  %v6656_v51 = vld [vmem:[#allocation20_spill] sm:$0xff] }
 0x399   : > { %v6192_v34 = vpop.eup %4727  ;;  %4747 = vpow2.f32 %v2054_v28  ;;  %v2062_v29 = vmul.f32 1.442695, %v1956_v20  ;;  %v6658_v20 = vld [vmem:[#allocation24_spill] sm:$0xff] }
 0x39a   : > { %1910 = vmax.xlane.f32.xlu0 %v6127_v11  ;;  %v6154_v31 = vpop.xlane.xlu0 %1866  ;;  %v6194_v39 = vpop.eup %4729  ;;  %4749 = vpow2.f32 %v2056_v56 }
 0x39b   : > { %1912 = vmax.xlane.f32.xlu1 %v6135_v47  ;;  %v6158_v6 = vpop.xlane.xlu1 %1868  ;;  %v6202_v24 = vpop.eup %4731  ;;  %v1954_v41 = vsub.f32 %v5874_v2, %v6154_v31  ;;  %v6655_v31 = vld [vmem:[#allocation18_spill] sm:$0xff] }
 0x39c   : > { %v6204_v26 = vpop.eup %4733  ;;  %v1955_v9 = vsub.f32 %v6653_v43, %v6158_v6  ;;  %v1957_v22 = vsub.f32 %v6655_v31, %v6139_v61 }
 0x39d   : > { %v6216_v15 = vpop.eup %4735  ;;  %v2058_v2 = vmul.f32 1.442695, %v1954_v41 }
 0x39e   : > { %2146 = vadd.xlane.f32.xlu0 %v6144_v52  ;;  %v6172_v3 = vpop.xlane.xlu0 %1878  ;;  %v6218_v44 = vpop.eup %4737  ;;  %v2060_v33 = vmul.f32 1.442695, %v1955_v9  ;;  %v2064_v7 = vmul.f32 1.442695, %v1957_v22 }
 0x39f   : > { %2148 = vadd.xlane.f32.xlu1 %v6146_v53  ;;  %v6177_v25 = vpop.xlane.xlu1 %1880  ;;  %v6226_v6 = vpop.eup %4739  ;;  %4751 = vpow2.f32 %v2058_v2  ;;  %v1960_v28 = vsub.f32 %v6656_v51, %v6172_v3 }
 0x3a0   : > { %v6228_v46 = vpop.eup %4741  ;;  %4753 = vpow2.f32 %v2060_v33 }
 0x3a1   : > { %v6234_v61 = vpop.eup %4743  ;;  %4755 = vpow2.f32 %v2062_v29  ;;  %v2070_v9 = vmul.f32 1.442695, %v1960_v28  ;;  %v6659_v29 = vld [vmem:[#allocation22_spill] sm:$0xff] }
 0x3a2   : > { %2150 = vadd.xlane.f32.xlu0 %v6156_v32  ;;  %v1875_v36 = vpop.xlane.xlu0 %1874  ;;  %v6236_v50 = vpop.eup %4745  ;;  %4757 = vpow2.f32 %v2064_v7 }
 0x3a3   : > { %2152 = vadd.xlane.f32.xlu1 %v6160_v40  ;;  %v1877_v55 = vpop.xlane.xlu1 %1876  ;;  %v1958_v21 = vsub.f32 %v5900_v23, %v1875_v36  ;;  %v6657_v23 = vld [vmem:[#allocation21_spill] sm:$0xff] }
 0x3a4   : > { %v1959_v4 = vsub.f32 %v5904_v18, %v1877_v55  ;;  %v1961_v36 = vsub.f32 %v6657_v23, %v6177_v25  ;;  %v6244_v55 = vpop.eup %4747  ;;  %v6661_v23 = vld [vmem:[#allocation27_spill] sm:$0xff] }
 0x3a5   : > { %v2066_v41 = vmul.f32 1.442695, %v1958_v21  ;;  %v6246_v43 = vpop.eup %4749 }
 0x3a6   : > { %2154 = vadd.xlane.f32.xlu0 %v6168_v49  ;;  %v6206_v14 = vpop.xlane.xlu0 %1886  ;;  %v2068_v18 = vmul.f32 1.442695, %v1959_v4  ;;  %v2072_v3 = vmul.f32 1.442695, %v1961_v36 }
 0x3a7   : > { %2156 = vadd.xlane.f32.xlu1 %v6170_v1  ;;  %v6211_v63 = vpop.xlane.xlu1 %1888  ;;  %4759 = vpow2.f32 %v2066_v41  ;;  %v1964_v21 = vsub.f32 %v6659_v29, %v6206_v14 }
 0x3a8   : > { %4761 = vpow2.f32 %v2068_v18 }
 0x3a9   : > { %v6252_v22 = vpop.eup %4751  ;;  %4763 = vpow2.f32 %v2070_v9  ;;  %v2078_v41 = vmul.f32 1.442695, %v1964_v21  ;;  %v6662_v9 = vld [vmem:[#allocation28_spill] sm:$0xff] }
 0x3aa   : > { %2158 = vadd.xlane.f32.xlu0 %v6182_v19  ;;  %v1883_v59 = vpop.xlane.xlu0 %1882  ;;  %v6254_v33 = vpop.eup %4753  ;;  %4765 = vpow2.f32 %v2072_v3 }
 0x3ab   : > { %2160 = vadd.xlane.f32.xlu1 %v6184_v48  ;;  %v1885_v35 = vpop.xlane.xlu1 %1884  ;;  %v1962_v17 = vsub.f32 %v5922_v54, %v1883_v59  ;;  %v6660_v54 = vld [vmem:[#allocation23_spill] sm:$0xff]  ;;  %v6262_v4 = vpop.eup %4755 }
 0x3ac   : > { %v1963_v2 = vsub.f32 %v6658_v20, %v1885_v35  ;;  %v1965_v59 = vsub.f32 %v6660_v54, %v6211_v63  ;;  %v6264_v51 = vpop.eup %4757  ;;  %v6663_v20 = vld [vmem:[#allocation25_spill] sm:$0xff] }
 0x3ad   : > { %v2074_v7 = vmul.f32 1.442695, %v1962_v17 }
 0x3ae   : > { %2162 = vadd.xlane.f32.xlu0 %v6192_v34  ;;  %v1895_v30 = vpop.xlane.xlu0 %1894  ;;  %v2076_v35 = vmul.f32 1.442695, %v1963_v2  ;;  %v2080_v18 = vmul.f32 1.442695, %v1965_v59 }
 0x3af   : > { %2164 = vadd.xlane.f32.xlu1 %v6194_v39  ;;  %v1897_v56 = vpop.xlane.xlu1 %1896  ;;  %4767 = vpow2.f32 %v2074_v7  ;;  %v1968_v2 = vsub.f32 %v6663_v20, %v1895_v30  ;;  %v6670_v20 = vld [vmem:[#allocation29_spill] sm:$0xff] }
 0x3b0   : > { %4769 = vpow2.f32 %v2076_v35 }
 0x3b1   : > { %v6270_v63 = vpop.eup %4759  ;;  %4771 = vpow2.f32 %v2078_v41  ;;  %v6666_v41 = vld [vmem:[#allocation31_spill] sm:$0xff] }
 0x3b2   : > { %2166 = vadd.xlane.f32.xlu0 %v6202_v24  ;;  %v1891_v31 = vpop.xlane.xlu0 %1890  ;;  %v6272_v3 = vpop.eup %4761  ;;  %4773 = vpow2.f32 %v2080_v18 }
 0x3b3   : > { %2168 = vadd.xlane.f32.xlu1 %v6204_v26  ;;  %v1893_v25 = vpop.xlane.xlu1 %1892  ;;  %v1966_v36 = vsub.f32 %v6661_v23, %v1891_v31  ;;  %v6664_v31 = vld [vmem:[#allocation26_spill] sm:$0xff]  ;;  %v6278_v59 = vpop.eup %4763  ;;  %v2086_v23 = vmul.f32 1.442695, %v1968_v2 }
 0x3b4   : > { %v1967_v17 = vsub.f32 %v6662_v9, %v1893_v25  ;;  %v1969_v21 = vsub.f32 %v6664_v31, %v1897_v56  ;;  %6665 = vst [vmem:[#allocation19_spill] sm:$0xff] %v6278_v59  ;;  %v6280_v35 = vpop.eup %4765  ;;  %v6671_v2 = vld [vmem:[#allocation30_spill] sm:$0xff] }
 0x3b5   : > { %v2082_v29 = vmul.f32 1.442695, %v1966_v36  ;;  %v6667_v36 = vld [vmem:[#allocation32_spill] sm:$0xff] }
 0x3b6   : > { %2170 = vadd.xlane.f32.xlu0 %v6216_v15  ;;  %v1903_v28 = vpop.xlane.xlu0 %1902  ;;  %v2084_v7 = vmul.f32 1.442695, %v1967_v17  ;;  %v2088_v30 = vmul.f32 1.442695, %v1969_v21 }
 0x3b7   : > { %2172 = vadd.xlane.f32.xlu1 %v6218_v44  ;;  %v1905_v14 = vpop.xlane.xlu1 %1904  ;;  %4775 = vpow2.f32 %v2082_v29  ;;  %v1972_v31 = vsub.f32 %v6670_v20, %v1903_v28 }
 0x3b8   : > { %4777 = vpow2.f32 %v2084_v7  ;;  %v1973_v29 = vsub.f32 %v6671_v2, %v1905_v14 }
 0x3b9   : > { %v6286_v56 = vpop.eup %4767  ;;  %4779 = vpow2.f32 %v2086_v23 }
 0x3ba   : > { %2174 = vadd.xlane.f32.xlu0 %v6226_v6  ;;  %v1899_v54 = vpop.xlane.xlu0 %1898  ;;  %6668 = vst [vmem:[#allocation17_spill] sm:$0xff] %v6286_v56  ;;  %v6288_v17 = vpop.eup %4769  ;;  %4781 = vpow2.f32 %v2088_v30  ;;  %v2096_v23 = vmul.f32 1.442695, %v1973_v29 }
 0x3bb   : > { %2176 = vadd.xlane.f32.xlu1 %v6228_v46  ;;  %v1901_v25 = vpop.xlane.xlu1 %1900  ;;  %v1970_v9 = vsub.f32 %v6666_v41, %v1899_v54  ;;  %6669 = vst [vmem:[#allocation18_spill] sm:$0xff] %v6288_v17  ;;  %v6294_v21 = vpop.eup %4771 }
 0x3bc   : > { %v1971_v18 = vsub.f32 %v6667_v36, %v1901_v25  ;;  %6672 = vst [vmem:[#allocation20_spill] sm:$0xff] %v6294_v21  ;;  %v6296_v7 = vpop.eup %4773  ;;  %v2094_v25 = vmul.f32 1.442695, %v1972_v31 }
 0x3bd   : > { %6673 = vst [vmem:[#allocation21_spill] sm:$0xff] %v6296_v7 }
 0x3be   : > { %2178 = vadd.xlane.f32.xlu0 %v6234_v61  ;;  %v2092_v54 = vmul.f32 1.442695, %v1971_v18 }
 0x3bf   : > { %2180 = vadd.xlane.f32.xlu1 %v6236_v50 }
 0x3c1   : > { %v6300_v28 = vpop.eup %4775 }
 0x3c2   : > { %2182 = vadd.xlane.f32.xlu0 %v6244_v55  ;;  %6674 = vst [vmem:[#allocation24_spill] sm:$0xff] %v6300_v28  ;;  %v6302_v41 = vpop.eup %4777 }
 0x3c3   : > { %2184 = vadd.xlane.f32.xlu1 %v6246_v43  ;;  %6675 = vst [vmem:[#allocation22_spill] sm:$0xff] %v6302_v41  ;;  %v6306_v14 = vpop.eup %4779 }
 0x3c4   : > { %6676 = vst [vmem:[#allocation23_spill] sm:$0xff] %v6306_v14 }
 0x3c6   : > { %2186 = vadd.xlane.f32.xlu0 %v6252_v22 }
 0x3c7   : > { %2188 = vadd.xlane.f32.xlu1 %v6254_v33 }
 0x3ca   : > { %2190 = vadd.xlane.f32.xlu0 %v6262_v4 }
 0x3cb   : > { %2192 = vadd.xlane.f32.xlu1 %v6264_v51 }
 0x3ce   : > { %2194 = vadd.xlane.f32.xlu0 %v6270_v63 }
 0x3cf   : > { %2196 = vadd.xlane.f32.xlu1 %v6272_v3 }
 0x3d2   : > { %2198 = vadd.xlane.f32.xlu0 %v6278_v59  ;;  %v2090_v59 = vmul.f32 1.442695, %v1970_v9  ;;  %v6308_v9 = vpop.eup %4781 }
 0x3d3   : > { %2200 = vadd.xlane.f32.xlu1 %v6280_v35  ;;  %6677 = vst [vmem:[#allocation27_spill] sm:$0xff] %v6308_v9 }
 0x3d4   : > { %4783 = vpow2.f32 %v2090_v59 }
 0x3d5   : > { %4785 = vpow2.f32 %v2092_v54 }
 0x3d6   : > { %2202 = vadd.xlane.f32.xlu0 %v6286_v56  ;;  %4787 = vpow2.f32 %v2094_v25 }
 0x3d7   : > { %2204 = vadd.xlane.f32.xlu1 %v6288_v17  ;;  %4789 = vpow2.f32 %v2096_v23 }
 0x3da   : > { %2206 = vadd.xlane.f32.xlu0 %v6294_v21 }
 0x3db   : > { %2208 = vadd.xlane.f32.xlu1 %v6296_v7 }
 0x3de   : > { %2210 = vadd.xlane.f32.xlu0 %v6300_v28  ;;  %v6312_v59 = vpop.eup %4783 }
 0x3df   : > { %2212 = vadd.xlane.f32.xlu1 %v6302_v41  ;;  %6678 = vst [vmem:[#allocation28_spill] sm:$0xff] %v6312_v59  ;;  %v6314_v30 = vpop.eup %4785 }
 0x3e0   : > { %6679 = vst [vmem:[#allocation25_spill] sm:$0xff] %v6314_v30  ;;  %v6318_v18 = vpop.eup %4787 }
 0x3e1   : > { %6680 = vst [vmem:[#allocation26_spill] sm:$0xff] %v6318_v18  ;;  %v6320_v20 = vpop.eup %4789 }
 0x3e2   : > { %2214 = vadd.xlane.f32.xlu0 %v6306_v14  ;;  %6681 = vst [vmem:[#allocation31_spill] sm:$0xff] %v6320_v20 }
 0x3e3   : > { %2216 = vadd.xlane.f32.xlu1 %v6308_v9  ;;  %v2111_v36 = vpop.xlane.xlu0 %2110 }
 0x3e6   : > { %2218 = vadd.xlane.f32.xlu0 %v6312_v59 }
 0x3e7   : > { %2220 = vadd.xlane.f32.xlu1 %v6314_v30  ;;  %v2107_v2 = vpop.xlane.xlu0 %2106 }
 0x3e8   : > { %v2113_v31 = vpop.xlane.xlu1 %2112 }
 0x3e9   : > { %4791 = vrcp.f32 %v2113_v31 }
 0x3ea   : > { %2222 = vadd.xlane.f32.xlu0 %v6318_v18  ;;  %4793 = vrcp.f32 %v2107_v2 }
 0x3eb   : > { %2224 = vadd.xlane.f32.xlu1 %v6320_v20  ;;  %4795 = vrcp.f32 %v2111_v36  ;;  %v2139_v54 = vpop.xlane.xlu0 %2138 }
 0x3ef   : > { %v2109_v29 = vpop.xlane.xlu1 %2108 }
 0x3f0   : > { %4797 = vrcp.f32 %v2109_v29 }
 0x3f3   : > { %v2119_v23 = vpop.xlane.xlu0 %2118  ;;  %v4792_v59 = vpop.eup %4791 }
 0x3f4   : > { %v2141_v25 = vpop.xlane.xlu1 %2140  ;;  %v4794_v9 = vpop.eup %4793  ;;  %v2301_v18 = vmul.f32 %v4792_v59, %v5987_v12 }
 0x3f5   : > { %v4796_v14 = vpop.eup %4795  ;;  %v2298_v31 = vmul.f32 %v4794_v9, %v5985_v57 }
 0x3f6   : > { %v2300_v2 = vmul.f32 %v4796_v14, %v5980_v60  ;;  %v6682_v60 = vld [vmem:[#allocation34_spill] sm:$0xff] }
 0x3f8   : > { %v2121_v30 = vpop.xlane.xlu1 %2120  ;;  %v2363_v7 = vpack.c.bf16 %v2301_v18, %v2300_v2 }
 0x3f9   : > { %4799 = vrcp.f32 %v2121_v30 }
 0x3fa   : > { %v4798_v41 = vpop.eup %4797  ;;  %4801 = vrcp.f32 %v2119_v23 }
 0x3fb   : > { %v2115_v28 = vpop.xlane.xlu0 %2114  ;;  %v2299_v36 = vmul.f32 %v4798_v41, %v6000_v16  ;;  %v4663_v16 = vld [vmem:[#allocation10] sm:$0xff]  }
 0x3fc   : > { %4803 = vrcp.f32 %v2115_v28  ;;  %v2117_v20 = vpop.xlane.xlu1 %2116  ;;  %4401 = vmatprep.subr.bf16.mxu1 %v4663_v16 }
 0x3fd   : > { %4805 = vrcp.f32 %v2117_v20  ;;  %v2362_v29 = vpack.c.bf16 %v2299_v36, %v2298_v31  ;;  %4402 = vmatpush3.bf16.msra.mxu1 %v4663_v16  ;;  %v6684_v36 = vld [vmem:[#allocation36_spill] sm:$0xff] }
 0x3ff   : > { %4337 = vmatprep.mubr.bf16.mxu0 %v2362_v29  ;;  %v6685_v29 = vld [vmem:[#allocation37_spill] sm:$0xff] }
 0x400   : > { %4338 = vmatmul.mubr.bf16.vlgmr.msra.gmra.mrb[80].mxu0 %v2363_v7 }
 0x403   : > { %v4800_v21 = vpop.eup %4799  ;;  %v2127_v56 = vpop.xlane.xlu0 %2126 }
 0x404   : > { %v4802_v30 = vpop.eup %4801  ;;  %v2129_v59 = vpop.xlane.xlu1 %2128  ;;  %v2305_v23 = vmul.f32 %v4800_v21, %v6015_v0  ;;  %4807 = vrcp.f32 %v2127_v56  ;;  %v6683_v56 = vld [vmem:[#allocation38_spill] sm:$0xff] }
 0x405   : > { %v2304_v41 = vmul.f32 %v4802_v30, %v6682_v60  ;;  %4809 = vrcp.f32 %v2129_v59 }
 0x406   : > { %v4804_v17 = vpop.eup %4803 }
 0x407   : > { %v4806_v12 = vpop.eup %4805  ;;  %v2302_v28 = vmul.f32 %v4804_v17, %v6022_v5  ;;  %v2365_v9 = vpack.c.bf16 %v2305_v23, %v2304_v41 }
 0x408   : > { %v2303_v57 = vmul.f32 %v4806_v12, %v6024_v8 }
 0x40a   : > { %v2364_v14 = vpack.c.bf16 %v2303_v57, %v2302_v28 }
 0x40b   : > { %v2123_v7 = vpop.xlane.xlu0 %2122 }
 0x40c   : > { %4811 = vrcp.f32 %v2123_v7  ;;  %4341 = vmatprep.mubr.bf16.mxu0 %v2364_v14  ;;  %v2125_v18 = vpop.xlane.xlu1 %2124 }
 0x40d   : > { %4813 = vrcp.f32 %v2125_v18  ;;  %4342 = vmatmul.mubr.bf16.gmra.mrb[84].mxu0 %v2365_v9 }
 0x40e   : > { %v4808_v5 = vpop.eup %4807  ;;  %4815 = vrcp.f32 %v2139_v54 }
 0x40f   : > { %v4810_v17 = vpop.eup %4809  ;;  %v2308_v2 = vmul.f32 %v4808_v5, %v6684_v36 }
 0x410   : > { %v2309_v30 = vmul.f32 %v4810_v17, %v6685_v29 }
 0x412   : > { %v2367_v23 = vpack.c.bf16 %v2309_v30, %v2308_v2  ;;  %v6686_v2 = vld [vmem:[#allocation35_spill] sm:$0xff] }
 0x413   : > { %v2135_v21 = vpop.xlane.xlu0 %2134 }
 0x414   : > { %v2137_v20 = vpop.xlane.xlu1 %2136  ;;  %4817 = vrcp.f32 %v2135_v21 }
 0x415   : > { %4819 = vrcp.f32 %v2137_v20 }
 0x416   : > { %v4812_v0 = vpop.eup %4811  ;;  %4821 = vrcp.f32 %v2141_v25 }
 0x417   : > { %v4814_v8 = vpop.eup %4813  ;;  %v2306_v31 = vmul.f32 %v4812_v0, %v6683_v56 }
 0x418   : > { %v2307_v12 = vmul.f32 %v4814_v8, %v6048_v45  ;;  %v4816_v54 = vpop.eup %4815 }
 0x41a   : > { %v2366_v59 = vpack.c.bf16 %v2307_v12, %v2306_v31 }
 0x41b   : > { %v2131_v28 = vpop.xlane.xlu0 %2130 }
 0x41c   : > { %4823 = vrcp.f32 %v2131_v28  ;;  %4345 = vmatprep.mubr.bf16.mxu0 %v2366_v59  ;;  %v2133_v57 = vpop.xlane.xlu1 %2132  ;;  %v6687_v28 = vld [vmem:[#allocation33_spill] sm:$0xff] }
 0x41d   : > { %4825 = vrcp.f32 %v2133_v57  ;;  %4346 = vmatmul.mubr.bf16.gmra.mrb[88].mxu0 %v2367_v23  ;;  %v2314_v23 = vmul.f32 %v4816_v54, %v6687_v28 }
 0x41e   : > { %v4818_v45 = vpop.eup %4817 }
 0x41f   : > { %v1907_v16 = vpop.xlane.xlu0 %1906  ;;  %v4820_v5 = vpop.eup %4819  ;;  %v2312_v20 = vmul.f32 %v4818_v45, %v6062_v38 }
 0x420   : > { %v1974_v60 = vsub.f32 %v6097_v37, %v1907_v16  ;;  %v1909_v41 = vpop.xlane.xlu1 %1908  ;;  %v4822_v17 = vpop.eup %4821 }
 0x421   : > { %v1975_v14 = vsub.f32 %v6103_v13, %v1909_v41  ;;  %v2313_v13 = vmul.f32 %v4820_v5, %v6064_v27  ;;  %v2315_v29 = vmul.f32 %v4822_v17, %v6686_v2 }
 0x422   : > { %v2098_v7 = vmul.f32 1.442695, %v1974_v60 }
 0x423   : > { %v2100_v9 = vmul.f32 1.442695, %v1975_v14  ;;  %v2143_v18 = vpop.xlane.xlu0 %2142  ;;  %v2370_v27 = vpack.c.bf16 %v2315_v29, %v2314_v23 }
 0x424   : > { %4827 = vpow2.f32 %v2098_v7  ;;  %v2145_v25 = vpop.xlane.xlu1 %2144 }
 0x425   : > { %4829 = vpow2.f32 %v2100_v9 }
 0x426   : > { %v4824_v0 = vpop.eup %4823  ;;  %4831 = vrcp.f32 %v2143_v18 }
 0x427   : > { %v4826_v21 = vpop.eup %4825  ;;  %4833 = vrcp.f32 %v2145_v25  ;;  %v1911_v8 = vpop.xlane.xlu0 %1910  ;;  %v2310_v37 = vmul.f32 %v4824_v0, %v6080_v42  ;;  %v2369_v42 = vpack.c.bf16 %v2313_v13, %v2312_v20 }
 0x428   : > { %v1976_v56 = vsub.f32 %v6127_v11, %v1911_v8  ;;  %v1913_v31 = vpop.xlane.xlu1 %1912  ;;  %v2311_v36 = vmul.f32 %v4826_v21, %v6082_v62 }
 0x429   : > { %v1977_v30 = vsub.f32 %v6135_v47, %v1913_v31 }
 0x42a   : > { %v2102_v12 = vmul.f32 1.442695, %v1976_v56  ;;  %v2368_v59 = vpack.c.bf16 %v2311_v36, %v2310_v37 }
 0x42b   : > { %v2104_v57 = vmul.f32 1.442695, %v1977_v30  ;;  %v2147_v16 = vpop.xlane.xlu0 %2146 }
 0x42c   : > { %4835 = vpow2.f32 %v2102_v12  ;;  %4349 = vmatprep.mubr.bf16.mxu0 %v2368_v59  ;;  %v2149_v38 = vpop.xlane.xlu1 %2148  ;;  %v4664_v12 = vld [vmem:[#allocation10 + $0x8] sm:$0xff]   ;;  %v4665_v59 = vld [vmem:[#allocation10 + $0x10] sm:$0xff]  }
 0x42d   : > { %4837 = vpow2.f32 %v2104_v57  ;;  %4350 = vmatmul.mubr.bf16.gmra.mrb[92].mxu0 %v2369_v42  ;;  %4403 = vmatprep.subr.bf16.mxu1 %v4664_v12 }
 0x42e   : > { %v6346_v11 = vpop.eup %4827  ;;  %4839 = vrcp.f32 %v2147_v16  ;;  %4353 = vmatprep.mubr.bf16.mxu0 %v2370_v27  ;;  %4404 = vmatpush3.bf16.msra.mxu1 %v4664_v12 }
 0x42f   : > { %v6348_v62 = vpop.eup %4829  ;;  %4841 = vrcp.f32 %v2149_v38  ;;  %2226 = vadd.xlane.f32.xlu0 %v6346_v11  ;;  %v2151_v47 = vpop.xlane.xlu0 %2150  ;;  %4405 = vmatprep.subr.bf16.mxu1 %v4665_v59 }
 0x430   : > { %v4832_v60 = vpop.eup %4831  ;;  %4843 = vrcp.f32 %v2151_v47  ;;  %2228 = vadd.xlane.f32.xlu1 %v6348_v62  ;;  %v2153_v41 = vpop.xlane.xlu1 %2152 }
 0x431   : > { %v4834_v14 = vpop.eup %4833  ;;  %4845 = vrcp.f32 %v2153_v41  ;;  %v2316_v54 = vmul.f32 %v4832_v60, %v6112_v10  ;;  %v4667_v41 = vld [vmem:[#allocation10 + $0x20] sm:$0xff]  }
 0x432   : > { %v2317_v7 = vmul.f32 %v4834_v14, %v6116_v58  ;;  %4406 = vmatpush3.bf16.msra.mxu1 %v4665_v59 }
 0x433   : > { %v2155_v45 = vpop.xlane.xlu0 %2154 }
 0x434   : > { %4847 = vrcp.f32 %v2155_v45  ;;  %v2157_v9 = vpop.xlane.xlu1 %2156  ;;  %v2371_v18 = vpack.c.bf16 %v2317_v7, %v2316_v54 }
 0x435   : > { %4849 = vrcp.f32 %v2157_v9 }
 0x436   : > { %v6354_v5 = vpop.eup %4835  ;;  %4354 = vmatmul.mubr.bf16.gmra.mrb[96].mxu0 %v2371_v18 }
 0x437   : > { %v6356_v25 = vpop.eup %4837  ;;  %2230 = vadd.xlane.f32.xlu0 %v6354_v5  ;;  %v2159_v17 = vpop.xlane.xlu0 %2158 }
 0x438   : > { %v4840_v0 = vpop.eup %4839  ;;  %4851 = vrcp.f32 %v2159_v17  ;;  %2232 = vadd.xlane.f32.xlu1 %v6356_v25  ;;  %v2161_v10 = vpop.xlane.xlu1 %2160 }
 0x439   : > { %v4842_v21 = vpop.eup %4841  ;;  %4853 = vrcp.f32 %v2161_v10  ;;  %v2318_v58 = vmul.f32 %v4840_v0, %v6144_v52 }
 0x43a   : > { %v4844_v8 = vpop.eup %4843  ;;  %v2319_v37 = vmul.f32 %v4842_v21, %v6146_v53  ;;  %v4668_v21 = vld [vmem:[#allocation10 + $0x28] sm:$0xff]  }
 0x43b   : > { %v4846_v20 = vpop.eup %4845  ;;  %v2163_v13 = vpop.xlane.xlu0 %2162  ;;  %v2320_v56 = vmul.f32 %v4844_v8, %v6156_v32  ;;  %v4669_v8 = vld [vmem:[#allocation10 + $0x30] sm:$0xff]  }
 0x43c   : > { %4855 = vrcp.f32 %v2163_v13  ;;  %v2372_v31 = vpack.c.bf16 %v2319_v37, %v2318_v58  ;;  %v2165_v36 = vpop.xlane.xlu1 %2164  ;;  %v2321_v2 = vmul.f32 %v4846_v20, %v6160_v40 }
 0x43d   : > { %4857 = vrcp.f32 %v2165_v36 }
 0x43e   : > { %v4848_v29 = vpop.eup %4847  ;;  %4357 = vmatprep.mubr.bf16.mxu0 %v2372_v31  ;;  %v2373_v30 = vpack.c.bf16 %v2321_v2, %v2320_v56 }
 0x43f   : > { %v4850_v28 = vpop.eup %4849  ;;  %v2167_v52 = vpop.xlane.xlu0 %2166  ;;  %v2322_v23 = vmul.f32 %v4848_v29, %v6168_v49 }
 0x440   : > { %4859 = vrcp.f32 %v2167_v52  ;;  %4358 = vmatmul.mubr.bf16.gmra.mrb[100].mxu0 %v2373_v30  ;;  %v2169_v53 = vpop.xlane.xlu1 %2168  ;;  %v2323_v32 = vmul.f32 %v4850_v28, %v6170_v1  ;;  %v4666_v1 = vld [vmem:[#allocation10 + $0x18] sm:$0xff]  }
 0x441   : > { %4861 = vrcp.f32 %v2169_v53  ;;  %4407 = vmatprep.subr.bf16.mxu1 %v4666_v1 }
 0x442   : > { %v4852_v57 = vpop.eup %4851  ;;  %v2374_v40 = vpack.c.bf16 %v2323_v32, %v2322_v23  ;;  %4408 = vmatpush3.bf16.msra.mxu1 %v4666_v1  ;;  %v4670_v23 = vld [vmem:[#allocation10 + $0x38] sm:$0xff]  }
 0x443   : > { %v4854_v16 = vpop.eup %4853  ;;  %v2171_v42 = vpop.xlane.xlu0 %2170  ;;  %v2324_v38 = vmul.f32 %v4852_v57, %v6182_v19  ;;  %4409 = vmatprep.subr.bf16.mxu1 %v4667_v41 }
 0x444   : > { %4863 = vrcp.f32 %v2171_v42  ;;  %4361 = vmatprep.mubr.bf16.mxu0 %v2374_v40  ;;  %v2173_v27 = vpop.xlane.xlu1 %2172  ;;  %v2325_v49 = vmul.f32 %v4854_v16, %v6184_v48 }
 0x445   : > { %4865 = vrcp.f32 %v2173_v27 }
 0x446   : > { %v4856_v47 = vpop.eup %4855  ;;  %v2375_v60 = vpack.c.bf16 %v2325_v49, %v2324_v38  ;;  %4410 = vmatpush3.bf16.msra.mxu1 %v4667_v41 }
 0x447   : > { %v4858_v14 = vpop.eup %4857  ;;  %v2175_v54 = vpop.xlane.xlu0 %2174  ;;  %v2326_v7 = vmul.f32 %v4856_v47, %v6192_v34  ;;  %4411 = vmatprep.subr.bf16.mxu1 %v4668_v21 }
 0x448   : > { %4867 = vrcp.f32 %v2175_v54  ;;  %4362 = vmatmul.mubr.bf16.gmra.mrb[104].mxu0 %v2375_v60  ;;  %v2177_v45 = vpop.xlane.xlu1 %2176  ;;  %v2327_v19 = vmul.f32 %v4858_v14, %v6194_v39 }
 0x449   : > { %4869 = vrcp.f32 %v2177_v45 }
 0x44a   : > { %v4860_v9 = vpop.eup %4859  ;;  %v2376_v48 = vpack.c.bf16 %v2327_v19, %v2326_v7  ;;  %4412 = vmatpush3.bf16.msra.mxu1 %v4668_v21  ;;  %v6688_v21 = vld [vmem:[#allocation19_spill] sm:$0xff] }
 0x44b   : > { %v4862_v18 = vpop.eup %4861  ;;  %v2179_v17 = vpop.xlane.xlu0 %2178  ;;  %v2328_v0 = vmul.f32 %v4860_v9, %v6202_v24  ;;  %4413 = vmatprep.subr.bf16.mxu1 %v4669_v8 }
 0x44c   : > { %4871 = vrcp.f32 %v2179_v17  ;;  %4365 = vmatprep.mubr.bf16.mxu0 %v2376_v48  ;;  %v2181_v10 = vpop.xlane.xlu1 %2180  ;;  %v2329_v34 = vmul.f32 %v4862_v18, %v6204_v26 }
 0x44d   : > { %4873 = vrcp.f32 %v2181_v10 }
 0x44e   : > { %v4864_v58 = vpop.eup %4863  ;;  %v2377_v39 = vpack.c.bf16 %v2329_v34, %v2328_v0  ;;  %4414 = vmatpush3.bf16.msra.mxu1 %v4669_v8 }
 0x44f   : > { %v4866_v37 = vpop.eup %4865  ;;  %v2183_v20 = vpop.xlane.xlu0 %2182  ;;  %v2330_v13 = vmul.f32 %v4864_v58, %v6216_v15  ;;  %4415 = vmatprep.subr.bf16.mxu1 %v4670_v23 }
 0x450   : > { %4875 = vrcp.f32 %v2183_v20  ;;  %4366 = vmatmul.mubr.bf16.gmra.mrb[108].mxu0 %v2377_v39  ;;  %v2185_v56 = vpop.xlane.xlu1 %2184  ;;  %v2331_v24 = vmul.f32 %v4866_v37, %v6218_v44 }
 0x451   : > { %4877 = vrcp.f32 %v2185_v56 }
 0x452   : > { %v4868_v31 = vpop.eup %4867  ;;  %v2378_v26 = vpack.c.bf16 %v2331_v24, %v2330_v13  ;;  %4416 = vmatpush3.bf16.msra.mxu1 %v4670_v23  ;;  %v6689_v13 = vld [vmem:[#allocation17_spill] sm:$0xff]  ;;  %v6690_v24 = vld [vmem:[#allocation18_spill] sm:$0xff] }
 0x453   : > { %v4870_v36 = vpop.eup %4869  ;;  %v2187_v2 = vpop.xlane.xlu0 %2186  ;;  %v2332_v29 = vmul.f32 %v4868_v31, %v6226_v6 }
 0x454   : > { %4879 = vrcp.f32 %v2187_v2  ;;  %4369 = vmatprep.mubr.bf16.mxu0 %v2378_v26  ;;  %v2189_v30 = vpop.xlane.xlu1 %2188  ;;  %v2333_v15 = vmul.f32 %v4870_v36, %v6228_v46 }
 0x455   : > { %4881 = vrcp.f32 %v2189_v30  ;;  %v6691_v30 = vld [vmem:[#allocation20_spill] sm:$0xff] }
 0x456   : > { %v4872_v12 = vpop.eup %4871  ;;  %v2379_v59 = vpack.c.bf16 %v2333_v15, %v2332_v29 }
 0x457   : > { %v4874_v28 = vpop.eup %4873  ;;  %v2191_v44 = vpop.xlane.xlu0 %2190  ;;  %v2334_v52 = vmul.f32 %v4872_v12, %v6234_v61  ;;  %v6692_v12 = vld [vmem:[#allocation21_spill] sm:$0xff] }
 0x458   : > { %4883 = vrcp.f32 %v2191_v44  ;;  %4370 = vmatmul.mubr.bf16.gmra.mrb[112].mxu0 %v2379_v59  ;;  %v2193_v53 = vpop.xlane.xlu1 %2192  ;;  %v2335_v32 = vmul.f32 %v4874_v28, %v6236_v50 }
 0x459   : > { %4885 = vrcp.f32 %v2193_v53  ;;  %v6693_v53 = vld [vmem:[#allocation24_spill] sm:$0xff] }
 0x45a   : > { %v4876_v6 = vpop.eup %4875  ;;  %v2380_v57 = vpack.c.bf16 %v2335_v32, %v2334_v52 }
 0x45b   : > { %v4878_v46 = vpop.eup %4877  ;;  %v2195_v40 = vpop.xlane.xlu0 %2194  ;;  %v2336_v16 = vmul.f32 %v4876_v6, %v6244_v55 }
 0x45c   : > { %4887 = vrcp.f32 %v2195_v40  ;;  %4373 = vmatprep.mubr.bf16.mxu0 %v2380_v57  ;;  %v2197_v42 = vpop.xlane.xlu1 %2196  ;;  %v2337_v61 = vmul.f32 %v4878_v46, %v6246_v43  ;;  %v6694_v57 = vld [vmem:[#allocation22_spill] sm:$0xff] }
 0x45d   : > { %4889 = vrcp.f32 %v2197_v42 }
 0x45e   : > { %v4880_v38 = vpop.eup %4879  ;;  %v2381_v27 = vpack.c.bf16 %v2337_v61, %v2336_v16  ;;  %v6695_v61 = vld [vmem:[#allocation23_spill] sm:$0xff] }
 0x45f   : > { %v4882_v49 = vpop.eup %4881  ;;  %v2199_v47 = vpop.xlane.xlu0 %2198  ;;  %v2338_v50 = vmul.f32 %v4880_v38, %v6252_v22 }
 0x460   : > { %4891 = vrcp.f32 %v2199_v47  ;;  %4374 = vmatmul.mubr.bf16.gmra.mrb[116].mxu0 %v2381_v27  ;;  %v2201_v60 = vpop.xlane.xlu1 %2200  ;;  %v2339_v1 = vmul.f32 %v4882_v49, %v6254_v33  ;;  %v6696_v27 = vld [vmem:[#allocation27_spill] sm:$0xff] }
 0x461   : > { %4893 = vrcp.f32 %v2201_v60 }
 0x462   : > { %v4884_v41 = vpop.eup %4883  ;;  %v2382_v55 = vpack.c.bf16 %v2339_v1, %v2338_v50  ;;  %v6697_v1 = vld [vmem:[#allocation28_spill] sm:$0xff] }
 0x463   : > { %v4886_v14 = vpop.eup %4885  ;;  %v2203_v54 = vpop.xlane.xlu0 %2202  ;;  %v2340_v7 = vmul.f32 %v4884_v41, %v6262_v4 }
 0x464   : > { %4895 = vrcp.f32 %v2203_v54  ;;  %4377 = vmatprep.mubr.bf16.mxu0 %v2382_v55  ;;  %v2205_v43 = vpop.xlane.xlu1 %2204  ;;  %v2341_v45 = vmul.f32 %v4886_v14, %v6264_v51  ;;  %v6698_v55 = vld [vmem:[#allocation25_spill] sm:$0xff] }
 0x465   : > { %4897 = vrcp.f32 %v2205_v43 }
 0x466   : > { %v4888_v19 = vpop.eup %4887  ;;  %v2383_v22 = vpack.c.bf16 %v2341_v45, %v2340_v7  ;;  %v6699_v45 = vld [vmem:[#allocation26_spill] sm:$0xff] }
 0x467   : > { %v4890_v9 = vpop.eup %4889  ;;  %v2207_v48 = vpop.xlane.xlu0 %2206  ;;  %v2342_v18 = vmul.f32 %v4888_v19, %v6270_v63 }
 0x468   : > { %4899 = vrcp.f32 %v2207_v48  ;;  %4378 = vmatmul.mubr.bf16.gmra.mrb[120].mxu0 %v2383_v22  ;;  %v2209_v33 = vpop.xlane.xlu1 %2208  ;;  %v2343_v17 = vmul.f32 %v4890_v9, %v6272_v3  ;;  %v6700_v22 = vld [vmem:[#allocation31_spill] sm:$0xff] }
 0x469   : > { %4901 = vrcp.f32 %v2209_v33 }
 0x46a   : > { %v4892_v0 = vpop.eup %4891  ;;  %v2384_v4 = vpack.c.bf16 %v2343_v17, %v2342_v18 }
 0x46b   : > { %v4894_v10 = vpop.eup %4893  ;;  %v2211_v34 = vpop.xlane.xlu0 %2210  ;;  %v2344_v58 = vmul.f32 %v4892_v0, %v6688_v21 }
 0x46c   : > { %4903 = vrcp.f32 %v2211_v34  ;;  %4381 = vmatprep.mubr.bf16.mxu0 %v2384_v4  ;;  %v2213_v51 = vpop.xlane.xlu1 %2212  ;;  %v2345_v39 = vmul.f32 %v4894_v10, %v6280_v35 }
 0x46d   : > { %4905 = vrcp.f32 %v2213_v51 }
 0x46e   : > { %v4896_v8 = vpop.eup %4895  ;;  %v2385_v63 = vpack.c.bf16 %v2345_v39, %v2344_v58 }
 0x46f   : > { %v4898_v37 = vpop.eup %4897  ;;  %v2215_v20 = vpop.xlane.xlu0 %2214  ;;  %v2346_v56 = vmul.f32 %v4896_v8, %v6689_v13 }
 0x470   : > { %4907 = vrcp.f32 %v2215_v20  ;;  %4382 = vmatmul.mubr.bf16.gmra.mrb[124].mxu0 %v2385_v63  ;;  %v2217_v3 = vpop.xlane.xlu1 %2216  ;;  %v2347_v31 = vmul.f32 %v4898_v37, %v6690_v24 }
 0x471   : > { %4909 = vrcp.f32 %v2217_v3 }
 0x472   : > { %v4900_v26 = vpop.eup %4899  ;;  %v2386_v36 = vpack.c.bf16 %v2347_v31, %v2346_v56 }
 0x473   : > { %v4902_v2 = vpop.eup %4901  ;;  %v2219_v29 = vpop.xlane.xlu0 %2218  ;;  %v2348_v15 = vmul.f32 %v4900_v26, %v6691_v30 }
 0x474   : > { %4911 = vrcp.f32 %v2219_v29  ;;  %4385 = vmatprep.mubr.bf16.mxu0 %v2386_v36  ;;  %v2221_v35 = vpop.xlane.xlu1 %2220  ;;  %v2349_v59 = vmul.f32 %v4902_v2, %v6692_v12 }
 0x475   : > { %4913 = vrcp.f32 %v2221_v35 }
 0x476   : > { %v4904_v28 = vpop.eup %4903  ;;  %v2387_v44 = vpack.c.bf16 %v2349_v59, %v2348_v15 }
 0x477   : > { %v4906_v52 = vpop.eup %4905  ;;  %v2223_v23 = vpop.xlane.xlu0 %2222  ;;  %v2350_v32 = vmul.f32 %v4904_v28, %v6693_v53 }
 0x478   : > { %4915 = vrcp.f32 %v2223_v23  ;;  %4386 = vmatmul.mubr.bf16.gmra.mrb[128].mxu0 %v2387_v44  ;;  %v2225_v6 = vpop.xlane.xlu1 %2224  ;;  %v2351_v46 = vmul.f32 %v4906_v52, %v6694_v57 }
 0x479   : > { %4917 = vrcp.f32 %v2225_v6 }
 0x47a   : > { %v4908_v40 = vpop.eup %4907  ;;  %v2388_v16 = vpack.c.bf16 %v2351_v46, %v2350_v32 }
 0x47b   : > { %v4910_v42 = vpop.eup %4909  ;;  %v2352_v38 = vmul.f32 %v4908_v40, %v6695_v61 }
 0x47c   : > { %4389 = vmatprep.mubr.bf16.mxu0 %v2388_v16  ;;  %v2353_v49 = vmul.f32 %v4910_v42, %v6696_v27 }
 0x47e   : > { %v4912_v47 = vpop.eup %4911  ;;  %v2389_v50 = vpack.c.bf16 %v2353_v49, %v2352_v38 }
 0x47f   : > { %v4914_v60 = vpop.eup %4913  ;;  %v2354_v41 = vmul.f32 %v4912_v47, %v6697_v1 }
 0x480   : > { %4390 = vmatmul.mubr.bf16.gmra.mrb[132].mxu0 %v2389_v50  ;;  %v2355_v14 = vmul.f32 %v4914_v60, %v6698_v55 }
 0x482   : > { %v4916_v54 = vpop.eup %4915  ;;  %v2390_v7 = vpack.c.bf16 %v2355_v14, %v2354_v41 }
 0x483   : > { %v4918_v43 = vpop.eup %4917  ;;  %v2356_v19 = vmul.f32 %v4916_v54, %v6699_v45 }
 0x484   : > { %4393 = vmatprep.mubr.bf16.mxu0 %v2390_v7  ;;  %v2357_v9 = vmul.f32 %v4918_v43, %v6700_v22 }
 0x486   : > { %v2391_v48 = vpack.c.bf16 %v2357_v9, %v2356_v19 }
 0x488   : > { %4394 = vmatmul.mubr.bf16.gmra.mrb[136].mxu0 %v2391_v48 }
 0x4bc   : > { %v2227_v18 = vpop.xlane.xlu0 %2226 }
 0x4bd   : > { %4919 = vrcp.f32 %v2227_v18  ;;  %v2229_v33 = vpop.xlane.xlu1 %2228 }
 0x4be   : > { %4921 = vrcp.f32 %v2229_v33 }
 0x4c4   : > { %v2231_v17 = vpop.xlane.xlu0 %2230 }
 0x4c5   : > { %4923 = vrcp.f32 %v2231_v17  ;;  %v2233_v0 = vpop.xlane.xlu1 %2232 }
 0x4c6   : > { %4925 = vrcp.f32 %v2233_v0 }
 0x4c7   : > { %v4920_v4 = vpop.eup %4919 }
 0x4c8   : > { %v4922_v10 = vpop.eup %4921  ;;  %v2358_v34 = vmul.f32 %v4920_v4, %v6346_v11 }
 0x4c9   : > { %v2359_v21 = vmul.f32 %v4922_v10, %v6348_v62 }
 0x4cb   : > { %v2392_v58 = vpack.c.bf16 %v2359_v21, %v2358_v34 }
 0x4cd   : > { %4397 = vmatprep.mubr.bf16.mxu0 %v2392_v58 }
 0x4cf   : > { %v4924_v51 = vpop.eup %4923 }
 0x4d0   : > { %v4926_v39 = vpop.eup %4925  ;;  %v2360_v8 = vmul.f32 %v4924_v51, %v6354_v5 }
 0x4d1   : > { %v2361_v63 = vmul.f32 %v4926_v39, %v6356_v25 }
 0x4d3   : > { %v2393_v37 = vpack.c.bf16 %v2361_v63, %v2360_v8  ;;  %v4339_v20 = vpop.f32.mrb[80].mxu0 }
 0x4d4   : > { %v2428_v13 = vpop.f32.mrb[81].mxu0 }
 0x4d5   : > { %4398 = vmatmul.mubr.bf16.gmra.mrb[140].mxu0 %v2393_v37  ;;  %v4340_v56 = vpop.f32.mrb[82].mxu0 }
 0x4d6   : > { %v2684_v3 = vpack.c.bf16 %v4340_v56, %v4339_v20  ;;  %v2431_v24 = vpop.f32.mrb[83].mxu0 }
 0x4d7   : > { %v2683_v31 = vpack.c.bf16 %v2431_v24, %v2428_v13 }
 0x4d9   : > { %4417 = vmatprep.mubr.bf16.mxu1 %v2683_v31 }
 0x4da   : > { %4418 = vmatmul.mubr.bf16.vlgmr.msra.gmra.mrb[80].mxu1 %v2684_v3 }
 0x4e0   : > { %v4343_v11 = vpop.f32.mrb[84].mxu0 }
 0x4e1   : > { %v2444_v62 = vpop.f32.mrb[85].mxu0 }
 0x4e2   : > { %v4344_v26 = vpop.f32.mrb[86].mxu0 }
 0x4e3   : > { %v2686_v36 = vpack.c.bf16 %v4344_v26, %v4343_v11  ;;  %v2447_v2 = vpop.f32.mrb[87].mxu0 }
 0x4e4   : > { %v2685_v29 = vpack.c.bf16 %v2447_v2, %v2444_v62 }
 0x4e6   : > { %4421 = vmatprep.mubr.bf16.mxu1 %v2685_v29 }
 0x4e7   : > { %4422 = vmatmul.mubr.bf16.gmra.mrb[84].mxu1 %v2686_v36 }
 0x4f0   : > { %v4347_v5 = vpop.f32.mrb[88].mxu0 }
 0x4f1   : > { %v2460_v25 = vpop.f32.mrb[89].mxu0 }
 0x4f2   : > { %v4348_v30 = vpop.f32.mrb[90].mxu0 }
 0x4f3   : > { %v2688_v15 = vpack.c.bf16 %v4348_v30, %v4347_v5  ;;  %v2463_v35 = vpop.f32.mrb[91].mxu0 }
 0x4f4   : > { %v2687_v12 = vpack.c.bf16 %v2463_v35, %v2460_v25 }
 0x4f6   : > { %4425 = vmatprep.mubr.bf16.mxu1 %v2687_v12 }
 0x4f7   : > { %4426 = vmatmul.mubr.bf16.gmra.mrb[88].mxu1 %v2688_v15 }
 0x500   : > { %v4351_v59 = vpop.f32.mrb[92].mxu0 }
 0x501   : > { %v2476_v28 = vpop.f32.mrb[93].mxu0 }
 0x502   : > { %v4352_v44 = vpop.f32.mrb[94].mxu0 }
 0x503   : > { %v2690_v52 = vpack.c.bf16 %v4352_v44, %v4351_v59  ;;  %v2479_v23 = vpop.f32.mrb[95].mxu0 }
 0x504   : > { %v2689_v53 = vpack.c.bf16 %v2479_v23, %v2476_v28 }
 0x506   : > { %4429 = vmatprep.mubr.bf16.mxu1 %v2689_v53 }
 0x507   : > { %4430 = vmatmul.mubr.bf16.gmra.mrb[92].mxu1 %v2690_v52 }
 0x509   : > { %v4355_v32 = vpop.f32.mrb[96].mxu0 }
 0x50a   : > { %v2492_v6 = vpop.f32.mrb[97].mxu0 }
 0x50b   : > { %v4356_v57 = vpop.f32.mrb[98].mxu0 }
 0x50c   : > { %v2692_v46 = vpack.c.bf16 %v4356_v57, %v4355_v32  ;;  %v2495_v40 = vpop.f32.mrb[99].mxu0 }
 0x50d   : > { %v2691_v16 = vpack.c.bf16 %v2495_v40, %v2492_v6 }
 0x50f   : > { %4433 = vmatprep.mubr.bf16.mxu1 %v2691_v16 }
 0x510   : > { %4434 = vmatmul.mubr.bf16.gmra.mrb[96].mxu1 %v2692_v46 }
 0x513   : > { %v4359_v42 = vpop.f32.mrb[100].mxu0 }
 0x514   : > { %v2508_v61 = vpop.f32.mrb[101].mxu0 }
 0x515   : > { %v4360_v38 = vpop.f32.mrb[102].mxu0 }
 0x516   : > { %v2694_v27 = vpack.c.bf16 %v4360_v38, %v4359_v42  ;;  %v2511_v49 = vpop.f32.mrb[103].mxu0  ;;  %v6407_v38 = vld [vmem:[%s6567_s7] ss:$0 sm:$0xff] }
 0x517   : > { %v2693_v47 = vpack.c.bf16 %v2511_v49, %v2508_v61 }
 0x519   : > { %4437 = vmatprep.mubr.bf16.mxu1 %v2693_v47 }
 0x51a   : > { %4438 = vmatmul.mubr.bf16.gmra.mrb[100].mxu1 %v2694_v27 }
 0x51b   : > { %v4363_v50 = vpop.f32.mrb[104].mxu0 }
 0x51c   : > { %v2524_v60 = vpop.f32.mrb[105].mxu0 }
 0x51d   : > { %v4364_v1 = vpop.f32.mrb[106].mxu0 }
 0x51e   : > { %v2696_v41 = vpack.c.bf16 %v4364_v1, %v4363_v50  ;;  %v2527_v55 = vpop.f32.mrb[107].mxu0 }
 0x51f   : > { %v2695_v14 = vpack.c.bf16 %v2527_v55, %v2524_v60 }
 0x521   : > { %4441 = vmatprep.mubr.bf16.mxu1 %v2695_v14 }
 0x522   : > { %4442 = vmatmul.mubr.bf16.gmra.mrb[104].mxu1 %v2696_v41 }
 0x523   : > { %v4367_v54 = vpop.f32.mrb[108].mxu0 }
 0x524   : > { %v2540_v7 = vpop.f32.mrb[109].mxu0 }
 0x525   : > { %v4368_v43 = vpop.f32.mrb[110].mxu0 }
 0x526   : > { %v2698_v45 = vpack.c.bf16 %v4368_v43, %v4367_v54  ;;  %v2543_v19 = vpop.f32.mrb[111].mxu0 }
 0x527   : > { %v2697_v22 = vpack.c.bf16 %v2543_v19, %v2540_v7 }
 0x529   : > { %4445 = vmatprep.mubr.bf16.mxu1 %v2697_v22 }
 0x52a   : > { %4446 = vmatmul.mubr.bf16.gmra.mrb[108].mxu1 %v2698_v45 }
 0x52b   : > { %v4371_v9 = vpop.f32.mrb[112].mxu0 }
 0x52c   : > { %v2556_v48 = vpop.f32.mrb[113].mxu0 }
 0x52d   : > { %v4372_v18 = vpop.f32.mrb[114].mxu0 }
 0x52e   : > { %v2700_v33 = vpack.c.bf16 %v4372_v18, %v4371_v9  ;;  %v2559_v17 = vpop.f32.mrb[115].mxu0 }
 0x52f   : > { %v2699_v0 = vpack.c.bf16 %v2559_v17, %v2556_v48 }
 0x531   : > { %4449 = vmatprep.mubr.bf16.mxu1 %v2699_v0 }
 0x532   : > { %4450 = vmatmul.mubr.bf16.gmra.mrb[112].mxu1 %v2700_v33 }
 0x533   : > { %v4375_v4 = vpop.f32.mrb[116].mxu0 }
 0x534   : > { %v2572_v10 = vpop.f32.mrb[117].mxu0 }
 0x535   : > { %v4376_v34 = vpop.f32.mrb[118].mxu0 }
 0x536   : > { %v2702_v21 = vpack.c.bf16 %v4376_v34, %v4375_v4  ;;  %v2575_v58 = vpop.f32.mrb[119].mxu0 }
 0x537   : > { %v2701_v51 = vpack.c.bf16 %v2575_v58, %v2572_v10 }
 0x539   : > { %4453 = vmatprep.mubr.bf16.mxu1 %v2701_v51 }
 0x53a   : > { %4454 = vmatmul.mubr.bf16.gmra.mrb[116].mxu1 %v2702_v21 }
 0x53b   : > { %v4379_v39 = vpop.f32.mrb[120].mxu0 }
 0x53c   : > { %v2588_v8 = vpop.f32.mrb[121].mxu0 }
 0x53d   : > { %v4380_v63 = vpop.f32.mrb[122].mxu0 }
 0x53e   : > { %v2704_v37 = vpack.c.bf16 %v4380_v63, %v4379_v39  ;;  %v2591_v20 = vpop.f32.mrb[123].mxu0 }
 0x53f   : > { %v2703_v13 = vpack.c.bf16 %v2591_v20, %v2588_v8 }
 0x541   : > { %4457 = vmatprep.mubr.bf16.mxu1 %v2703_v13 }
 0x542   : > { %4458 = vmatmul.mubr.bf16.gmra.mrb[120].mxu1 %v2704_v37 }
 0x543   : > { %v4383_v56 = vpop.f32.mrb[124].mxu0 }
 0x544   : > { %v2604_v3 = vpop.f32.mrb[125].mxu0 }
 0x545   : > { %v4384_v24 = vpop.f32.mrb[126].mxu0 }
 0x546   : > { %v2706_v31 = vpack.c.bf16 %v4384_v24, %v4383_v56  ;;  %v2607_v11 = vpop.f32.mrb[127].mxu0 }
 0x547   : > { %v2705_v62 = vpack.c.bf16 %v2607_v11, %v2604_v3 }
 0x549   : > { %4461 = vmatprep.mubr.bf16.mxu1 %v2705_v62 }
 0x54a   : > { %4462 = vmatmul.mubr.bf16.gmra.mrb[124].mxu1 %v2706_v31 }
 0x54b   : > { %v4387_v26 = vpop.f32.mrb[128].mxu0 }
 0x54c   : > { %v2620_v36 = vpop.f32.mrb[129].mxu0 }
 0x54d   : > { %v4388_v2 = vpop.f32.mrb[130].mxu0 }
 0x54e   : > { %v2708_v29 = vpack.c.bf16 %v4388_v2, %v4387_v26  ;;  %v2623_v5 = vpop.f32.mrb[131].mxu0 }
 0x54f   : > { %v2707_v25 = vpack.c.bf16 %v2623_v5, %v2620_v36 }
 0x551   : > { %4465 = vmatprep.mubr.bf16.mxu1 %v2707_v25 }
 0x552   : > { %4466 = vmatmul.mubr.bf16.gmra.mrb[128].mxu1 %v2708_v29 }
 0x553   : > { %v4391_v30 = vpop.f32.mrb[132].mxu0 }
 0x554   : > { %v2636_v15 = vpop.f32.mrb[133].mxu0 }
 0x555   : > { %v4392_v35 = vpop.f32.mrb[134].mxu0 }
 0x556   : > { %v2710_v12 = vpack.c.bf16 %v4392_v35, %v4391_v30  ;;  %v2639_v59 = vpop.f32.mrb[135].mxu0 }
 0x557   : > { %v2709_v28 = vpack.c.bf16 %v2639_v59, %v2636_v15 }
 0x559   : > { %4469 = vmatprep.mubr.bf16.mxu1 %v2709_v28 }
 0x55a   : > { %4470 = vmatmul.mubr.bf16.gmra.mrb[132].mxu1 %v2710_v12 }
 0x55b   : > { %v4395_v44 = vpop.f32.mrb[136].mxu0 }
 0x55c   : > { %v2652_v52 = vpop.f32.mrb[137].mxu0 }
 0x55d   : > { %v4396_v23 = vpop.f32.mrb[138].mxu0 }
 0x55e   : > { %v2712_v53 = vpack.c.bf16 %v4396_v23, %v4395_v44  ;;  %v2655_v32 = vpop.f32.mrb[139].mxu0 }
 0x55f   : > { %v2711_v6 = vpack.c.bf16 %v2655_v32, %v2652_v52 }
 0x561   : > { %4473 = vmatprep.mubr.bf16.mxu1 %v2711_v6 }
 0x562   : > { %4474 = vmatmul.mubr.bf16.gmra.mrb[136].mxu1 %v2712_v53 }
 0x5a8   : > { %v4399_v57 = vpop.f32.mrb[140].mxu0 }
 0x5a9   : > { %v2668_v46 = vpop.f32.mrb[141].mxu0 }
 0x5aa   : > { %v4400_v40 = vpop.f32.mrb[142].mxu0 }
 0x5ab   : > { %v2714_v16 = vpack.c.bf16 %v4400_v40, %v4399_v57  ;;  %v2671_v42 = vpop.f32.mrb[143].mxu0 }
 0x5ac   : > { %v2713_v61 = vpack.c.bf16 %v2671_v42, %v2668_v46 }
 0x5ad   : > { %v4419_v27 = vpop.f32.mrb[80].mxu1 }
 0x5ae   : > { %4477 = vmatprep.mubr.bf16.mxu1 %v2713_v61  ;;  %v2829_v49 = vadd.f32 %v4419_v27, %v6407_v38  ;;  %v2820_v47 = vpop.f32.mrb[81].mxu1 }
 0x5af   : > { %4478 = vmatmul.mubr.bf16.gmra.mrb[140].mxu1 %v2714_v16  ;;  %v2821_v50 = vadd.f32 %v6407_v38, %v2820_v47  ;;  %v4420_v60 = vpop.f32.mrb[82].mxu1 }
 0x5b0   : > { %v2832_v1 = vadd.f32 %v4420_v60, %v6407_v38  ;;  %v2823_v41 = vpop.f32.mrb[83].mxu1  ;;  %v3077_v14 = vmax.f32 %v2829_v49, 0.0 }
 0x5b1   : > { %v2824_v55 = vadd.f32 %v6407_v38, %v2823_v41  ;;  %v3075_v7 = vmax.f32 %v2821_v50, 0.0 }
 0x5b2   : > { %v3078_v54 = vmax.f32 %v2832_v1, 0.0 }
 0x5b3   : > { %v3076_v43 = vmax.f32 %v2824_v55, 0.0 }
 0x5b4   : > { %v3818_v45 = vpack.c.bf16 %v3078_v54, %v3077_v14 }
 0x5b5   : > { %v3813_v19 = vpack.c.bf16 %v3076_v43, %v3075_v7 }
 0x5b6   : > { %3970 = vst [vmem:[%s6415_s24 + $0x8] sm:$0xff] %v3818_v45  }
 0x5b7   : > { %3814 = vst [vmem:[%s6415_s24] sm:$0xff] %v3813_v19  }
 0x5ba   : > { %v4423_v22 = vpop.f32.mrb[84].mxu1 }
 0x5bb   : > { %v2845_v9 = vadd.f32 %v4423_v22, %v6407_v38  ;;  %v2836_v48 = vpop.f32.mrb[85].mxu1 }
 0x5bc   : > { %v2837_v18 = vadd.f32 %v6407_v38, %v2836_v48  ;;  %v4424_v33 = vpop.f32.mrb[86].mxu1 }
 0x5bd   : > { %v2848_v17 = vadd.f32 %v4424_v33, %v6407_v38  ;;  %v2839_v0 = vpop.f32.mrb[87].mxu1  ;;  %v3081_v10 = vmax.f32 %v2845_v9, 0.0 }
 0x5be   : > { %v2840_v4 = vadd.f32 %v6407_v38, %v2839_v0  ;;  %v3079_v21 = vmax.f32 %v2837_v18, 0.0 }
 0x5bf   : > { %v3082_v34 = vmax.f32 %v2848_v17, 0.0 }
 0x5c0   : > { %v3080_v58 = vmax.f32 %v2840_v4, 0.0 }
 0x5c1   : > { %v3828_v51 = vpack.c.bf16 %v3082_v34, %v3081_v10 }
 0x5c2   : > { %v3823_v39 = vpack.c.bf16 %v3080_v58, %v3079_v21 }
 0x5c3   : > { %3972 = vst [vmem:[%s6415_s24 + $0x18] sm:$0xff] %v3828_v51  }
 0x5c4   : > { %3971 = vst [vmem:[%s6415_s24 + $0x10] sm:$0xff] %v3823_v39  }
 0x5ca   : > { %v4427_v8 = vpop.f32.mrb[88].mxu1 }
 0x5cb   : > { %v2861_v63 = vadd.f32 %v4427_v8, %v6407_v38  ;;  %v2852_v37 = vpop.f32.mrb[89].mxu1 }
 0x5cc   : > { %v2853_v20 = vadd.f32 %v6407_v38, %v2852_v37  ;;  %v4428_v13 = vpop.f32.mrb[90].mxu1 }
 0x5cd   : > { %v2864_v56 = vadd.f32 %v4428_v13, %v6407_v38  ;;  %v2855_v3 = vpop.f32.mrb[91].mxu1  ;;  %v3085_v31 = vmax.f32 %v2861_v63, 0.0 }
 0x5ce   : > { %v2856_v24 = vadd.f32 %v6407_v38, %v2855_v3  ;;  %v3083_v62 = vmax.f32 %v2853_v20, 0.0 }
 0x5cf   : > { %v3086_v11 = vmax.f32 %v2864_v56, 0.0 }
 0x5d0   : > { %v3084_v26 = vmax.f32 %v2856_v24, 0.0 }
 0x5d1   : > { %v3838_v36 = vpack.c.bf16 %v3086_v11, %v3085_v31 }
 0x5d2   : > { %v3833_v2 = vpack.c.bf16 %v3084_v26, %v3083_v62 }
 0x5d3   : > { %3974 = vst [vmem:[%s6415_s24 + $0x28] sm:$0xff] %v3838_v36  }
 0x5d4   : > { %3973 = vst [vmem:[%s6415_s24 + $0x20] sm:$0xff] %v3833_v2  }
 0x5da   : > { %v4431_v29 = vpop.f32.mrb[92].mxu1 }
 0x5db   : > { %v2877_v5 = vadd.f32 %v4431_v29, %v6407_v38  ;;  %v2868_v25 = vpop.f32.mrb[93].mxu1 }
 0x5dc   : > { %v2869_v30 = vadd.f32 %v6407_v38, %v2868_v25  ;;  %v4432_v15 = vpop.f32.mrb[94].mxu1 }
 0x5dd   : > { %v2880_v35 = vadd.f32 %v4432_v15, %v6407_v38  ;;  %v2871_v12 = vpop.f32.mrb[95].mxu1  ;;  %v3089_v28 = vmax.f32 %v2877_v5, 0.0 }
 0x5de   : > { %v2872_v59 = vadd.f32 %v6407_v38, %v2871_v12  ;;  %v3087_v52 = vmax.f32 %v2869_v30, 0.0 }
 0x5df   : > { %v3090_v44 = vmax.f32 %v2880_v35, 0.0 }
 0x5e0   : > { %v3088_v23 = vmax.f32 %v2872_v59, 0.0 }
 0x5e1   : > { %v3848_v53 = vpack.c.bf16 %v3090_v44, %v3089_v28 }
 0x5e2   : > { %v3843_v32 = vpack.c.bf16 %v3088_v23, %v3087_v52 }
 0x5e3   : > { %3976 = vst [vmem:[%s6415_s24 + $0x38] sm:$0xff] %v3848_v53   ;;  %v4435_v6 = vpop.f32.mrb[96].mxu1 }
 0x5e4   : > { %3975 = vst [vmem:[%s6415_s24 + $0x30] sm:$0xff] %v3843_v32   ;;  %v2893_v57 = vadd.f32 %v4435_v6, %v6407_v38  ;;  %v2884_v46 = vpop.f32.mrb[97].mxu1 }
 0x5e5   : > { %v2885_v40 = vadd.f32 %v6407_v38, %v2884_v46  ;;  %v4436_v16 = vpop.f32.mrb[98].mxu1 }
 0x5e6   : > { %v2896_v42 = vadd.f32 %v4436_v16, %v6407_v38  ;;  %v2887_v61 = vpop.f32.mrb[99].mxu1  ;;  %v3093_v49 = vmax.f32 %v2893_v57, 0.0 }
 0x5e7   : > { %v2888_v27 = vadd.f32 %v6407_v38, %v2887_v61  ;;  %v3091_v50 = vmax.f32 %v2885_v40, 0.0 }
 0x5e8   : > { %v3094_v47 = vmax.f32 %v2896_v42, 0.0 }
 0x5e9   : > { %v3092_v60 = vmax.f32 %v2888_v27, 0.0 }
 0x5ea   : > { %v3858_v1 = vpack.c.bf16 %v3094_v47, %v3093_v49 }
 0x5eb   : > { %v3853_v41 = vpack.c.bf16 %v3092_v60, %v3091_v50 }
 0x5ec   : > { %3978 = vst [vmem:[%s6415_s24 + $0x48] sm:$0xff] %v3858_v1  }
 0x5ed   : > { %3977 = vst [vmem:[%s6415_s24 + $0x40] sm:$0xff] %v3853_v41   ;;  %v4439_v55 = vpop.f32.mrb[100].mxu1 }
 0x5ee   : > { %v2909_v14 = vadd.f32 %v4439_v55, %v6407_v38  ;;  %v2900_v54 = vpop.f32.mrb[101].mxu1 }
 0x5ef   : > { %v2901_v7 = vadd.f32 %v6407_v38, %v2900_v54  ;;  %v4440_v43 = vpop.f32.mrb[102].mxu1 }
 0x5f0   : > { %v2912_v45 = vadd.f32 %v4440_v43, %v6407_v38  ;;  %v2903_v19 = vpop.f32.mrb[103].mxu1  ;;  %v3097_v9 = vmax.f32 %v2909_v14, 0.0 }
 0x5f1   : > { %v2904_v22 = vadd.f32 %v6407_v38, %v2903_v19  ;;  %v3095_v18 = vmax.f32 %v2901_v7, 0.0 }
 0x5f2   : > { %v3098_v48 = vmax.f32 %v2912_v45, 0.0 }
 0x5f3   : > { %v3096_v33 = vmax.f32 %v2904_v22, 0.0 }
 0x5f4   : > { %v3868_v17 = vpack.c.bf16 %v3098_v48, %v3097_v9 }
 0x5f5   : > { %v3863_v0 = vpack.c.bf16 %v3096_v33, %v3095_v18  ;;  %v4443_v4 = vpop.f32.mrb[104].mxu1 }
 0x5f6   : > { %3980 = vst [vmem:[%s6415_s24 + $0x58] sm:$0xff] %v3868_v17   ;;  %v2925_v10 = vadd.f32 %v4443_v4, %v6407_v38  ;;  %v2916_v34 = vpop.f32.mrb[105].mxu1 }
 0x5f7   : > { %3979 = vst [vmem:[%s6415_s24 + $0x50] sm:$0xff] %v3863_v0   ;;  %v2917_v21 = vadd.f32 %v6407_v38, %v2916_v34  ;;  %v4444_v58 = vpop.f32.mrb[106].mxu1 }
 0x5f8   : > { %v2928_v51 = vadd.f32 %v4444_v58, %v6407_v38  ;;  %v2919_v39 = vpop.f32.mrb[107].mxu1  ;;  %v3101_v63 = vmax.f32 %v2925_v10, 0.0 }
 0x5f9   : > { %v2920_v8 = vadd.f32 %v6407_v38, %v2919_v39  ;;  %v3099_v20 = vmax.f32 %v2917_v21, 0.0 }
 0x5fa   : > { %v3102_v37 = vmax.f32 %v2928_v51, 0.0 }
 0x5fb   : > { %v3100_v13 = vmax.f32 %v2920_v8, 0.0 }
 0x5fc   : > { %v3878_v56 = vpack.c.bf16 %v3102_v37, %v3101_v63 }
 0x5fd   : > { %v3873_v3 = vpack.c.bf16 %v3100_v13, %v3099_v20  ;;  %v4447_v24 = vpop.f32.mrb[108].mxu1 }
 0x5fe   : > { %3982 = vst [vmem:[%s6415_s24 + $0x68] sm:$0xff] %v3878_v56   ;;  %v2941_v31 = vadd.f32 %v4447_v24, %v6407_v38  ;;  %v2932_v11 = vpop.f32.mrb[109].mxu1 }
 0x5ff   : > { %3981 = vst [vmem:[%s6415_s24 + $0x60] sm:$0xff] %v3873_v3   ;;  %v2933_v62 = vadd.f32 %v6407_v38, %v2932_v11  ;;  %v4448_v26 = vpop.f32.mrb[110].mxu1 }
 0x600   : > { %v2944_v36 = vadd.f32 %v4448_v26, %v6407_v38  ;;  %v2935_v2 = vpop.f32.mrb[111].mxu1  ;;  %v3105_v5 = vmax.f32 %v2941_v31, 0.0 }
 0x601   : > { %v2936_v29 = vadd.f32 %v6407_v38, %v2935_v2  ;;  %v3103_v30 = vmax.f32 %v2933_v62, 0.0 }
 0x602   : > { %v3106_v25 = vmax.f32 %v2944_v36, 0.0 }
 0x603   : > { %v3104_v15 = vmax.f32 %v2936_v29, 0.0 }
 0x604   : > { %v3888_v35 = vpack.c.bf16 %v3106_v25, %v3105_v5 }
 0x605   : > { %v3883_v12 = vpack.c.bf16 %v3104_v15, %v3103_v30  ;;  %v4451_v59 = vpop.f32.mrb[112].mxu1 }
 0x606   : > { %3984 = vst [vmem:[%s6415_s24 + $0x78] sm:$0xff] %v3888_v35   ;;  %v2957_v28 = vadd.f32 %v4451_v59, %v6407_v38  ;;  %v2948_v44 = vpop.f32.mrb[113].mxu1 }
 0x607   : > { %3983 = vst [vmem:[%s6415_s24 + $0x70] sm:$0xff] %v3883_v12   ;;  %v2949_v52 = vadd.f32 %v6407_v38, %v2948_v44  ;;  %v4452_v23 = vpop.f32.mrb[114].mxu1 }
 0x608   : > { %v2960_v53 = vadd.f32 %v4452_v23, %v6407_v38  ;;  %v2951_v32 = vpop.f32.mrb[115].mxu1  ;;  %v3109_v57 = vmax.f32 %v2957_v28, 0.0 }
 0x609   : > { %v2952_v6 = vadd.f32 %v6407_v38, %v2951_v32  ;;  %v3107_v40 = vmax.f32 %v2949_v52, 0.0 }
 0x60a   : > { %v3110_v46 = vmax.f32 %v2960_v53, 0.0 }
 0x60b   : > { %v3108_v16 = vmax.f32 %v2952_v6, 0.0 }
 0x60c   : > { %v3898_v42 = vpack.c.bf16 %v3110_v46, %v3109_v57 }
 0x60d   : > { %v3893_v61 = vpack.c.bf16 %v3108_v16, %v3107_v40  ;;  %v4455_v27 = vpop.f32.mrb[116].mxu1 }
 0x60e   : > { %3986 = vst [vmem:[%s6415_s24 + $0x88] sm:$0xff] %v3898_v42   ;;  %v2973_v49 = vadd.f32 %v4455_v27, %v6407_v38  ;;  %v2964_v47 = vpop.f32.mrb[117].mxu1 }
 0x60f   : > { %3985 = vst [vmem:[%s6415_s24 + $0x80] sm:$0xff] %v3893_v61   ;;  %v2965_v50 = vadd.f32 %v6407_v38, %v2964_v47  ;;  %v4456_v60 = vpop.f32.mrb[118].mxu1 }
 0x610   : > { %v2976_v1 = vadd.f32 %v4456_v60, %v6407_v38  ;;  %v2967_v41 = vpop.f32.mrb[119].mxu1  ;;  %v3113_v14 = vmax.f32 %v2973_v49, 0.0 }
 0x611   : > { %v2968_v55 = vadd.f32 %v6407_v38, %v2967_v41  ;;  %v3111_v7 = vmax.f32 %v2965_v50, 0.0 }
 0x612   : > { %v3114_v54 = vmax.f32 %v2976_v1, 0.0 }
 0x613   : > { %v3112_v43 = vmax.f32 %v2968_v55, 0.0 }
 0x614   : > { %v3908_v45 = vpack.c.bf16 %v3114_v54, %v3113_v14 }
 0x615   : > { %v3903_v19 = vpack.c.bf16 %v3112_v43, %v3111_v7  ;;  %v4459_v22 = vpop.f32.mrb[120].mxu1 }
 0x616   : > { %3988 = vst [vmem:[%s6415_s24 + $0x98] sm:$0xff] %v3908_v45   ;;  %v2989_v9 = vadd.f32 %v4459_v22, %v6407_v38  ;;  %v2980_v48 = vpop.f32.mrb[121].mxu1 }
 0x617   : > { %3987 = vst [vmem:[%s6415_s24 + $0x90] sm:$0xff] %v3903_v19   ;;  %v2981_v18 = vadd.f32 %v6407_v38, %v2980_v48  ;;  %v4460_v33 = vpop.f32.mrb[122].mxu1 }
 0x618   : > { %v2992_v17 = vadd.f32 %v4460_v33, %v6407_v38  ;;  %v2983_v0 = vpop.f32.mrb[123].mxu1  ;;  %v3117_v10 = vmax.f32 %v2989_v9, 0.0 }
 0x619   : > { %v2984_v4 = vadd.f32 %v6407_v38, %v2983_v0  ;;  %v3115_v21 = vmax.f32 %v2981_v18, 0.0 }
 0x61a   : > { %v3118_v34 = vmax.f32 %v2992_v17, 0.0 }
 0x61b   : > { %v3116_v58 = vmax.f32 %v2984_v4, 0.0 }
 0x61c   : > { %v3918_v51 = vpack.c.bf16 %v3118_v34, %v3117_v10 }
 0x61d   : > { %v3913_v39 = vpack.c.bf16 %v3116_v58, %v3115_v21  ;;  %v4463_v8 = vpop.f32.mrb[124].mxu1 }
 0x61e   : > { %3990 = vst [vmem:[%s6415_s24 + $0xa8] sm:$0xff] %v3918_v51   ;;  %v3005_v63 = vadd.f32 %v4463_v8, %v6407_v38  ;;  %v2996_v37 = vpop.f32.mrb[125].mxu1 }
 0x61f   : > { %3989 = vst [vmem:[%s6415_s24 + $0xa0] sm:$0xff] %v3913_v39   ;;  %v2997_v20 = vadd.f32 %v6407_v38, %v2996_v37  ;;  %v4464_v13 = vpop.f32.mrb[126].mxu1 }
 0x620   : > { %v3008_v56 = vadd.f32 %v4464_v13, %v6407_v38  ;;  %v2999_v3 = vpop.f32.mrb[127].mxu1  ;;  %v3121_v31 = vmax.f32 %v3005_v63, 0.0 }
 0x621   : > { %v3000_v24 = vadd.f32 %v6407_v38, %v2999_v3  ;;  %v3119_v62 = vmax.f32 %v2997_v20, 0.0 }
 0x622   : > { %v3122_v11 = vmax.f32 %v3008_v56, 0.0 }
 0x623   : > { %v3120_v26 = vmax.f32 %v3000_v24, 0.0 }
 0x624   : > { %v3928_v36 = vpack.c.bf16 %v3122_v11, %v3121_v31 }
 0x625   : > { %v3923_v2 = vpack.c.bf16 %v3120_v26, %v3119_v62  ;;  %v4467_v29 = vpop.f32.mrb[128].mxu1 }
 0x626   : > { %3992 = vst [vmem:[%s6415_s24 + $0xb8] sm:$0xff] %v3928_v36   ;;  %v3021_v5 = vadd.f32 %v4467_v29, %v6407_v38  ;;  %v3012_v25 = vpop.f32.mrb[129].mxu1 }
 0x627   : > { %3991 = vst [vmem:[%s6415_s24 + $0xb0] sm:$0xff] %v3923_v2   ;;  %v3013_v30 = vadd.f32 %v6407_v38, %v3012_v25  ;;  %v4468_v15 = vpop.f32.mrb[130].mxu1 }
 0x628   : > { %v3024_v35 = vadd.f32 %v4468_v15, %v6407_v38  ;;  %v3015_v12 = vpop.f32.mrb[131].mxu1  ;;  %v3125_v28 = vmax.f32 %v3021_v5, 0.0 }
 0x629   : > { %v3016_v59 = vadd.f32 %v6407_v38, %v3015_v12  ;;  %v3123_v52 = vmax.f32 %v3013_v30, 0.0 }
 0x62a   : > { %v3126_v44 = vmax.f32 %v3024_v35, 0.0 }
 0x62b   : > { %v3124_v23 = vmax.f32 %v3016_v59, 0.0 }
 0x62c   : > { %v3938_v53 = vpack.c.bf16 %v3126_v44, %v3125_v28 }
 0x62d   : > { %v3933_v32 = vpack.c.bf16 %v3124_v23, %v3123_v52  ;;  %v4471_v6 = vpop.f32.mrb[132].mxu1 }
 0x62e   : > { %3994 = vst [vmem:[%s6415_s24 + $0xc8] sm:$0xff] %v3938_v53   ;;  %v3037_v57 = vadd.f32 %v4471_v6, %v6407_v38  ;;  %v3028_v46 = vpop.f32.mrb[133].mxu1 }
 0x62f   : > { %3993 = vst [vmem:[%s6415_s24 + $0xc0] sm:$0xff] %v3933_v32   ;;  %v3029_v40 = vadd.f32 %v6407_v38, %v3028_v46  ;;  %v4472_v16 = vpop.f32.mrb[134].mxu1 }
 0x630   : > { %v3040_v42 = vadd.f32 %v4472_v16, %v6407_v38  ;;  %v3031_v61 = vpop.f32.mrb[135].mxu1  ;;  %v3129_v49 = vmax.f32 %v3037_v57, 0.0 }
 0x631   : > { %v3032_v27 = vadd.f32 %v6407_v38, %v3031_v61  ;;  %v3127_v50 = vmax.f32 %v3029_v40, 0.0 }
 0x632   : > { %v3130_v47 = vmax.f32 %v3040_v42, 0.0 }
 0x633   : > { %v3128_v60 = vmax.f32 %v3032_v27, 0.0 }
 0x634   : > { %v3948_v1 = vpack.c.bf16 %v3130_v47, %v3129_v49 }
 0x635   : > { %v3943_v41 = vpack.c.bf16 %v3128_v60, %v3127_v50  ;;  %v4475_v55 = vpop.f32.mrb[136].mxu1 }
 0x636   : > { %3996 = vst [vmem:[%s6415_s24 + $0xd8] sm:$0xff] %v3948_v1   ;;  %v3053_v14 = vadd.f32 %v4475_v55, %v6407_v38  ;;  %v3044_v54 = vpop.f32.mrb[137].mxu1 }
 0x637   : > { %3995 = vst [vmem:[%s6415_s24 + $0xd0] sm:$0xff] %v3943_v41   ;;  %v3045_v7 = vadd.f32 %v6407_v38, %v3044_v54  ;;  %v4476_v43 = vpop.f32.mrb[138].mxu1 }
 0x638   : > { %v3056_v45 = vadd.f32 %v4476_v43, %v6407_v38  ;;  %v3047_v19 = vpop.f32.mrb[139].mxu1  ;;  %v3133_v9 = vmax.f32 %v3053_v14, 0.0 }
 0x639   : > { %v3048_v22 = vadd.f32 %v6407_v38, %v3047_v19  ;;  %v3131_v18 = vmax.f32 %v3045_v7, 0.0 }
 0x63a   : > { %v3134_v48 = vmax.f32 %v3056_v45, 0.0 }
 0x63b   : > { %v3132_v33 = vmax.f32 %v3048_v22, 0.0 }
 0x63c   : > { %v3958_v17 = vpack.c.bf16 %v3134_v48, %v3133_v9 }
 0x63d   : > { %v3953_v0 = vpack.c.bf16 %v3132_v33, %v3131_v18 }
 0x63e   : > { %3998 = vst [vmem:[%s6415_s24 + $0xe8] sm:$0xff] %v3958_v17  }
 0x63f   : > { %3997 = vst [vmem:[%s6415_s24 + $0xe0] sm:$0xff] %v3953_v0  }
 0x682   : > { %v4479_v4 = vpop.f32.mrb[140].mxu1 }
 0x683   : > { %v3069_v10 = vadd.f32 %v4479_v4, %v6407_v38  ;;  %v3060_v34 = vpop.f32.mrb[141].mxu1 }
 0x684   : > { %v3061_v21 = vadd.f32 %v6407_v38, %v3060_v34  ;;  %v4480_v58 = vpop.f32.mrb[142].mxu1 }
 0x685   : > { %v3072_v51 = vadd.f32 %v4480_v58, %v6407_v38  ;;  %v3063_v39 = vpop.f32.mrb[143].mxu1  ;;  %v3137_v63 = vmax.f32 %v3069_v10, 0.0 }
 0x686   : > { %v3064_v8 = vadd.f32 %v6407_v38, %v3063_v39  ;;  %v3135_v20 = vmax.f32 %v3061_v21, 0.0 }
 0x687   : > { %v3138_v37 = vmax.f32 %v3072_v51, 0.0 }
 0x688   : > { %v3136_v13 = vmax.f32 %v3064_v8, 0.0 }
 0x689   : > { %v3968_v56 = vpack.c.bf16 %v3138_v37, %v3137_v63 }
 0x68a   : > { %v3963_v3 = vpack.c.bf16 %v3136_v13, %v3135_v20 }
 0x68b   : > { %4000 = vst [vmem:[%s6415_s24 + $0xf8] sm:$0xff] %v3968_v56  }
 0x68c   : > { %3999 = vst [vmem:[%s6415_s24 + $0xf0] sm:$0xff] %v3963_v3  }
 0x68d   : > { %5082 = shalt.err (!%p5079_p13)
}
 0x68e   : > { %s5083_s1 = scalar_lea.hbm %s6512_s15, 4096  ;;  %s5087_s19 = scalar_lea.hbm %s6568_s8, 8192 }
 0x68f   : > { %p5084_p9 = scmp.ne.s32.totalorder %s6512_s15, %s5083_s1  ;;  %p5088_p6 = scmp.lt.u32.totalorder %s6512_s15, %s6568_s8 }
 0x690   : > { %p5089_p4 = scmp.lt.u32.totalorder %s5087_s19, %s5083_s1  ;;  %p5091_p10 = scmp.lt.u32.totalorder %s5083_s1, %s6512_s15 }
 0x691   : > { %p5085_p0 = pnand %p5084_p9, %p5378_p3 }
 0x692   : > { %p5090_p8 = por %p5089_p4, %p5088_p6 }
 0x693   : > { %p5086_p11 = pneg %p5085_p0 }
 0x694   : > { %p5092_p5 = por %p5091_p10, %p5090_p8 }
 0x696   : > { %p5093_p7 = pnand %p5092_p5, %p5086_p11 }
 0x698   : > { %5096 = shalt.err (!%p5093_p7)
}
 0x699   : > { %s5156_s26 = smov 64   ;;  %s5157_s20 = smov 4  }
 0x69a   : > { %4515 = dma.vmem_to_hbm [thread:$0]  (%p5378_p3), %s6514_s10, 4096, %s6512_s15, %s3460_s9, %s5156_s26, %s5156_s26, %s5157_s20  }
 0x69b PF: > { %s6701_s23 = sld [smem:[#allocation16_spill]]  ;;  %s3488_s12 = sand.u32 1, %s5131_s27  }
 0x69c   : > { %p6703_p1 = scmp.ge.s32.totalorder %s5143_s30, 2  ;;  %s3489_s11 = scalar_lea.sflag [#allocation4], %s3488_s12 }
 0x6a1   : > { %p6702_p12 = scmp.ne.s32.totalorder %s6701_s23, 0 }
 0x6a3   : > { %p4535_p2 = pnand %p6703_p1, %p6702_p12 }
 0x6a5   : > { %5126 = dma.done.wait (!%p4535_p2), %s3489_s11, 4096  }
 0x6a6   : > { %5128 = vsyncadd (!%p4535_p2), %s3489_s11, 4294963200  ;;  %p23_p13 = scmp.ge.s32.totalorder %s5365_s16, 4   ;;  %s6704_s27 = smov %s5135_s28 }
 0x6a7   : > { %s6705_s28 = smov %s5139_s29  ;;  %s6706_s29 = smov %s5374_s21 }
 0x6a8   : > { %s6707_s30 = smov %s5365_s16  ;;  %25 = sbr.rel (!%p23_p13) target bundleno = 9 (0x9), region = 113 }
 0x6af   :  { %3494 = vsyncpa [#allocation3], 1 }
 0x6b0   :  { %3496 = vsyncpa [#allocation3 + $0x1], 1 }
 0x6b1   :  { %3497 = vsyncpa [#allocation6], 1 }
 0x6b2   :  { %3498 = vsyncpa [#allocation9], 1 }
 0x6b3   :  { %3499 = vsyncpa [#allocation4], 1 }
 0x6b4   :  { %3501 = vsyncpa [#allocation4 + $0x1], 1 }

</bundles_post_ra>
